<compile_context>
chip_gen: v5e
topology: v5e:2x2
jax: 0.10.0
libtpu: 0.0.40
codegen_flags: <defaults>
</compile_context>

<pallas_src>
import math

import jax
import jax.numpy as jnp
from jax.experimental import pallas as pl
from jax.experimental.pallas import tpu as pltpu


NEG_SLOPE = 0.2  # LeakyReLU negative slope used throughout Transform_Net.
C_IN = 6         # input channels of the k-NN edge feature.


def _leaky_relu(y):
    # For slope in (0, 1): LeakyReLU(y) == max(y, slope * y).
    return jnp.maximum(y, NEG_SLOPE * y)


def _make_kernel(tile_n, k):
    def kernel(x_ref,
               w1_ref, b1_ref,   # conv1:   6    -> 64    (+BN64 folded)
               w2_ref, b2_ref,   # conv2:   64   -> 128   (+BN128 folded)
               w3_ref, b3_ref,   # conv3:   128  -> 1024  (+BN1024 folded)
               w4_ref, b4_ref,   # linear1: 1024 -> 512   (+BN512 folded)
               w5_ref, b5_ref,   # linear2: 512  -> 256   (+BN256 folded)
               w6_ref, b6_ref,   # transform: 256 -> 9 (weight=0, bias=eye(3))
               out_ref,
               acc_ref):
        n = pl.program_id(1)

        @pl.when(n == 0)
        def _():
            acc_ref[...] = jnp.full(acc_ref.shape, -jnp.inf,
                                    dtype=acc_ref.dtype)

        def layer(h, w_ref, b_ref):
            w = w_ref[...]
            y = jnp.dot(h.astype(w.dtype), w,
                        preferred_element_type=jnp.float32)
            return _leaky_relu(y + b_ref[...])

        # x_ref is (k, tile_n, 6): neighbor index outermost, so the later max
        # over k uses sublane-aligned contiguous slices (tile_n % 8 == 0).
        h = x_ref[...].reshape(k * tile_n, C_IN)           # (k*tile_n, 6) f32
        h = layer(h, w1_ref, b1_ref)                       # (k*tile_n, 64)
        h = layer(h, w2_ref, b2_ref)                       # (k*tile_n, 128)

        # x.max(dim=-1): max over the k neighbor axis -> (tile_n, 128).
        m = h[0:tile_n]
        for kk in range(1, k):
            m = jnp.maximum(m, h[kk * tile_n:(kk + 1) * tile_n])

        # conv3, then running max over the point axis (second x.max(dim=-1)).
        m = layer(m, w3_ref, b3_ref)                       # (tile_n, 1024)
        acc_ref[...] = jnp.maximum(acc_ref[...],
                                   jnp.max(m, axis=0, keepdims=True))

        # Fused MLP head, executed once per batch element on its last N-tile.
        @pl.when(n == pl.num_programs(1) - 1)
        def _():
            g = acc_ref[...]                                # (1, 1024)
            g = layer(g, w4_ref, b4_ref)                    # (1, 512)
            g = layer(g, w5_ref, b5_ref)                    # (1, 256)
            w6 = w6_ref[...]
            t = jnp.dot(g.astype(w6.dtype), w6,
                        preferred_element_type=jnp.float32) + b6_ref[...]
            out_ref[...] = t                                # (1, 9)

    return kernel


def _pick_tile_n(n_points, k, target_rows=1024):
    """Largest divisor of N (multiple of 8, or N itself) with tile_n*k <= target."""
    cands = [t for t in range(1, n_points + 1)
             if n_points % t == 0 and (t % 8 == 0 or t == n_points)]
    fitting = [t for t in cands if t * k <= target_rows]
    return max(fitting) if fitting else min(cands)


def transform_net_forward(x, params, *, tile_n=None):
    """x: (B, 6, N, k) in the PyTorch Conv2d layout. Returns (B, 3, 3)."""
    B, c_in, N, K = x.shape
    assert c_in == C_IN, c_in
    if tile_n is None or N % tile_n or (tile_n % 8 and tile_n != N):
        tile_n = _pick_tile_n(N, K)
    num_n_tiles = N // tile_n
    emb = params["w3"].shape[1]            # 1024

    # Neighbor-major, channels-last: (B, k, N, 6).
    x_r = jnp.transpose(x, (0, 3, 2, 1))

    in_specs = [pl.BlockSpec((None, K, tile_n, c_in),
                             lambda b, n: (b, 0, n, 0))]
    weight_args = []
    for i in range(1, 7):
        w = params[f"w{i}"]
        bvec = params[f"b{i}"]
        in_specs += [pl.BlockSpec(w.shape, lambda b, n: (0, 0)),
                     pl.BlockSpec(bvec.shape, lambda b, n: (0, 0))]
        weight_args += [w, bvec]

    flops = 2 * (B * N * K * (6 * 64 + 64 * 128)
                 + B * N * 128 * 1024
                 + B * (1024 * 512 + 512 * 256 + 256 * 9))
    bytes_accessed = int(x_r.size) * 4 + B * 9 * 4
    bytes_accessed += sum(int(a.size) * a.dtype.itemsize for a in weight_args)

    out = pl.pallas_call(
        _make_kernel(tile_n, K),
        out_shape=jax.ShapeDtypeStruct((B, 1, 9), jnp.float32),
        grid=(B, num_n_tiles),
        in_specs=in_specs,
        out_specs=pl.BlockSpec((None, 1, 9), lambda b, n: (b, 0, 0)),
        scratch_shapes=[pltpu.VMEM((1, emb), jnp.float32)],
        compiler_params=pltpu.CompilerParams(
            dimension_semantics=("parallel", "arbitrary")),
        cost_estimate=pl.CostEstimate(flops=flops, transcendentals=0,
                                      bytes_accessed=bytes_accessed),
    )(x_r, *weight_args)

    return out[:, 0, :].reshape(B, 3, 3)


def make_params(key, *, eps=1e-5, identity_head=True):
    """Deterministic params matching Transform_Net shapes, BN folded (eval)."""
    keys = jax.random.split(key, 6)
    dims = [(6, 64), (64, 128), (128, 1024), (1024, 512), (512, 256)]
    bn_scale = 1.0 / math.sqrt(1.0 + eps)   # gamma=1, beta=0, mean=0, var=1

    p = {}
    for i, ((cin, cout), k) in enumerate(zip(dims, keys[:5]), start=1):
        w = (jax.random.normal(k, (cin, cout), jnp.float32)
             / jnp.sqrt(jnp.float32(cin)))
        w = w * bn_scale                            # fold BN scale into weight
        # conv1's contraction dim is only 6 (MXU-irrelevant) -> keep f32;
        # the big matmuls run bf16 with f32 accumulation.
        dtype = jnp.float32 if i == 1 else jnp.bfloat16
        p[f"w{i}"] = w.astype(dtype)
        p[f"b{i}"] = jnp.zeros((1, cout), jnp.float32)    # folded BN shift
    if identity_head:
        # transform layer: weight init to 0, bias init to eye(3) (module init).
        p["w6"] = jnp.zeros((256, 9), jnp.float32)
    else:
        p["w6"] = (jax.random.normal(keys[5], (256, 9), jnp.float32)
                   / jnp.sqrt(jnp.float32(256)))
    p["b6"] = jnp.eye(3, dtype=jnp.float32).reshape(1, 9)
    return p


def transform_net_reference(x, params):
    """Pure-JAX reference with the same mixed-precision semantics."""
    B, _, N, K = x.shape

    def layer(h, w, b):
        y = jnp.dot(h.astype(w.dtype), w,
                    preferred_element_type=jnp.float32) + b
        return _leaky_relu(y)

    h = jnp.transpose(x, (0, 2, 3, 1)).reshape(B, N * K, C_IN)
    h = layer(h, params["w1"], params["b1"])               # (B, N*K, 64)
    h = layer(h, params["w2"], params["b2"])               # (B, N*K, 128)
    h = jnp.max(h.reshape(B, N, K, -1), axis=2)            # max over k
    h = layer(h, params["w3"], params["b3"])               # (B, N, 1024)
    g = jnp.max(h, axis=1)                                  # max over N
    g = layer(g, params["w4"], params["b4"])                # (B, 512)
    g = layer(g, params["w5"], params["b5"])                # (B, 256)
    t = jnp.dot(g.astype(params["w6"].dtype), params["w6"],
                preferred_element_type=jnp.float32) + params["b6"]
    return t.reshape(B, 3, 3)


if __name__ == "__main__":
    key = jax.random.PRNGKey(0)
    kx, kp = jax.random.split(key)

    B, N, K = 2, 64, 8                      # x: (batch, 6, num_points, k)
    x = jax.random.normal(kx, (B, 6, N, K), jnp.float32)

    # 1) Module-init params (transform.weight = 0, transform.bias = eye(3)):
    #    the forward pass must return exact identity matrices.
    params = make_params(kp)
    out = jax.block_until_ready(transform_net_forward(x, params))
    assert out.shape == (B, 3, 3), out.shape
    assert bool(jnp.all(jnp.isfinite(out)))
    assert bool(jnp.allclose(out, jnp.eye(3)[None, :, :], atol=1e-5))

    # 2) Randomized head: exercise the whole backbone against a pure-JAX
    #    reference with matching mixed precision.
    params_r = make_params(kp, identity_head=False)
    out_r = jax.block_until_ready(transform_net_forward(x, params_r))
    ref_r = transform_net_reference(x, params_r)
    assert bool(jnp.allclose(out_r, ref_r, atol=5e-2, rtol=5e-2)), (
        float(jnp.max(jnp.abs(out_r - ref_r))))

    print("KERNEL_OK")
</pallas_src>

<mosaic_0001>
module attributes {stable_mosaic.version = 11 : i64} {
  func.func @kernel(%arg0: i32, %arg1: i32, %arg2: memref<1x8x64x6xf32, #tpu.memory_space<vmem>>, %arg3: memref<6x64xf32, #tpu.memory_space<vmem>>, %arg4: memref<1x64xf32, #tpu.memory_space<vmem>>, %arg5: memref<64x128xbf16, #tpu.memory_space<vmem>>, %arg6: memref<1x128xf32, #tpu.memory_space<vmem>>, %arg7: memref<128x1024xbf16, #tpu.memory_space<vmem>>, %arg8: memref<1x1024xf32, #tpu.memory_space<vmem>>, %arg9: memref<1024x512xbf16, #tpu.memory_space<vmem>>, %arg10: memref<1x512xf32, #tpu.memory_space<vmem>>, %arg11: memref<512x256xbf16, #tpu.memory_space<vmem>>, %arg12: memref<1x256xf32, #tpu.memory_space<vmem>>, %arg13: memref<256x9xf32, #tpu.memory_space<vmem>>, %arg14: memref<1x9xf32, #tpu.memory_space<vmem>>, %arg15: memref<1x1x9xf32, #tpu.memory_space<vmem>>, %arg16: memref<1x1024xf32, #tpu.memory_space<vmem>>) attributes {dimension_semantics = [#tpu.dimension_semantics<parallel>, #tpu.dimension_semantics<arbitrary>], iteration_bounds = array<i64: 2, 1>, scalar_prefetch = 0 : i64, scratch_operands = 1 : i64, tpu.core_type = #tpu.core_type<tc>, window_params = [{transform_indices = @transform_0, window_bounds = array<i64: 1, 8, 64, 6>}, {pipeline_mode = #tpu.pipeline_mode<synchronous>, transform_indices = @transform_1, window_bounds = array<i64: 6, 64>}, {pipeline_mode = #tpu.pipeline_mode<synchronous>, transform_indices = @transform_2, window_bounds = array<i64: 1, 64>}, {pipeline_mode = #tpu.pipeline_mode<synchronous>, transform_indices = @transform_3, window_bounds = array<i64: 64, 128>}, {pipeline_mode = #tpu.pipeline_mode<synchronous>, transform_indices = @transform_4, window_bounds = array<i64: 1, 128>}, {pipeline_mode = #tpu.pipeline_mode<synchronous>, transform_indices = @transform_5, window_bounds = array<i64: 128, 1024>}, {pipeline_mode = #tpu.pipeline_mode<synchronous>, transform_indices = @transform_6, window_bounds = array<i64: 1, 1024>}, {pipeline_mode = #tpu.pipeline_mode<synchronous>, transform_indices = @transform_7, window_bounds = array<i64: 1024, 512>}, {pipeline_mode = #tpu.pipeline_mode<synchronous>, transform_indices = @transform_8, window_bounds = array<i64: 1, 512>}, {pipeline_mode = #tpu.pipeline_mode<synchronous>, transform_indices = @transform_9, window_bounds = array<i64: 512, 256>}, {pipeline_mode = #tpu.pipeline_mode<synchronous>, transform_indices = @transform_10, window_bounds = array<i64: 1, 256>}, {pipeline_mode = #tpu.pipeline_mode<synchronous>, transform_indices = @transform_11, window_bounds = array<i64: 256, 9>}, {pipeline_mode = #tpu.pipeline_mode<synchronous>, transform_indices = @transform_12, window_bounds = array<i64: 1, 9>}, {transform_indices = @transform_13, window_bounds = array<i64: 1, 1, 9>}]} {
    %c0_i32 = arith.constant 0 : i32
    %0 = arith.cmpi eq, %arg1, %c0_i32 : i32
    %1 = arith.extui %0 : i1 to i32
    %c0_i32_0 = arith.constant 0 : i32
    %2 = arith.cmpi ne, %1, %c0_i32_0 : i32
    scf.if %2 {
      %cst_28 = arith.constant 0xFF800000 : f32
      %55 = vector.broadcast %cst_28 : f32 to vector<1x1024xf32>
      %c0_29 = arith.constant 0 : index
      %c0_30 = arith.constant 0 : index
      %56 = vector.load %arg16[%c0_29, %c0_30] : memref<1x1024xf32, #tpu.memory_space<vmem>>, vector<1x1024xf32>
      tpu.vector_store %arg16[%c0_29, %c0_30], %55 {strides = array<i32>} : memref<1x1024xf32, #tpu.memory_space<vmem>>, vector<1x1024xf32>,
    } else {
    }
    %c0 = arith.constant 0 : index
    %c0_1 = arith.constant 0 : index
    %c0_2 = arith.constant 0 : index
    %c0_3 = arith.constant 0 : index
    %3 = vector.load %arg2[%c0, %c0_1, %c0_2, %c0_3] : memref<1x8x64x6xf32, #tpu.memory_space<vmem>>, vector<1x8x64x6xf32>
    %4 = vector.shape_cast %3 : vector<1x8x64x6xf32> to vector<8x64x6xf32>
    %5 = vector.shape_cast %4 : vector<8x64x6xf32> to vector<512x6xf32>
    %c0_4 = arith.constant 0 : index
    %c0_5 = arith.constant 0 : index
    %6 = vector.load %arg3[%c0_4, %c0_5] : memref<6x64xf32, #tpu.memory_space<vmem>>, vector<6x64xf32>
    %cst = arith.constant dense<0.000000e+00> : vector<512x64xf32>
    %7 = tpu.matmul %5, %6, %cst {dimension_numbers = #tpu.dot_dimension_numbers<[1], [0], [0], [1], [0, 0, 1, 1], [], []>} : vector<512x6xf32>, vector<6x64xf32>, vector<512x64xf32> -> vector<512x64xf32>
    %c0_6 = arith.constant 0 : index
    %c0_7 = arith.constant 0 : index
    %8 = vector.load %arg4[%c0_6, %c0_7] : memref<1x64xf32, #tpu.memory_space<vmem>>, vector<1x64xf32>
    %9 = vector.broadcast %8 : vector<1x64xf32> to vector<512x64xf32>
    %10 = arith.addf %7, %9 : vector<512x64xf32>
    %cst_8 = arith.constant 2.000000e-01 : f32
    %11 = vector.broadcast %cst_8 : f32 to vector<512x64xf32>
    %12 = arith.mulf %11, %10 : vector<512x64xf32>
    %13 = arith.maximumf %10, %12 : vector<512x64xf32>
    %c0_9 = arith.constant 0 : index
    %c0_10 = arith.constant 0 : index
    %14 = vector.load %arg5[%c0_9, %c0_10] : memref<64x128xbf16, #tpu.memory_space<vmem>>, vector<64x128xbf16>
    %15 = arith.truncf %13 : vector<512x64xf32> to vector<512x64xbf16>
    %cst_11 = arith.constant dense<0.000000e+00> : vector<512x128xf32>
    %16 = tpu.matmul %15, %14, %cst_11 {dimension_numbers = #tpu.dot_dimension_numbers<[1], [0], [0], [1], [0, 0, 1, 1], [], []>} : vector<512x64xbf16>, vector<64x128xbf16>, vector<512x128xf32> -> vector<512x128xf32>
    %c0_12 = arith.constant 0 : index
    %c0_13 = arith.constant 0 : index
    %17 = vector.load %arg6[%c0_12, %c0_13] : memref<1x128xf32, #tpu.memory_space<vmem>>, vector<1x128xf32>
    %18 = vector.broadcast %17 : vector<1x128xf32> to vector<512x128xf32>
    %19 = arith.addf %16, %18 : vector<512x128xf32>
    %cst_14 = arith.constant 2.000000e-01 : f32
    %20 = vector.broadcast %cst_14 : f32 to vector<512x128xf32>
    %21 = arith.mulf %20, %19 : vector<512x128xf32>
    %22 = arith.maximumf %19, %21 : vector<512x128xf32>
    %23 = vector.extract_strided_slice %22 {offsets = [0, 0], sizes = [64, 128], strides = [1, 1]} : vector<512x128xf32> to vector<64x128xf32>
    %24 = vector.extract_strided_slice %22 {offsets = [64, 0], sizes = [64, 128], strides = [1, 1]} : vector<512x128xf32> to vector<64x128xf32>
    %25 = arith.maximumf %23, %24 : vector<64x128xf32>
    %26 = vector.extract_strided_slice %22 {offsets = [128, 0], sizes = [64, 128], strides = [1, 1]} : vector<512x128xf32> to vector<64x128xf32>
    %27 = arith.maximumf %25, %26 : vector<64x128xf32>
    %28 = vector.extract_strided_slice %22 {offsets = [192, 0], sizes = [64, 128], strides = [1, 1]} : vector<512x128xf32> to vector<64x128xf32>
    %29 = arith.maximumf %27, %28 : vector<64x128xf32>
    %30 = vector.extract_strided_slice %22 {offsets = [256, 0], sizes = [64, 128], strides = [1, 1]} : vector<512x128xf32> to vector<64x128xf32>
    %31 = arith.maximumf %29, %30 : vector<64x128xf32>
    %32 = vector.extract_strided_slice %22 {offsets = [320, 0], sizes = [64, 128], strides = [1, 1]} : vector<512x128xf32> to vector<64x128xf32>
    %33 = arith.maximumf %31, %32 : vector<64x128xf32>
    %34 = vector.extract_strided_slice %22 {offsets = [384, 0], sizes = [64, 128], strides = [1, 1]} : vector<512x128xf32> to vector<64x128xf32>
    %35 = arith.maximumf %33, %34 : vector<64x128xf32>
    %36 = vector.extract_strided_slice %22 {offsets = [448, 0], sizes = [64, 128], strides = [1, 1]} : vector<512x128xf32> to vector<64x128xf32>
    %37 = arith.maximumf %35, %36 : vector<64x128xf32>
    %c0_15 = arith.constant 0 : index
    %c0_16 = arith.constant 0 : index
    %38 = vector.load %arg7[%c0_15, %c0_16] : memref<128x1024xbf16, #tpu.memory_space<vmem>>, vector<128x1024xbf16>
    %39 = arith.truncf %37 : vector<64x128xf32> to vector<64x128xbf16>
    %cst_17 = arith.constant dense<0.000000e+00> : vector<64x1024xf32>
    %40 = tpu.matmul %39, %38, %cst_17 {dimension_numbers = #tpu.dot_dimension_numbers<[1], [0], [0], [1], [0, 0, 1, 1], [], []>} : vector<64x128xbf16>, vector<128x1024xbf16>, vector<64x1024xf32> -> vector<64x1024xf32>
    %c0_18 = arith.constant 0 : index
    %c0_19 = arith.constant 0 : index
    %41 = vector.load %arg8[%c0_18, %c0_19] : memref<1x1024xf32, #tpu.memory_space<vmem>>, vector<1x1024xf32>
    %42 = vector.broadcast %41 : vector<1x1024xf32> to vector<64x1024xf32>
    %43 = arith.addf %40, %42 : vector<64x1024xf32>
    %cst_20 = arith.constant 2.000000e-01 : f32
    %44 = vector.broadcast %cst_20 : f32 to vector<64x1024xf32>
    %45 = arith.mulf %44, %43 : vector<64x1024xf32>
    %46 = arith.maximumf %43, %45 : vector<64x1024xf32>
    %c0_21 = arith.constant 0 : index
    %c0_22 = arith.constant 0 : index
    %47 = vector.load %arg16[%c0_21, %c0_22] : memref<1x1024xf32, #tpu.memory_space<vmem>>, vector<1x1024xf32>
    %cst_23 = arith.constant dense<0xFF800000> : vector<1024xf32>
    %48 = vector.multi_reduction <maximumf>, %46, %cst_23 [0] : vector<64x1024xf32> to vector<1024xf32>
    %49 = vector.shape_cast %48 : vector<1024xf32> to vector<1x1024xf32>
    %50 = arith.maximumf %47, %49 : vector<1x1024xf32>
    %c0_24 = arith.constant 0 : index
    %c0_25 = arith.constant 0 : index
    %51 = vector.load %arg16[%c0_24, %c0_25] : memref<1x1024xf32, #tpu.memory_space<vmem>>, vector<1x1024xf32>
    tpu.vector_store %arg16[%c0_24, %c0_25], %50 {strides = array<i32>} : memref<1x1024xf32, #tpu.memory_space<vmem>>, vector<1x1024xf32>,
    %c0_i32_26 = arith.constant 0 : i32
    %52 = arith.cmpi eq, %arg1, %c0_i32_26 : i32
    %53 = arith.extui %52 : i1 to i32
    %c0_i32_27 = arith.constant 0 : i32
    %54 = arith.cmpi ne, %53, %c0_i32_27 : i32
    scf.if %54 {
      %c0_28 = arith.constant 0 : index
      %c0_29 = arith.constant 0 : index
      %55 = vector.load %arg16[%c0_28, %c0_29] : memref<1x1024xf32, #tpu.memory_space<vmem>>, vector<1x1024xf32>
      %c0_30 = arith.constant 0 : index
      %c0_31 = arith.constant 0 : index
      %56 = vector.load %arg9[%c0_30, %c0_31] : memref<1024x512xbf16, #tpu.memory_space<vmem>>, vector<1024x512xbf16>
      %57 = arith.truncf %55 : vector<1x1024xf32> to vector<1x1024xbf16>
      %cst_32 = arith.constant dense<0.000000e+00> : vector<1x512xf32>
      %58 = tpu.matmul %57, %56, %cst_32 {dimension_numbers = #tpu.dot_dimension_numbers<[1], [0], [0], [1], [0, 0, 1, 1], [], []>} : vector<1x1024xbf16>, vector<1024x512xbf16>, vector<1x512xf32> -> vector<1x512xf32>
      %c0_33 = arith.constant 0 : index
      %c0_34 = arith.constant 0 : index
      %59 = vector.load %arg10[%c0_33, %c0_34] : memref<1x512xf32, #tpu.memory_space<vmem>>, vector<1x512xf32>
      %60 = arith.addf %58, %59 : vector<1x512xf32>
      %cst_35 = arith.constant 2.000000e-01 : f32
      %61 = vector.broadcast %cst_35 : f32 to vector<1x512xf32>
      %62 = arith.mulf %61, %60 : vector<1x512xf32>
      %63 = arith.maximumf %60, %62 : vector<1x512xf32>
      %c0_36 = arith.constant 0 : index
      %c0_37 = arith.constant 0 : index
      %64 = vector.load %arg11[%c0_36, %c0_37] : memref<512x256xbf16, #tpu.memory_space<vmem>>, vector<512x256xbf16>
      %65 = arith.truncf %63 : vector<1x512xf32> to vector<1x512xbf16>
      %cst_38 = arith.constant dense<0.000000e+00> : vector<1x256xf32>
      %66 = tpu.matmul %65, %64, %cst_38 {dimension_numbers = #tpu.dot_dimension_numbers<[1], [0], [0], [1], [0, 0, 1, 1], [], []>} : vector<1x512xbf16>, vector<512x256xbf16>, vector<1x256xf32> -> vector<1x256xf32>
      %c0_39 = arith.constant 0 : index
      %c0_40 = arith.constant 0 : index
      %67 = vector.load %arg12[%c0_39, %c0_40] : memref<1x256xf32, #tpu.memory_space<vmem>>, vector<1x256xf32>
      %68 = arith.addf %66, %67 : vector<1x256xf32>
      %cst_41 = arith.constant 2.000000e-01 : f32
      %69 = vector.broadcast %cst_41 : f32 to vector<1x256xf32>
      %70 = arith.mulf %69, %68 : vector<1x256xf32>
      %71 = arith.maximumf %68, %70 : vector<1x256xf32>
      %c0_42 = arith.constant 0 : index
      %c0_43 = arith.constant 0 : index
      %72 = vector.load %arg13[%c0_42, %c0_43] : memref<256x9xf32, #tpu.memory_space<vmem>>, vector<256x9xf32>
      %cst_44 = arith.constant dense<0.000000e+00> : vector<1x9xf32>
      %73 = tpu.matmul %71, %72, %cst_44 {dimension_numbers = #tpu.dot_dimension_numbers<[1], [0], [0], [1], [0, 0, 1, 1], [], []>} : vector<1x256xf32>, vector<256x9xf32>, vector<1x9xf32> -> vector<1x9xf32>
      %c0_45 = arith.constant 0 : index
      %c0_46 = arith.constant 0 : index
      %74 = vector.load %arg14[%c0_45, %c0_46] : memref<1x9xf32, #tpu.memory_space<vmem>>, vector<1x9xf32>
      %75 = arith.addf %73, %74 : vector<1x9xf32>
      %c0_47 = arith.constant 0 : index
      %c0_48 = arith.constant 0 : index
      %c0_49 = arith.constant 0 : index
      %76 = vector.load %arg15[%c0_47, %c0_48, %c0_49] : memref<1x1x9xf32, #tpu.memory_space<vmem>>, vector<1x1x9xf32>
      %77 = vector.shape_cast %76 : vector<1x1x9xf32> to vector<1x9xf32>
      %78 = vector.shape_cast %75 : vector<1x9xf32> to vector<1x1x9xf32>
      tpu.vector_store %arg15[%c0_47, %c0_48, %c0_49], %78 {strides = array<i32>} : memref<1x1x9xf32, #tpu.memory_space<vmem>>, vector<1x1x9xf32>,
    } else {
    }
    return
  }
  func.func @transform_0(%arg0: i32, %arg1: i32) -> (i32, i32, i32, i32) {
    %c0_i32 = arith.constant 0 : i32
    %c0_i32_0 = arith.constant 0 : i32
    %c0_i32_1 = arith.constant 0 : i32
    return %arg0, %c0_i32, %arg1, %c0_i32_0 : i32, i32, i32, i32
  }
  func.func @transform_1(%arg0: i32, %arg1: i32) -> (i32, i32) {
    %c0_i32 = arith.constant 0 : i32
    %c0_i32_0 = arith.constant 0 : i32
    %c0_i32_1 = arith.constant 0 : i32
    return %c0_i32, %c0_i32_0 : i32, i32
  }
  func.func @transform_2(%arg0: i32, %arg1: i32) -> (i32, i32) {
    %c0_i32 = arith.constant 0 : i32
    %c0_i32_0 = arith.constant 0 : i32
    %c0_i32_1 = arith.constant 0 : i32
    return %c0_i32, %c0_i32_0 : i32, i32
  }
  func.func @transform_3(%arg0: i32, %arg1: i32) -> (i32, i32) {
    %c0_i32 = arith.constant 0 : i32
    %c0_i32_0 = arith.constant 0 : i32
    %c0_i32_1 = arith.constant 0 : i32
    return %c0_i32, %c0_i32_0 : i32, i32
  }
  func.func @transform_4(%arg0: i32, %arg1: i32) -> (i32, i32) {
    %c0_i32 = arith.constant 0 : i32
    %c0_i32_0 = arith.constant 0 : i32
    %c0_i32_1 = arith.constant 0 : i32
    return %c0_i32, %c0_i32_0 : i32, i32
  }
  func.func @transform_5(%arg0: i32, %arg1: i32) -> (i32, i32) {
    %c0_i32 = arith.constant 0 : i32
    %c0_i32_0 = arith.constant 0 : i32
    %c0_i32_1 = arith.constant 0 : i32
    return %c0_i32, %c0_i32_0 : i32, i32
  }
  func.func @transform_6(%arg0: i32, %arg1: i32) -> (i32, i32) {
    %c0_i32 = arith.constant 0 : i32
    %c0_i32_0 = arith.constant 0 : i32
    %c0_i32_1 = arith.constant 0 : i32
    return %c0_i32, %c0_i32_0 : i32, i32
  }
  func.func @transform_7(%arg0: i32, %arg1: i32) -> (i32, i32) {
    %c0_i32 = arith.constant 0 : i32
    %c0_i32_0 = arith.constant 0 : i32
    %c0_i32_1 = arith.constant 0 : i32
    return %c0_i32, %c0_i32_0 : i32, i32
  }
  func.func @transform_8(%arg0: i32, %arg1: i32) -> (i32, i32) {
    %c0_i32 = arith.constant 0 : i32
    %c0_i32_0 = arith.constant 0 : i32
    %c0_i32_1 = arith.constant 0 : i32
    return %c0_i32, %c0_i32_0 : i32, i32
  }
  func.func @transform_9(%arg0: i32, %arg1: i32) -> (i32, i32) {
    %c0_i32 = arith.constant 0 : i32
    %c0_i32_0 = arith.constant 0 : i32
    %c0_i32_1 = arith.constant 0 : i32
    return %c0_i32, %c0_i32_0 : i32, i32
  }
  func.func @transform_10(%arg0: i32, %arg1: i32) -> (i32, i32) {
    %c0_i32 = arith.constant 0 : i32
    %c0_i32_0 = arith.constant 0 : i32
    %c0_i32_1 = arith.constant 0 : i32
    return %c0_i32, %c0_i32_0 : i32, i32
  }
  func.func @transform_11(%arg0: i32, %arg1: i32) -> (i32, i32) {
    %c0_i32 = arith.constant 0 : i32
    %c0_i32_0 = arith.constant 0 : i32
    %c0_i32_1 = arith.constant 0 : i32
    return %c0_i32, %c0_i32_0 : i32, i32
  }
  func.func @transform_12(%arg0: i32, %arg1: i32) -> (i32, i32) {
    %c0_i32 = arith.constant 0 : i32
    %c0_i32_0 = arith.constant 0 : i32
    %c0_i32_1 = arith.constant 0 : i32
    return %c0_i32, %c0_i32_0 : i32, i32
  }
  func.func @transform_13(%arg0: i32, %arg1: i32) -> (i32, i32, i32) {
    %c0_i32 = arith.constant 0 : i32
    %c0_i32_0 = arith.constant 0 : i32
    %c0_i32_1 = arith.constant 0 : i32
    return %arg0, %c0_i32, %c0_i32_0 : i32, i32, i32
  }
}

</mosaic_0001>

<bundles_post_ra>
// kernel: tpu_custom_call.1
= control target key start
LH: loop header
LB: loop body
LE: loop exit
PB: predicated region body
PF: predicated region fallthrough
CT: control target
= control target key end

     0   :  { %s9308_s0 = inlined_call_operand.vmem [shape: f32[2,8,64,6], index: 0, kind: input, shape index: {}]   ;;  %s9309_s1 = inlined_call_operand.vmem [shape: f32[6,64], index: 1, kind: input, shape index: {}]   ;;  %s9310_s2 = inlined_call_operand.vmem [shape: f32[1,64], index: 2, kind: input, shape index: {}]   ;;  %s9311_s3 = inlined_call_operand.vmem [shape: bf16[64,128], index: 3, kind: input, shape index: {}]   ;;  %s9312_s4 = inlined_call_operand.vmem [shape: f32[1,128], index: 4, kind: input, shape index: {}]   ;;  %s9313_s5 = inlined_call_operand.vmem [shape: bf16[128,1024], index: 5, kind: input, shape index: {}]   ;;  %s9314_s6 = inlined_call_operand.vmem [shape: f32[1,1024], index: 6, kind: input, shape index: {}]   ;;  %s9315_s7 = inlined_call_operand.hbm [shape: bf16[1024,512], index: 7, kind: input, shape index: {}]   ;;  %s9316_s8 = inlined_call_operand.vmem [shape: f32[1,512], index: 8, kind: input, shape index: {}]   ;;  %s9317_s9 = inlined_call_operand.vmem [shape: bf16[512,256], index: 9, kind: input, shape index: {}]   ;;  %s9318_s10 = inlined_call_operand.vmem [shape: f32[1,256], index: 10, kind: input, shape index: {}]   ;;  %s9319_s11 = inlined_call_operand.vmem [shape: f32[256,9], index: 11, kind: input, shape index: {}]   ;;  %s9320_s12 = inlined_call_operand.vmem [shape: f32[1,9], index: 12, kind: input, shape index: {}]   ;;  %s9321_s13 = inlined_call_operand.hbm [shape: f32[2,1,9], index: 13, kind: output, shape index: {}]  }
   0x1   :  { %9324 = sst [smem:[#allocation11_spill]] %s9308_s0 }
   0x2   :  { %9325 = sst [smem:[#allocation12_spill]] %s9315_s7 }
   0x3   :  { %18 = vsyncpa [#allocation4], 0 }
   0x4   :  { %19 = vsyncpa [#allocation5], 0 }
   0x5   :  { %21 = vsyncpa [#allocation5 + $0x1], 0  ;;  %s7492_s25 = smov 0   ;;  %s7494_s26 = smov 0  }
   0x6   :  { %s7496_s27 = smov 0   ;;  %s7498_s28 = smov 0  }
   0x7   :  { %s7500_s29 = smov 0   ;;  %s7502_s30 = smov 0  }
   0x8 LB: > { %9326 = sst [smem:[#allocation9_spill]] %s7397_s25  ;;  %s5183_s14 = sadd.s32 4294967295, %s7417_s30   ;;  %s7417_s30 = sphi %s7502_s30, %s27_s30   ;;  %s7413_s29 = sphi %s7500_s29, %s9338_s29   ;;  %s7409_s28 = sphi %s7498_s28, %s9337_s28   ;;  %s7405_s27 = sphi %s7496_s27, %s9336_s27   ;;  %s7401_s26 = sphi %s7494_s26, %s9335_s26   ;;  %s7397_s25 = sphi %s7492_s25, %s9334_s25  }
   0x9   : > { %s5184_s15 = sadd.s32 4294967294, %s7417_s30   ;;  %s39_s16 = sadd.s32 1, %s7413_s29 }
   0xa   : > { %s326_s17 = sadd.s32 1, %s7405_s27  ;;  %p41_p0 = scmp.ge.s32.totalorder %s39_s16, 2 }
   0xb   : > { %p336_p1 = scmp.ne.s32.totalorder %s7405_s27, %s7401_s26  ;;  %p337_p2 = scmp.eq.s32.totalorder %s5183_s14, 1 }
   0xc   : > { %p342_p3 = scmp.ne.s32.totalorder %s7401_s26, %s7397_s25  ;;  %s9340_s16 = smov (%p41_p0, %s39_s16), 0 }
   0xd   : > { %9327 = sst [smem:[#allocation10_spill]] %s9340_s16  ;;  %p7532_p4 = por %p337_p2, %p336_p1 }
   0xe   : > { %p343_p5 = scmp.eq.s32.totalorder %s5184_s15, 1  ;;  %s323_s19 = ssub.s32 %s7413_s29, %s9340_s16 }
   0xf   : > { %p5185_p6 = scmp.ge.s32.totalorder %s7417_s30, 1  ;;  %p324_p7 = scmp.eq.s32.totalorder %s323_s19, 0 }
  0x10   : > { %p7539_p8 = por %p343_p5, %p342_p3  ;;  %p350_p9 = scmp.lt.s32.totalorder %s7417_s30, 3 }
  0x11   : > { %s7545_s21 = scalar_select %p324_p7, %s7405_s27, %s326_s17  }
  0x12   : > { %p351_p10 = pnand %p5185_p6, %p350_p9  ;;  %p7246_p11 = scmp.eq.s32.totalorder %s5183_s14, 0 }
  0x13   : > { %s9330_s7 = sld [smem:[#allocation12_spill]]  ;;  %s7419_s25 = smov [#allocation3]  }
  0x14   : > { %p7238_p12 = pneg %p351_p10  ;;  %s381_s15 = sshll.u32 %s7419_s25, 4  ;;  %s382_s15 = int_to_ptr.vmem [resolvable:$true] %s381_s15 }
  0x15   : > { %s7420_s19 = smov 256   ;;  %s7421_s16 = smov 16  }
  0x16   : > { %p7239_p13 = pnand %p7246_p11, %p7238_p12  ;;  %425 = sbr.rel (%p351_p10) target bundleno = 1926 (0x786), region = 72 }
  0x19   : > { %s379_s24 = sshll.u32 %s9330_s7, 4  ;;  %s380_s24 = int_to_ptr.hbm [resolvable:$true] %s379_s24 }
  0x1a   : > { %7241 = dma.hbm_to_vmem [thread:$0]  (!%p7239_p13), %s380_s24, 32768, %s382_s15, [#allocation4], %s7420_s19, %s7420_s19, %s7421_s16  }
  0x1b   : > { %7388 = dma.done.wait (%p7246_p11), [#allocation4], 32768  }
  0x1c   : > { %7390 = vsyncadd (%p7246_p11), [#allocation4], 4294934528  ;;  %p474_p0 = scmp.lt.s32.totalorder %s7409_s28, 1  ;;  %vm751_vm0 = vcmask 1045504   ;;  %s9331_s0 = sld [smem:[#allocation11_spill]]  ;;  %vm558_vm1 = vcmask 48128  }
  0x1d   : > { %v553_v0 = vld [vmem:[%s9309_s1] sm:$0x3f]  ;;  %v6847_v14 = vld [vmem:[%s9311_s3 + $0x18] sm:$0xff]  ;;  %v6846_v15 = vld [vmem:[%s9311_s3 + $0x10] sm:$0xff]  ;;  %vm1160_vm2 = vcmask 523264   ;;  %vm2496_vm3 = vcmask 1040384  }
  0x1e   : > { %s475_s14 = scalar_select %p474_p0, %s7409_s28, 1  ;;  %5192 = vmatpush.msk.msra.mxu0 %vm751_vm0, %v553_v0  ;;  %1261 = vmatpush.bf16.msra.mxu1 %v6847_v14  ;;  %v6845_v17 = vld [vmem:[%s9311_s3 + $0x8] sm:$0xff]  ;;  %v6844_v18 = vld [vmem:[%s9311_s3] sm:$0xff]  ;;  %vm2498_vm4 = vcmask 1042434   ;;  %vm2500_vm5 = vcmask 1041408   ;;  %vm2502_vm6 = vcmask 1044484  }
  0x1f   : > { %v7608_v23 = vld [vmem:[%s9310_s2] ss:$0 sm:$0xff]  ;;  %vm2504_vm7 = vcmask 1046534   ;;  %vm2506_vm8 = vcmask 1045508   ;;  %vm2508_vm9 = vcmask 1043456   ;;  %s471_s15 = sand.u32 1, %s7401_s26  }
  0x20   : > { %s6843_s17 = sshll.u32 %s475_s14, 9  ;;  %s5098_s14 = scalar_lea.hbm %s9321_s13, %s7409_s28  ;;  %vm5087_vm10 = vcmask 65536  }
  0x21   : > { %s472_s23 = scalar_lea.vmem [#allocation6], %s471_s15  ;;  %s5102_s16 = sshll.u32 %s5098_s14, 4  ;;  %s5103_s16 = int_to_ptr.hbm [resolvable:$true] %s5102_s16 }
  0x22   : > { %s7555_s7 = scalar_lea.vmem %s9331_s0, %s6843_s17  ;;  %1262 = vmatpush.bf16.msra.mxu1 %v6846_v15  ;;  %s5100_s25 = sshll.u32 %s472_s23, 4  ;;  %s5101_s25 = int_to_ptr.vmem [resolvable:$true] %s5100_s25 }
  0x23   : > { %v489_v1 = vld [vmem:[%s7555_s7] sm:$0xff]  ;;  %v490_v2 = vld [vmem:[%s7555_s7 + $0x8] sm:$0xff]  ;;  %v491_v3 = vld [vmem:[%s7555_s7 + $0x10] sm:$0xff]  ;;  %s5090_s24 = scalar_lea.sflag [#allocation5], %s471_s15  ;;  %s7349_s0 = sshra.s32 %s5103_s16, 4  ;;  %s7350_s0 = int_to_ptr.hbm [resolvable:$true] %s7349_s0 }
  0x24   : > { %5193 = vmatmul.msk.f32.vlgmr.msra.gmra.mxu0 %vm558_vm1, %v489_v1  ;;  %v492_v4 = vld [vmem:[%s7555_s7 + $0x18] sm:$0xff]  ;;  %v493_v5 = vld [vmem:[%s7555_s7 + $0x20] sm:$0xff]  ;;  %v494_v6 = vld [vmem:[%s7555_s7 + $0x28] sm:$0xff]  ;;  %s7351_s28 = scalar_lea.hbm %s7350_s0, 1  ;;  %s7355_s17 = scalar_lea.hbm %s9321_s13, 2 }
  0x25   : > { %v495_v7 = vld [vmem:[%s7555_s7 + $0x30] sm:$0xff]  ;;  %v496_v8 = vld [vmem:[%s7555_s7 + $0x38] sm:$0xff]  ;;  %v497_v9 = vld [vmem:[%s7555_s7 + $0x40] sm:$0xff]  ;;  %p7352_p1 = scmp.ne.s32.totalorder %s7350_s0, %s7351_s28  ;;  %p7356_p5 = scmp.lt.s32.totalorder %s7350_s0, %s9321_s13 }
  0x26   : > { %v498_v10 = vld [vmem:[%s7555_s7 + $0x48] sm:$0xff]  ;;  %v499_v11 = vld [vmem:[%s7555_s7 + $0x50] sm:$0xff]  ;;  %v500_v12 = vld [vmem:[%s7555_s7 + $0x58] sm:$0xff]  ;;  %1263 = vmatpush.bf16.msra.mxu1 %v6845_v17  ;;  %p7357_p6 = scmp.lt.s32.totalorder %s7355_s17, %s7351_s28 }
  0x27   : > { %v501_v13 = vld [vmem:[%s7555_s7 + $0x60] sm:$0xff]  ;;  %v502_v16 = vld [vmem:[%s7555_s7 + $0x68] sm:$0xff]  ;;  %v503_v19 = vld [vmem:[%s7555_s7 + $0x70] sm:$0xff]  ;;  %p7353_p2 = pnand %p7352_p1, %p7532_p4 }
  0x28   : > { %v504_v20 = vld [vmem:[%s7555_s7 + $0x78] sm:$0xff]  ;;  %v505_v22 = vld [vmem:[%s7555_s7 + $0x80] sm:$0xff]  ;;  %v506_v26 = vld [vmem:[%s7555_s7 + $0x88] sm:$0xff]  ;;  %p7358_p7 = por %p7357_p6, %p7356_p5 }
  0x29   : > { %v507_v34 = vld [vmem:[%s7555_s7 + $0x90] sm:$0xff]  ;;  %v508_v37 = vld [vmem:[%s7555_s7 + $0x98] sm:$0xff]  ;;  %v509_v45 = vld [vmem:[%s7555_s7 + $0xa0] sm:$0xff]  ;;  %p7354_p3 = pneg %p7353_p2 }
  0x2a   : > { %1264 = vmatpush.bf16.msra.mxu1 %v6844_v18  ;;  %v510_v48 = vld [vmem:[%s7555_s7 + $0xa8] sm:$0xff]  ;;  %v511_v56 = vld [vmem:[%s7555_s7 + $0xb0] sm:$0xff]  ;;  %v512_v59 = vld [vmem:[%s7555_s7 + $0xb8] sm:$0xff] }
  0x2b   : > { %v515_v14 = vld [vmem:[%s7555_s7 + $0xd0] sm:$0xff]  ;;  %v516_v17 = vld [vmem:[%s7555_s7 + $0xd8] sm:$0xff]  ;;  %p7359_p9 = pnand %p7358_p7, %p7354_p3 }
  0x2c   : > { %5194 = vmatmul.msk.f32.gmra.mxu0 %vm558_vm1, %v490_v2 }
  0x34   : > { %5195 = vmatmul.msk.f32.gmra.mxu0 %vm558_vm1, %v491_v3  ;;  %v513_v3 = vld [vmem:[%s7555_s7 + $0xc0] sm:$0xff] }
  0x3c   : > { %5196 = vmatmul.msk.f32.gmra.mxu0 %vm558_vm1, %v492_v4 }
  0x44   : > { %5197 = vmatmul.msk.f32.gmra.mxu0 %vm558_vm1, %v493_v5 }
  0x4c   : > { %5198 = vmatmul.msk.f32.gmra.mxu0 %vm558_vm1, %v494_v6  ;;  %v514_v6 = vld [vmem:[%s7555_s7 + $0xc8] sm:$0xff] }
  0x54   : > { %5199 = vmatmul.msk.f32.gmra.mxu0 %vm558_vm1, %v495_v7 }
  0x5c   : > { %5200 = vmatmul.msk.f32.gmra.mxu0 %vm558_vm1, %v496_v8 }
  0x64   : > { %5201 = vmatmul.msk.f32.gmra.mxu0 %vm558_vm1, %v497_v9 }
  0x6c   : > { %5202 = vmatmul.msk.f32.gmra.mxu0 %vm558_vm1, %v498_v10 }
  0x74   : > { %5203 = vmatmul.msk.f32.gmra.mxu0 %vm558_vm1, %v499_v11 }
  0x7c   : > { %5204 = vmatmul.msk.f32.gmra.mxu0 %vm558_vm1, %v500_v12 }
  0x84   : > { %5205 = vmatmul.msk.f32.gmra.mxu0 %vm558_vm1, %v501_v13 }
  0x8c   : > { %5206 = vmatmul.msk.f32.gmra.mxu0 %vm558_vm1, %v502_v16 }
  0x94   : > { %5207 = vmatmul.msk.f32.gmra.mxu0 %vm558_vm1, %v503_v19 }
  0x9c   : > { %5208 = vmatmul.msk.f32.gmra.mxu0 %vm558_vm1, %v504_v20 }
  0xa1   : > { %v772_v21 = vpop.f32.mrf.mxu0 }
  0xa2   : > { %v773_v24 = vadd.f32 %v7608_v23, %v772_v21 }
  0xa4   : > { %5209 = vmatmul.msk.f32.gmra.mxu0 %vm558_vm1, %v505_v22  ;;  %v964_v27 = vmul.f32 0.2, %v773_v24 }
  0xa6   : > { %v1028_v30 = vmax.f32 %v773_v24, %v964_v27 }
  0xa9   : > { %v775_v25 = vpop.f32.mrf.mxu0 }
  0xaa   : > { %v776_v28 = vadd.f32 %v7608_v23, %v775_v25 }
  0xac   : > { %v965_v29 = vmul.f32 0.2, %v776_v28  ;;  %5210 = vmatmul.msk.f32.gmra.mxu0 %vm558_vm1, %v506_v26  ;;  %v517_v26 = vld [vmem:[%s7555_s7 + $0xe0] sm:$0xff] }
  0xae   : > { %v1029_v31 = vmax.f32 %v776_v28, %v965_v29  ;;  %v518_v29 = vld [vmem:[%s7555_s7 + $0xe8] sm:$0xff] }
  0xb0   : > { %v1100_v32 = vpack.c.bf16 %v1029_v31, %v1028_v30 }
  0xb1   : > { %v778_v33 = vpop.f32.mrf.mxu0 }
  0xb2   : > { %5273 = vmatmul.msk.bf16.vlgmr.msra.gmra.mxu1 %vm1160_vm2, %v1100_v32  ;;  %v779_v35 = vadd.f32 %v7608_v23, %v778_v33 }
  0xb4   : > { %5211 = vmatmul.msk.f32.gmra.mxu0 %vm558_vm1, %v507_v34  ;;  %v966_v38 = vmul.f32 0.2, %v779_v35 }
  0xb6   : > { %v1030_v41 = vmax.f32 %v779_v35, %v966_v38 }
  0xb9   : > { %v781_v36 = vpop.f32.mrf.mxu0 }
  0xba   : > { %v782_v39 = vadd.f32 %v7608_v23, %v781_v36 }
  0xbc   : > { %v967_v40 = vmul.f32 0.2, %v782_v39  ;;  %5212 = vmatmul.msk.f32.gmra.mxu0 %vm558_vm1, %v508_v37  ;;  %v519_v37 = vld [vmem:[%s7555_s7 + $0xf0] sm:$0xff] }
  0xbe   : > { %v1031_v42 = vmax.f32 %v782_v39, %v967_v40  ;;  %v520_v40 = vld [vmem:[%s7555_s7 + $0xf8] sm:$0xff] }
  0xc0   : > { %v1101_v43 = vpack.c.bf16 %v1031_v42, %v1030_v41 }
  0xc1   : > { %v784_v44 = vpop.f32.mrf.mxu0 }
  0xc2   : > { %5274 = vmatmul.msk.bf16.gmra.mxu1 %vm1160_vm2, %v1101_v43  ;;  %v785_v46 = vadd.f32 %v7608_v23, %v784_v44 }
  0xc4   : > { %5213 = vmatmul.msk.f32.gmra.mxu0 %vm558_vm1, %v509_v45  ;;  %v968_v49 = vmul.f32 0.2, %v785_v46 }
  0xc6   : > { %v1032_v52 = vmax.f32 %v785_v46, %v968_v49 }
  0xc9   : > { %v787_v47 = vpop.f32.mrf.mxu0 }
  0xca   : > { %v788_v50 = vadd.f32 %v7608_v23, %v787_v47 }
  0xcc   : > { %v969_v51 = vmul.f32 0.2, %v788_v50  ;;  %5214 = vmatmul.msk.f32.gmra.mxu0 %vm558_vm1, %v510_v48  ;;  %v521_v48 = vld [vmem:[%s7555_s7 + $0x100] sm:$0xff] }
  0xce   : > { %v1033_v53 = vmax.f32 %v788_v50, %v969_v51  ;;  %v522_v51 = vld [vmem:[%s7555_s7 + $0x108] sm:$0xff] }
  0xd0   : > { %v1102_v54 = vpack.c.bf16 %v1033_v53, %v1032_v52 }
  0xd1   : > { %v790_v55 = vpop.f32.mrf.mxu0 }
  0xd2   : > { %5275 = vmatmul.msk.bf16.gmra.mxu1 %vm1160_vm2, %v1102_v54  ;;  %v791_v57 = vadd.f32 %v7608_v23, %v790_v55 }
  0xd4   : > { %5215 = vmatmul.msk.f32.gmra.mxu0 %vm558_vm1, %v511_v56  ;;  %v970_v60 = vmul.f32 0.2, %v791_v57 }
  0xd6   : > { %v1034_v63 = vmax.f32 %v791_v57, %v970_v60  ;;  %v523_v60 = vld [vmem:[%s7555_s7 + $0x110] sm:$0xff] }
  0xd9   : > { %v793_v58 = vpop.f32.mrf.mxu0 }
  0xda   : > { %v794_v61 = vadd.f32 %v7608_v23, %v793_v58 }
  0xdc   : > { %v971_v62 = vmul.f32 0.2, %v794_v61  ;;  %5216 = vmatmul.msk.f32.gmra.mxu0 %vm558_vm1, %v512_v59 }
  0xde   : > { %v1035_v0 = vmax.f32 %v794_v61, %v971_v62 }
  0xe0   : > { %v1103_v1 = vpack.c.bf16 %v1035_v0, %v1034_v63  ;;  %v524_v0 = vld [vmem:[%s7555_s7 + $0x118] sm:$0xff] }
  0xe1   : > { %v796_v2 = vpop.f32.mrf.mxu0 }
  0xe2   : > { %5276 = vmatmul.msk.bf16.gmra.mxu1 %vm1160_vm2, %v1103_v1  ;;  %v797_v4 = vadd.f32 %v7608_v23, %v796_v2 }
  0xe4   : > { %5217 = vmatmul.msk.f32.gmra.mxu0 %vm558_vm1, %v513_v3  ;;  %v972_v7 = vmul.f32 0.2, %v797_v4 }
  0xe6   : > { %v1036_v10 = vmax.f32 %v797_v4, %v972_v7 }
  0xe9   : > { %v799_v5 = vpop.f32.mrf.mxu0 }
  0xea   : > { %v800_v8 = vadd.f32 %v7608_v23, %v799_v5 }
  0xec   : > { %v973_v9 = vmul.f32 0.2, %v800_v8  ;;  %5218 = vmatmul.msk.f32.gmra.mxu0 %vm558_vm1, %v514_v6 }
  0xee   : > { %v1037_v11 = vmax.f32 %v800_v8, %v973_v9  ;;  %v525_v9 = vld [vmem:[%s7555_s7 + $0x120] sm:$0xff] }
  0xf0   : > { %v1104_v12 = vpack.c.bf16 %v1037_v11, %v1036_v10 }
  0xf1   : > { %v802_v13 = vpop.f32.mrf.mxu0 }
  0xf2   : > { %5277 = vmatmul.msk.bf16.gmra.mxu1 %vm1160_vm2, %v1104_v12  ;;  %v803_v15 = vadd.f32 %v7608_v23, %v802_v13  ;;  %v526_v13 = vld [vmem:[%s7555_s7 + $0x128] sm:$0xff] }
  0xf4   : > { %5219 = vmatmul.msk.f32.gmra.mxu0 %vm558_vm1, %v515_v14  ;;  %v974_v18 = vmul.f32 0.2, %v803_v15 }
  0xf6   : > { %v1038_v21 = vmax.f32 %v803_v15, %v974_v18 }
  0xf9   : > { %v805_v16 = vpop.f32.mrf.mxu0 }
  0xfa   : > { %v806_v19 = vadd.f32 %v7608_v23, %v805_v16 }
  0xfc   : > { %v975_v20 = vmul.f32 0.2, %v806_v19  ;;  %5220 = vmatmul.msk.f32.gmra.mxu0 %vm558_vm1, %v516_v17 }
  0xfe   : > { %v1039_v22 = vmax.f32 %v806_v19, %v975_v20 }
 0x100   : > { %v1105_v24 = vpack.c.bf16 %v1039_v22, %v1038_v21  ;;  %v527_v22 = vld [vmem:[%s7555_s7 + $0x130] sm:$0xff] }
 0x101   : > { %v808_v25 = vpop.f32.mrf.mxu0 }
 0x102   : > { %5278 = vmatmul.msk.bf16.gmra.mxu1 %vm1160_vm2, %v1105_v24  ;;  %v809_v27 = vadd.f32 %v7608_v23, %v808_v25 }
 0x104   : > { %5221 = vmatmul.msk.f32.gmra.mxu0 %vm558_vm1, %v517_v26  ;;  %v976_v30 = vmul.f32 0.2, %v809_v27 }
 0x106   : > { %v1040_v33 = vmax.f32 %v809_v27, %v976_v30  ;;  %v528_v27 = vld [vmem:[%s7555_s7 + $0x138] sm:$0xff] }
 0x109   : > { %v811_v28 = vpop.f32.mrf.mxu0 }
 0x10a   : > { %v812_v31 = vadd.f32 %v7608_v23, %v811_v28 }
 0x10c   : > { %v977_v32 = vmul.f32 0.2, %v812_v31  ;;  %5222 = vmatmul.msk.f32.gmra.mxu0 %vm558_vm1, %v518_v29 }
 0x10e   : > { %v1041_v34 = vmax.f32 %v812_v31, %v977_v32 }
 0x110   : > { %v1106_v35 = vpack.c.bf16 %v1041_v34, %v1040_v33 }
 0x111   : > { %v814_v36 = vpop.f32.mrf.mxu0 }
 0x112   : > { %5279 = vmatmul.msk.bf16.gmra.mxu1 %vm1160_vm2, %v1106_v35  ;;  %v815_v38 = vadd.f32 %v7608_v23, %v814_v36  ;;  %v529_v36 = vld [vmem:[%s7555_s7 + $0x140] sm:$0xff] }
 0x114   : > { %5223 = vmatmul.msk.f32.gmra.mxu0 %vm558_vm1, %v519_v37  ;;  %v978_v41 = vmul.f32 0.2, %v815_v38 }
 0x116   : > { %v1042_v44 = vmax.f32 %v815_v38, %v978_v41  ;;  %v530_v41 = vld [vmem:[%s7555_s7 + $0x148] sm:$0xff] }
 0x119   : > { %v817_v39 = vpop.f32.mrf.mxu0 }
 0x11a   : > { %v818_v42 = vadd.f32 %v7608_v23, %v817_v39  ;;  %v7713_v39 = vld [vmem:[%s9312_s4] ss:$0 sm:$0xff] }
 0x11c   : > { %v979_v43 = vmul.f32 0.2, %v818_v42  ;;  %5224 = vmatmul.msk.f32.gmra.mxu0 %vm558_vm1, %v520_v40 }
 0x11e   : > { %v1043_v45 = vmax.f32 %v818_v42, %v979_v43 }
 0x120   : > { %v1107_v46 = vpack.c.bf16 %v1043_v45, %v1042_v44 }
 0x121   : > { %v820_v47 = vpop.f32.mrf.mxu0 }
 0x122   : > { %5280 = vmatmul.msk.bf16.gmra.mxu1 %vm1160_vm2, %v1107_v46  ;;  %v821_v49 = vadd.f32 %v7608_v23, %v820_v47 }
 0x124   : > { %5225 = vmatmul.msk.f32.gmra.mxu0 %vm558_vm1, %v521_v48  ;;  %v980_v52 = vmul.f32 0.2, %v821_v49 }
 0x126   : > { %v1044_v55 = vmax.f32 %v821_v49, %v980_v52 }
 0x129   : > { %v823_v50 = vpop.f32.mrf.mxu0 }
 0x12a   : > { %v824_v53 = vadd.f32 %v7608_v23, %v823_v50 }
 0x12c   : > { %v981_v54 = vmul.f32 0.2, %v824_v53  ;;  %5226 = vmatmul.msk.f32.gmra.mxu0 %vm558_vm1, %v522_v51 }
 0x12e   : > { %v1045_v56 = vmax.f32 %v824_v53, %v981_v54  ;;  %v531_v53 = vld [vmem:[%s7555_s7 + $0x150] sm:$0xff] }
 0x12f   : > { %v1266_v57 = vpop.f32.mrf.mxu1 }
 0x130   : > { %v1108_v58 = vpack.c.bf16 %v1045_v56, %v1044_v55  ;;  %v1267_v44 = vadd.f32 %v7713_v39, %v1266_v57 }
 0x131   : > { %v826_v59 = vpop.f32.mrf.mxu0 }
 0x132   : > { %5281 = vmatmul.msk.bf16.gmra.mxu1 %vm1160_vm2, %v1108_v58  ;;  %v827_v61 = vadd.f32 %v7608_v23, %v826_v59  ;;  %v1426_v49 = vmul.f32 0.2, %v1267_v44 }
 0x134   : > { %5227 = vmatmul.msk.f32.gmra.mxu0 %vm558_vm1, %v523_v60  ;;  %v982_v1 = vmul.f32 0.2, %v827_v61  ;;  %v1490_v55 = vmax.f32 %v1267_v44, %v1426_v49  ;;  %v535_v49 = vld [vmem:[%s7555_s7 + $0x170] sm:$0xff] }
 0x136   : > { %v1046_v4 = vmax.f32 %v827_v61, %v982_v1  ;;  %v532_v1 = vld [vmem:[%s7555_s7 + $0x158] sm:$0xff] }
 0x137   : > { %v7675_v62 = vpop.f32.mrf.mxu1 }
 0x138   : > { %v1269_v56 = vadd.f32 %v7713_v39, %v7675_v62 }
 0x139   : > { %v829_v63 = vpop.f32.mrf.mxu0 }
 0x13a   : > { %v830_v2 = vadd.f32 %v7608_v23, %v829_v63  ;;  %v1427_v61 = vmul.f32 0.2, %v1269_v56 }
 0x13c   : > { %v983_v3 = vmul.f32 0.2, %v830_v2  ;;  %5228 = vmatmul.msk.f32.gmra.mxu0 %vm558_vm1, %v524_v0 }
 0x13e   : > { %v1047_v5 = vmax.f32 %v830_v2, %v983_v3 }
 0x13f   : > { %v7680_v6 = vpop.f32.mrf.mxu1 }
 0x140   : > { %v1109_v7 = vpack.c.bf16 %v1047_v5, %v1046_v4  ;;  %v1491_v5 = vmax.f32 %v1269_v56, %v1427_v61  ;;  %v1272_v62 = vadd.f32 %v7713_v39, %v7680_v6 }
 0x141   : > { %v832_v8 = vpop.f32.mrf.mxu0 }
 0x142   : > { %5282 = vmatmul.msk.bf16.gmra.mxu1 %vm1160_vm2, %v1109_v7  ;;  %v833_v10 = vadd.f32 %v7608_v23, %v832_v8 }
 0x144   : > { %5229 = vmatmul.msk.f32.gmra.mxu0 %vm558_vm1, %v525_v9  ;;  %v984_v14 = vmul.f32 0.2, %v833_v10 }
 0x146   : > { %v1048_v17 = vmax.f32 %v833_v10, %v984_v14  ;;  %v1428_v14 = vmul.f32 0.2, %v1272_v62 }
 0x147   : > { %v7686_v11 = vpop.f32.mrf.mxu1 }
 0x148   : > { %v1492_v6 = vmax.f32 %v1272_v62, %v1428_v14  ;;  %v537_v14 = vld [vmem:[%s7555_s7 + $0x180] sm:$0xff] }
 0x149   : > { %v835_v12 = vpop.f32.mrf.mxu0 }
 0x14a   : > { %v836_v15 = vadd.f32 %v7608_v23, %v835_v12 }
 0x14c   : > { %v985_v16 = vmul.f32 0.2, %v836_v15  ;;  %5230 = vmatmul.msk.f32.gmra.mxu0 %vm558_vm1, %v526_v13 }
 0x14e   : > { %v1049_v18 = vmax.f32 %v836_v15, %v985_v16 }
 0x14f   : > { %v7691_v19 = vpop.f32.mrf.mxu1 }
 0x150   : > { %v1110_v20 = vpack.c.bf16 %v1049_v18, %v1048_v17  ;;  %v533_v18 = vld [vmem:[%s7555_s7 + $0x160] sm:$0xff] }
 0x151   : > { %v838_v21 = vpop.f32.mrf.mxu0 }
 0x152   : > { %5283 = vmatmul.msk.bf16.gmra.mxu1 %vm1160_vm2, %v1110_v20  ;;  %v839_v24 = vadd.f32 %v7608_v23, %v838_v21  ;;  %v1274_v21 = vadd.f32 %v7713_v39, %v7686_v11  ;;  %v1277_v11 = vadd.f32 %v7713_v39, %v7691_v19 }
 0x154   : > { %5231 = vmatmul.msk.f32.gmra.mxu0 %vm558_vm1, %v527_v22  ;;  %v986_v28 = vmul.f32 0.2, %v839_v24 }
 0x156   : > { %v1050_v31 = vmax.f32 %v839_v24, %v986_v28  ;;  %v1429_v28 = vmul.f32 0.2, %v1274_v21 }
 0x157   : > { %v7697_v25 = vpop.f32.mrf.mxu1 }
 0x159   : > { %v841_v26 = vpop.f32.mrf.mxu0 }
 0x15a   : > { %v842_v29 = vadd.f32 %v7608_v23, %v841_v26 }
 0x15c   : > { %v987_v30 = vmul.f32 0.2, %v842_v29  ;;  %5232 = vmatmul.msk.f32.gmra.mxu0 %vm558_vm1, %v528_v27 }
 0x15e   : > { %v1051_v32 = vmax.f32 %v842_v29, %v987_v30 }
 0x15f   : > { %v7702_v33 = vpop.f32.mrf.mxu1 }
 0x160   : > { %v1111_v34 = vpack.c.bf16 %v1051_v32, %v1050_v31  ;;  %v534_v31 = vld [vmem:[%s7555_s7 + $0x168] sm:$0xff] }
 0x161   : > { %v844_v35 = vpop.f32.mrf.mxu0 }
 0x162   : > { %5284 = vmatmul.msk.bf16.gmra.mxu1 %vm1160_vm2, %v1111_v34  ;;  %v845_v37 = vadd.f32 %v7608_v23, %v844_v35 }
 0x164   : > { %5233 = vmatmul.msk.f32.gmra.mxu0 %vm558_vm1, %v529_v36  ;;  %v988_v42 = vmul.f32 0.2, %v845_v37  ;;  %v1493_v36 = vmax.f32 %v1274_v21, %v1429_v28 }
 0x166   : > { %v1052_v46 = vmax.f32 %v845_v37, %v988_v42 }
 0x167   : > { %v7708_v38 = vpop.f32.mrf.mxu1 }
 0x169   : > { %v847_v40 = vpop.f32.mrf.mxu0 }
 0x16a   : > { %v848_v43 = vadd.f32 %v7608_v23, %v847_v40 }
 0x16c   : > { %v989_v45 = vmul.f32 0.2, %v848_v43  ;;  %5234 = vmatmul.msk.f32.gmra.mxu0 %vm558_vm1, %v530_v41 }
 0x16e   : > { %v1053_v47 = vmax.f32 %v848_v43, %v989_v45  ;;  %v1430_v45 = vmul.f32 0.2, %v1277_v11 }
 0x16f   : > { %v1286_v48 = vpop.f32.mrf.mxu1 }
 0x170   : > { %v1112_v50 = vpack.c.bf16 %v1053_v47, %v1052_v46  ;;  %v1287_v51 = vadd.f32 %v7713_v39, %v1286_v48  ;;  %v1494_v19 = vmax.f32 %v1277_v11, %v1430_v45 }
 0x171   : > { %v850_v52 = vpop.f32.mrf.mxu0 }
 0x172   : > { %v1434_v54 = vmul.f32 0.2, %v1287_v51  ;;  %5285 = vmatmul.msk.bf16.gmra.mxu1 %vm1160_vm2, %v1112_v50  ;;  %v851_v59 = vadd.f32 %v7608_v23, %v850_v52 }
 0x174   : > { %v1498_v57 = vmax.f32 %v1287_v51, %v1434_v54  ;;  %5235 = vmatmul.msk.f32.gmra.mxu0 %vm558_vm1, %v531_v53  ;;  %v990_v2 = vmul.f32 0.2, %v851_v59  ;;  %v1279_v51 = vadd.f32 %v7713_v39, %v7697_v25  ;;  %v1282_v25 = vadd.f32 %v7713_v39, %v7702_v33 }
 0x176   : > { %v7725_v58 = vmax.f32 %v1490_v55, %v1498_v57  ;;  %v1054_v9 = vmax.f32 %v851_v59, %v990_v2  ;;  %v1431_v56 = vmul.f32 0.2, %v1279_v51 }
 0x177   : > { %v1288_v60 = vpop.f32.mrf.mxu1 }
 0x178   : > { %v1289_v63 = vadd.f32 %v7713_v39, %v1288_v60  ;;  %v536_v60 = vld [vmem:[%s7555_s7 + $0x178] sm:$0xff] }
 0x179   : > { %v853_v0 = vpop.f32.mrf.mxu0 }
 0x17a   : > { %v1435_v3 = vmul.f32 0.2, %v1289_v63  ;;  %v854_v4 = vadd.f32 %v7608_v23, %v853_v0 }
 0x17c   : > { %v1499_v7 = vmax.f32 %v1289_v63, %v1435_v3  ;;  %v991_v8 = vmul.f32 0.2, %v854_v4  ;;  %5236 = vmatmul.msk.f32.gmra.mxu0 %vm558_vm1, %v532_v1  ;;  %v1495_v1 = vmax.f32 %v1279_v51, %v1431_v56 }
 0x17e   : > { %v7734_v10 = vmax.f32 %v1491_v5, %v1499_v7  ;;  %v1055_v12 = vmax.f32 %v854_v4, %v991_v8  ;;  %v1432_v8 = vmul.f32 0.2, %v1282_v25 }
 0x17f   : > { %v1291_v13 = vpop.f32.mrf.mxu1 }
 0x180   : > { %v1113_v15 = vpack.c.bf16 %v1055_v12, %v1054_v9  ;;  %v1292_v16 = vadd.f32 %v7713_v39, %v1291_v13  ;;  %v1496_v33 = vmax.f32 %v1282_v25, %v1432_v8  ;;  %v542_v8 = vld [vmem:[%s7555_s7 + $0x1a8] sm:$0xff] }
 0x181   : > { %v856_v17 = vpop.f32.mrf.mxu0 }
 0x182   : > { %v1436_v20 = vmul.f32 0.2, %v1292_v16  ;;  %5286 = vmatmul.msk.bf16.gmra.mxu1 %vm1160_vm2, %v1113_v15  ;;  %v857_v26 = vadd.f32 %v7608_v23, %v856_v17 }
 0x184   : > { %v1500_v22 = vmax.f32 %v1292_v16, %v1436_v20  ;;  %5237 = vmatmul.msk.f32.gmra.mxu0 %vm558_vm1, %v533_v18  ;;  %v992_v32 = vmul.f32 0.2, %v857_v26  ;;  %v1284_v16 = vadd.f32 %v7713_v39, %v7708_v38 }
 0x186   : > { %v7742_v24 = vmax.f32 %v1492_v6, %v1500_v22  ;;  %v1056_v41 = vmax.f32 %v857_v26, %v992_v32  ;;  %v1433_v21 = vmul.f32 0.2, %v1284_v16 }
 0x187   : > { %v1293_v27 = vpop.f32.mrf.mxu1 }
 0x188   : > { %v1294_v29 = vadd.f32 %v7713_v39, %v1293_v27  ;;  %v538_v27 = vld [vmem:[%s7555_s7 + $0x188] sm:$0xff] }
 0x189   : > { %v859_v30 = vpop.f32.mrf.mxu0 }
 0x18a   : > { %v1437_v34 = vmul.f32 0.2, %v1294_v29  ;;  %v860_v35 = vadd.f32 %v7608_v23, %v859_v30 }
 0x18c   : > { %v1501_v37 = vmax.f32 %v1294_v29, %v1437_v34  ;;  %v993_v40 = vmul.f32 0.2, %v860_v35  ;;  %5238 = vmatmul.msk.f32.gmra.mxu0 %vm558_vm1, %v534_v31  ;;  %v1497_v31 = vmax.f32 %v1284_v16, %v1433_v21 }
 0x18e   : > { %v7751_v42 = vmax.f32 %v1493_v36, %v1501_v37  ;;  %v1057_v43 = vmax.f32 %v860_v35, %v993_v40 }
 0x18f   : > { %v1296_v44 = vpop.f32.mrf.mxu1 }
 0x190   : > { %v1114_v46 = vpack.c.bf16 %v1057_v43, %v1056_v41  ;;  %v1297_v47 = vadd.f32 %v7713_v39, %v1296_v44  ;;  %v539_v43 = vld [vmem:[%s7555_s7 + $0x190] sm:$0xff] }
 0x191   : > { %v862_v48 = vpop.f32.mrf.mxu0 }
 0x192   : > { %v1438_v50 = vmul.f32 0.2, %v1297_v47  ;;  %5287 = vmatmul.msk.bf16.gmra.mxu1 %vm1160_vm2, %v1114_v46  ;;  %v863_v54 = vadd.f32 %v7608_v23, %v862_v48 }
 0x194   : > { %v1502_v52 = vmax.f32 %v1297_v47, %v1438_v50  ;;  %5239 = vmatmul.msk.f32.gmra.mxu0 %vm558_vm1, %v535_v49  ;;  %v994_v61 = vmul.f32 0.2, %v863_v54 }
 0x196   : > { %v7759_v53 = vmax.f32 %v1494_v19, %v1502_v52  ;;  %v1058_v4 = vmax.f32 %v863_v54, %v994_v61  ;;  %v540_v19 = vld [vmem:[%s7555_s7 + $0x198] sm:$0xff] }
 0x197   : > { %v1298_v55 = vpop.f32.mrf.mxu1 }
 0x198   : > { %v1299_v57 = vadd.f32 %v7713_v39, %v1298_v55 }
 0x199   : > { %v865_v59 = vpop.f32.mrf.mxu0 }
 0x19a   : > { %v1439_v63 = vmul.f32 0.2, %v1299_v57  ;;  %v866_v0 = vadd.f32 %v7608_v23, %v865_v59 }
 0x19c   : > { %v1503_v2 = vmax.f32 %v1299_v57, %v1439_v63  ;;  %v995_v3 = vmul.f32 0.2, %v866_v0  ;;  %5240 = vmatmul.msk.f32.gmra.mxu0 %vm558_vm1, %v536_v60 }
 0x19e   : > { %v7768_v5 = vmax.f32 %v1495_v1, %v1503_v2  ;;  %v1059_v62 = vmax.f32 %v866_v0, %v995_v3  ;;  %v541_v1 = vld [vmem:[%s7555_s7 + $0x1a0] sm:$0xff] }
 0x19f   : > { %v1301_v7 = vpop.f32.mrf.mxu1 }
 0x1a0   : > { %v1115_v9 = vpack.c.bf16 %v1059_v62, %v1058_v4  ;;  %v1302_v12 = vadd.f32 %v7713_v39, %v1301_v7 }
 0x1a1   : > { %v868_v13 = vpop.f32.mrf.mxu0 }
 0x1a2   : > { %v1440_v15 = vmul.f32 0.2, %v1302_v12  ;;  %5288 = vmatmul.msk.bf16.gmra.mxu1 %vm1160_vm2, %v1115_v9  ;;  %v869_v20 = vadd.f32 %v7608_v23, %v868_v13 }
 0x1a4   : > { %v1504_v17 = vmax.f32 %v1302_v12, %v1440_v15  ;;  %5241 = vmatmul.msk.f32.gmra.mxu0 %vm558_vm1, %v537_v14  ;;  %v996_v28 = vmul.f32 0.2, %v869_v20 }
 0x1a6   : > { %v7776_v18 = vmax.f32 %v1496_v33, %v1504_v17  ;;  %v1060_v34 = vmax.f32 %v869_v20, %v996_v28 }
 0x1a7   : > { %v1303_v6 = vpop.f32.mrf.mxu1 }
 0x1a8   : > { %v1304_v22 = vadd.f32 %v7713_v39, %v1303_v6 }
 0x1a9   : > { %v871_v26 = vpop.f32.mrf.mxu0 }
 0x1aa   : > { %v1441_v29 = vmul.f32 0.2, %v1304_v22  ;;  %v872_v30 = vadd.f32 %v7608_v23, %v871_v26 }
 0x1ac   : > { %v1505_v38 = vmax.f32 %v1304_v22, %v1441_v29  ;;  %v997_v32 = vmul.f32 0.2, %v872_v30  ;;  %5242 = vmatmul.msk.f32.gmra.mxu0 %vm558_vm1, %v538_v27  ;;  %v543_v22 = vld [vmem:[%s7555_s7 + $0x1b0] sm:$0xff] }
 0x1ae   : > { %v7783_v35 = vmax.f32 %v1497_v31, %v1505_v38  ;;  %v1061_v36 = vmax.f32 %v872_v30, %v997_v32  ;;  %v544_v38 = vld [vmem:[%s7555_s7 + $0x1b8] sm:$0xff] }
 0x1af   : > { %v1306_v11 = vpop.f32.mrf.mxu1 }
 0x1b0   : > { %v1116_v37 = vpack.c.bf16 %v1061_v36, %v1060_v34  ;;  %v1307_v40 = vadd.f32 %v7713_v39, %v1306_v11 }
 0x1b1   : > { %v874_v41 = vpop.f32.mrf.mxu0 }
 0x1b2   : > { %v1442_v44 = vmul.f32 0.2, %v1307_v40  ;;  %5289 = vmatmul.msk.bf16.gmra.mxu1 %vm1160_vm2, %v1116_v37  ;;  %v875_v47 = vadd.f32 %v7608_v23, %v874_v41 }
 0x1b4   : > { %v1506_v45 = vmax.f32 %v1307_v40, %v1442_v44  ;;  %5243 = vmatmul.msk.f32.gmra.mxu0 %vm558_vm1, %v539_v43  ;;  %v998_v51 = vmul.f32 0.2, %v875_v47 }
 0x1b6   : > { %v7790_v46 = vmax.f32 %v7725_v58, %v1506_v45  ;;  %v1062_v57 = vmax.f32 %v875_v47, %v998_v51 }
 0x1b7   : > { %v1308_v48 = vpop.f32.mrf.mxu1 }
 0x1b8   : > { %v1309_v49 = vadd.f32 %v7713_v39, %v1308_v48  ;;  %v545_v48 = vld [vmem:[%s7555_s7 + $0x1c0] sm:$0xff] }
 0x1b9   : > { %v877_v50 = vpop.f32.mrf.mxu0 }
 0x1ba   : > { %v1443_v52 = vmul.f32 0.2, %v1309_v49  ;;  %v878_v54 = vadd.f32 %v7608_v23, %v877_v50 }
 0x1bc   : > { %v1507_v55 = vmax.f32 %v1309_v49, %v1443_v52  ;;  %v999_v56 = vmul.f32 0.2, %v878_v54  ;;  %5244 = vmatmul.msk.f32.gmra.mxu0 %vm558_vm1, %v540_v19 }
 0x1be   : > { %v7798_v58 = vmax.f32 %v7734_v10, %v1507_v55  ;;  %v1063_v59 = vmax.f32 %v878_v54, %v999_v56  ;;  %v546_v55 = vld [vmem:[%s7555_s7 + $0x1c8] sm:$0xff] }
 0x1bf   : > { %v1311_v60 = vpop.f32.mrf.mxu1 }
 0x1c0   : > { %v1117_v61 = vpack.c.bf16 %v1063_v59, %v1062_v57  ;;  %v1312_v63 = vadd.f32 %v7713_v39, %v1311_v60 }
 0x1c1   : > { %v880_v0 = vpop.f32.mrf.mxu0 }
 0x1c2   : > { %v1444_v25 = vmul.f32 0.2, %v1312_v63  ;;  %5290 = vmatmul.msk.bf16.gmra.mxu1 %vm1160_vm2, %v1117_v61  ;;  %v881_v10 = vadd.f32 %v7608_v23, %v880_v0 }
 0x1c4   : > { %v1508_v2 = vmax.f32 %v1312_v63, %v1444_v25  ;;  %5245 = vmatmul.msk.f32.gmra.mxu0 %vm558_vm1, %v541_v1  ;;  %v1000_v9 = vmul.f32 0.2, %v881_v10 }
 0x1c6   : > { %v7805_v3 = vmax.f32 %v7742_v24, %v1508_v2  ;;  %v1064_v33 = vmax.f32 %v881_v10, %v1000_v9 }
 0x1c7   : > { %v1313_v4 = vpop.f32.mrf.mxu1 }
 0x1c8   : > { %v1314_v62 = vadd.f32 %v7713_v39, %v1313_v4  ;;  %v547_v4 = vld [vmem:[%s7555_s7 + $0x1d0] sm:$0xff] }
 0x1c9   : > { %v883_v7 = vpop.f32.mrf.mxu0 }
 0x1ca   : > { %v1445_v12 = vmul.f32 0.2, %v1314_v62  ;;  %v884_v13 = vadd.f32 %v7608_v23, %v883_v7 }
 0x1cc   : > { %v1509_v14 = vmax.f32 %v1314_v62, %v1445_v12  ;;  %v1001_v15 = vmul.f32 0.2, %v884_v13  ;;  %5246 = vmatmul.msk.f32.gmra.mxu0 %vm558_vm1, %v542_v8 }
 0x1ce   : > { %v7813_v24 = vmax.f32 %v7751_v42, %v1509_v14  ;;  %v1065_v16 = vmax.f32 %v884_v13, %v1001_v15  ;;  %v548_v14 = vld [vmem:[%s7555_s7 + $0x1d8] sm:$0xff] }
 0x1cf   : > { %v1316_v17 = vpop.f32.mrf.mxu1 }
 0x1d0   : > { %v1118_v20 = vpack.c.bf16 %v1065_v16, %v1064_v33  ;;  %v1317_v6 = vadd.f32 %v7713_v39, %v1316_v17 }
 0x1d1   : > { %v886_v21 = vpop.f32.mrf.mxu0 }
 0x1d2   : > { %v1446_v26 = vmul.f32 0.2, %v1317_v6  ;;  %5291 = vmatmul.msk.bf16.gmra.mxu1 %vm1160_vm2, %v1118_v20  ;;  %v887_v42 = vadd.f32 %v7608_v23, %v886_v21 }
 0x1d4   : > { %v1510_v27 = vmax.f32 %v1317_v6, %v1446_v26  ;;  %5247 = vmatmul.msk.f32.gmra.mxu0 %vm558_vm1, %v543_v22  ;;  %v1002_v32 = vmul.f32 0.2, %v887_v42 }
 0x1d6   : > { %v7820_v28 = vmax.f32 %v7759_v53, %v1510_v27  ;;  %v1066_v40 = vmax.f32 %v887_v42, %v1002_v32 }
 0x1d7   : > { %v1318_v29 = vpop.f32.mrf.mxu1 }
 0x1d8   : > { %v1319_v30 = vadd.f32 %v7713_v39, %v1318_v29  ;;  %v549_v29 = vld [vmem:[%s7555_s7 + $0x1e0] sm:$0xff] }
 0x1d9   : > { %v889_v31 = vpop.f32.mrf.mxu0 }
 0x1da   : > { %v1447_v34 = vmul.f32 0.2, %v1319_v30  ;;  %v890_v36 = vadd.f32 %v7608_v23, %v889_v31 }
 0x1dc   : > { %v1511_v11 = vmax.f32 %v1319_v30, %v1447_v34  ;;  %v1003_v37 = vmul.f32 0.2, %v890_v36  ;;  %5248 = vmatmul.msk.f32.gmra.mxu0 %vm558_vm1, %v544_v38 }
 0x1de   : > { %v7828_v53 = vmax.f32 %v7768_v5, %v1511_v11  ;;  %v1067_v41 = vmax.f32 %v890_v36, %v1003_v37  ;;  %v550_v11 = vld [vmem:[%s7555_s7 + $0x1e8] sm:$0xff] }
 0x1df   : > { %v1321_v43 = vpop.f32.mrf.mxu1 }
 0x1e0   : > { %v1119_v44 = vpack.c.bf16 %v1067_v41, %v1066_v40  ;;  %v1322_v45 = vadd.f32 %v7713_v39, %v1321_v43 }
 0x1e1   : > { %v892_v47 = vpop.f32.mrf.mxu0 }
 0x1e2   : > { %v1448_v49 = vmul.f32 0.2, %v1322_v45  ;;  %5292 = vmatmul.msk.bf16.gmra.mxu1 %vm1160_vm2, %v1119_v44  ;;  %v893_v5 = vadd.f32 %v7608_v23, %v892_v47 }
 0x1e4   : > { %v1512_v50 = vmax.f32 %v1322_v45, %v1448_v49  ;;  %5249 = vmatmul.msk.f32.gmra.mxu0 %vm558_vm1, %v545_v48  ;;  %v1004_v56 = vmul.f32 0.2, %v893_v5 }
 0x1e6   : > { %v7835_v19 = vmax.f32 %v7776_v18, %v1512_v50  ;;  %v1068_v63 = vmax.f32 %v893_v5, %v1004_v56 }
 0x1e7   : > { %v1323_v51 = vpop.f32.mrf.mxu1 }
 0x1e8   : > { %v1324_v52 = vadd.f32 %v7713_v39, %v1323_v51  ;;  %v551_v51 = vld [vmem:[%s7555_s7 + $0x1f0] sm:$0xff] }
 0x1e9   : > { %v895_v54 = vpop.f32.mrf.mxu0 }
 0x1ea   : > { %v1449_v57 = vmul.f32 0.2, %v1324_v52  ;;  %v896_v59 = vadd.f32 %v7608_v23, %v895_v54 }
 0x1ec   : > { %v1513_v60 = vmax.f32 %v1324_v52, %v1449_v57  ;;  %v1005_v61 = vmul.f32 0.2, %v896_v59  ;;  %5250 = vmatmul.msk.f32.gmra.mxu0 %vm558_vm1, %v546_v55 }
 0x1ee   : > { %v7843_v18 = vmax.f32 %v7783_v35, %v1513_v60  ;;  %v1069_v0 = vmax.f32 %v896_v59, %v1005_v61  ;;  %v552_v60 = vld [vmem:[%s7555_s7 + $0x1f8] sm:$0xff] }
 0x1ef   : > { %v1326_v1 = vpop.f32.mrf.mxu1 }
 0x1f0   : > { %v1120_v25 = vpack.c.bf16 %v1069_v0, %v1068_v63  ;;  %v1327_v2 = vadd.f32 %v7713_v39, %v1326_v1 }
 0x1f1   : > { %v898_v10 = vpop.f32.mrf.mxu0 }
 0x1f2   : > { %v1450_v62 = vmul.f32 0.2, %v1327_v2  ;;  %5293 = vmatmul.msk.bf16.gmra.mxu1 %vm1160_vm2, %v1120_v25  ;;  %v899_v35 = vadd.f32 %v7608_v23, %v898_v10 }
 0x1f4   : > { %v1514_v7 = vmax.f32 %v1327_v2, %v1450_v62  ;;  %5251 = vmatmul.msk.f32.gmra.mxu0 %vm558_vm1, %v547_v4  ;;  %v1006_v15 = vmul.f32 0.2, %v899_v35 }
 0x1f6   : > { %v7850_v8 = vmax.f32 %v7790_v46, %v1514_v7  ;;  %v1070_v6 = vmax.f32 %v899_v35, %v1006_v15 }
 0x1f7   : > { %v1328_v9 = vpop.f32.mrf.mxu1 }
 0x1f8   : > { %v1329_v12 = vadd.f32 %v7713_v39, %v1328_v9 }
 0x1f9   : > { %v901_v13 = vpop.f32.mrf.mxu0 }
 0x1fa   : > { %v1451_v33 = vmul.f32 0.2, %v1329_v12  ;;  %v902_v16 = vadd.f32 %v7608_v23, %v901_v13 }
 0x1fc   : > { %v1515_v17 = vmax.f32 %v1329_v12, %v1451_v33  ;;  %v1007_v20 = vmul.f32 0.2, %v902_v16  ;;  %5252 = vmatmul.msk.f32.gmra.mxu0 %vm558_vm1, %v548_v14 }
 0x1fe   : > { %v7858_v46 = vmax.f32 %v7798_v58, %v1515_v17  ;;  %v1071_v21 = vmax.f32 %v902_v16, %v1007_v20 }
 0x1ff   : > { %v1331_v22 = vpop.f32.mrf.mxu1 }
 0x200   : > { %v1121_v26 = vpack.c.bf16 %v1071_v21, %v1070_v6  ;;  %v1332_v27 = vadd.f32 %v7713_v39, %v1331_v22 }
 0x201   : > { %v904_v42 = vpop.f32.mrf.mxu0 }
 0x202   : > { %v1452_v30 = vmul.f32 0.2, %v1332_v27  ;;  %5294 = vmatmul.msk.bf16.gmra.mxu1 %vm1160_vm2, %v1121_v26  ;;  %v905_v58 = vadd.f32 %v7608_v23, %v904_v42 }
 0x204   : > { %v1516_v31 = vmax.f32 %v1332_v27, %v1452_v30  ;;  %5253 = vmatmul.msk.f32.gmra.mxu0 %vm558_vm1, %v549_v29  ;;  %v1008_v37 = vmul.f32 0.2, %v905_v58 }
 0x206   : > { %v7865_v38 = vmax.f32 %v7805_v3, %v1516_v31  ;;  %v1072_v45 = vmax.f32 %v905_v58, %v1008_v37 }
 0x207   : > { %v1333_v32 = vpop.f32.mrf.mxu1 }
 0x208   : > { %v1334_v34 = vadd.f32 %v7713_v39, %v1333_v32 }
 0x209   : > { %v907_v36 = vpop.f32.mrf.mxu0 }
 0x20a   : > { %v1453_v40 = vmul.f32 0.2, %v1334_v34  ;;  %v908_v41 = vadd.f32 %v7608_v23, %v907_v36 }
 0x20c   : > { %v1517_v43 = vmax.f32 %v1334_v34, %v1453_v40  ;;  %v1009_v44 = vmul.f32 0.2, %v908_v41  ;;  %5254 = vmatmul.msk.f32.gmra.mxu0 %vm558_vm1, %v550_v11 }
 0x20e   : > { %v7873_v3 = vmax.f32 %v7813_v24, %v1517_v43  ;;  %v1073_v47 = vmax.f32 %v908_v41, %v1009_v44 }
 0x20f   : > { %v1336_v48 = vpop.f32.mrf.mxu1 }
 0x210   : > { %v1122_v49 = vpack.c.bf16 %v1073_v47, %v1072_v45  ;;  %v1337_v50 = vadd.f32 %v7713_v39, %v1336_v48 }
 0x211   : > { %v910_v5 = vpop.f32.mrf.mxu0 }
 0x212   : > { %v1454_v52 = vmul.f32 0.2, %v1337_v50  ;;  %5295 = vmatmul.msk.bf16.gmra.mxu1 %vm1160_vm2, %v1122_v49  ;;  %v911_v24 = vadd.f32 %v7608_v23, %v910_v5 }
 0x214   : > { %v1518_v54 = vmax.f32 %v1337_v50, %v1454_v52  ;;  %5255 = vmatmul.msk.f32.gmra.mxu0 %vm558_vm1, %v551_v51  ;;  %v1010_v61 = vmul.f32 0.2, %v911_v24 }
 0x216   : > { %v7880_v55 = vmax.f32 %v7820_v28, %v1518_v54  ;;  %v1074_v2 = vmax.f32 %v911_v24, %v1010_v61 }
 0x217   : > { %v1338_v56 = vpop.f32.mrf.mxu1 }
 0x218   : > { %v1339_v57 = vadd.f32 %v7713_v39, %v1338_v56 }
 0x219   : > { %v913_v59 = vpop.f32.mrf.mxu0 }
 0x21a   : > { %v1455_v63 = vmul.f32 0.2, %v1339_v57  ;;  %v914_v0 = vadd.f32 %v7608_v23, %v913_v59 }
 0x21c   : > { %v1519_v1 = vmax.f32 %v1339_v57, %v1455_v63  ;;  %v1011_v25 = vmul.f32 0.2, %v914_v0  ;;  %5256 = vmatmul.msk.f32.gmra.mxu0 %vm558_vm1, %v552_v60 }
 0x21e   : > { %v7888_v10 = vmax.f32 %v7828_v53, %v1519_v1  ;;  %v1075_v28 = vmax.f32 %v914_v0, %v1011_v25 }
 0x21f   : > { %v1341_v4 = vpop.f32.mrf.mxu1 }
 0x220   : > { %v1123_v62 = vpack.c.bf16 %v1075_v28, %v1074_v2  ;;  %v1342_v7 = vadd.f32 %v7713_v39, %v1341_v4 }
 0x221   : > { %v916_v35 = vpop.f32.mrf.mxu0 }
 0x222   : > { %v1456_v9 = vmul.f32 0.2, %v1342_v7  ;;  %5296 = vmatmul.msk.bf16.gmra.mxu1 %vm1160_vm2, %v1123_v62  ;;  %v917_v14 = vadd.f32 %v7608_v23, %v916_v35 }
 0x224   : > { %v1520_v12 = vmax.f32 %v1342_v7, %v1456_v9  ;;  %v1012_v16 = vmul.f32 0.2, %v917_v14 }
 0x226   : > { %v7893_v13 = vmax.f32 %v7835_v19, %v1520_v12  ;;  %v1076_v22 = vmax.f32 %v917_v14, %v1012_v16 }
 0x227   : > { %v1343_v15 = vpop.f32.mrf.mxu1 }
 0x228   : > { %v1344_v33 = vadd.f32 %v7713_v39, %v1343_v15 }
 0x229   : > { %v919_v53 = vpop.f32.mrf.mxu0 }
 0x22a   : > { %v1457_v17 = vmul.f32 0.2, %v1344_v33  ;;  %v920_v20 = vadd.f32 %v7608_v23, %v919_v53 }
 0x22c   : > { %v1521_v6 = vmax.f32 %v1344_v33, %v1457_v17  ;;  %v1013_v21 = vmul.f32 0.2, %v920_v20 }
 0x22e   : > { %v7899_v26 = vmax.f32 %v7843_v18, %v1521_v6  ;;  %v1077_v27 = vmax.f32 %v920_v20, %v1013_v21 }
 0x22f   : > { %v1346_v42 = vpop.f32.mrf.mxu1 }
 0x230   : > { %v1124_v19 = vpack.c.bf16 %v1077_v27, %v1076_v22  ;;  %v1347_v29 = vadd.f32 %v7713_v39, %v1346_v42 }
 0x231   : > { %v922_v30 = vpop.f32.mrf.mxu0 }
 0x232   : > { %v1458_v31 = vmul.f32 0.2, %v1347_v29  ;;  %5297 = vmatmul.msk.bf16.gmra.mxu1 %vm1160_vm2, %v1124_v19  ;;  %v923_v34 = vadd.f32 %v7608_v23, %v922_v30 }
 0x234   : > { %v1522_v58 = vmax.f32 %v1347_v29, %v1458_v31  ;;  %v1014_v37 = vmul.f32 0.2, %v923_v34 }
 0x236   : > { %v7904_v32 = vmax.f32 %v7850_v8, %v1522_v58  ;;  %v1078_v45 = vmax.f32 %v923_v34, %v1014_v37 }
 0x237   : > { %v1348_v36 = vpop.f32.mrf.mxu1 }
 0x238   : > { %v1349_v11 = vadd.f32 %v7713_v39, %v1348_v36 }
 0x239   : > { %v925_v18 = vpop.f32.mrf.mxu0 }
 0x23a   : > { %v1459_v40 = vmul.f32 0.2, %v1349_v11  ;;  %v926_v41 = vadd.f32 %v7608_v23, %v925_v18  ;;  %v7920_v23 = vld [vmem:[%s9310_s2] ss:$0 sm:$0xff] }
 0x23c   : > { %v1523_v43 = vmax.f32 %v1349_v11, %v1459_v40  ;;  %v1015_v44 = vmul.f32 0.2, %v926_v41 }
 0x23e   : > { %v7910_v47 = vmax.f32 %v7858_v46, %v1523_v43  ;;  %v1079_v48 = vmax.f32 %v926_v41, %v1015_v44 }
 0x23f   : > { %v1351_v49 = vpop.f32.mrf.mxu1 }
 0x240   : > { %v1125_v8 = vpack.c.bf16 %v1079_v48, %v1078_v45  ;;  %v1352_v50 = vadd.f32 %v7713_v39, %v1351_v49 }
 0x241   : > { %v928_v5 = vpop.f32.mrf.mxu0 }
 0x242   : > { %v1460_v51 = vmul.f32 0.2, %v1352_v50  ;;  %5298 = vmatmul.msk.bf16.gmra.mxu1 %vm1160_vm2, %v1125_v8  ;;  %v929_v46 = vadd.f32 %v7920_v23, %v928_v5 }
 0x244   : > { %v1524_v52 = vmax.f32 %v1352_v50, %v1460_v51  ;;  %v1016_v59 = vmul.f32 0.2, %v929_v46 }
 0x246   : > { %v7915_v54 = vmax.f32 %v7865_v38, %v1524_v52  ;;  %v1080_v1 = vmax.f32 %v929_v46, %v1016_v59 }
 0x247   : > { %v1353_v24 = vpop.f32.mrf.mxu1 }
 0x248   : > { %v1354_v56 = vadd.f32 %v7713_v39, %v1353_v24 }
 0x249   : > { %v931_v57 = vpop.f32.mrf.mxu0 }
 0x24a   : > { %v1461_v60 = vmul.f32 0.2, %v1354_v56  ;;  %v932_v61 = vadd.f32 %v7920_v23, %v931_v57 }
 0x24c   : > { %v1525_v63 = vmax.f32 %v1354_v56, %v1461_v60  ;;  %v1017_v0 = vmul.f32 0.2, %v932_v61 }
 0x24e   : > { %v7926_v38 = vmax.f32 %v7873_v3, %v1525_v63  ;;  %v1081_v25 = vmax.f32 %v932_v61, %v1017_v0 }
 0x24f   : > { %v1356_v2 = vpop.f32.mrf.mxu1 }
 0x250   : > { %v1126_v28 = vpack.c.bf16 %v1081_v25, %v1080_v1  ;;  %v1357_v4 = vadd.f32 %v7713_v39, %v1356_v2 }
 0x251   : > { %v934_v62 = vpop.f32.mrf.mxu0 }
 0x252   : > { %v1462_v7 = vmul.f32 0.2, %v1357_v4  ;;  %5299 = vmatmul.msk.bf16.gmra.mxu1 %vm1160_vm2, %v1126_v28  ;;  %v935_v12 = vadd.f32 %v7920_v23, %v934_v62 }
 0x254   : > { %v1526_v35 = vmax.f32 %v1357_v4, %v1462_v7  ;;  %v1018_v33 = vmul.f32 0.2, %v935_v12 }
 0x256   : > { %v7931_v9 = vmax.f32 %v7880_v55, %v1526_v35  ;;  %v1082_v6 = vmax.f32 %v935_v12, %v1018_v33 }
 0x257   : > { %v1358_v14 = vpop.f32.mrf.mxu1 }
 0x258   : > { %v1359_v15 = vadd.f32 %v7713_v39, %v1358_v14 }
 0x259   : > { %v937_v3 = vpop.f32.mrf.mxu0 }
 0x25a   : > { %v1463_v53 = vmul.f32 0.2, %v1359_v15  ;;  %v938_v16 = vadd.f32 %v7920_v23, %v937_v3 }
 0x25c   : > { %v1527_v17 = vmax.f32 %v1359_v15, %v1463_v53  ;;  %v1019_v20 = vmul.f32 0.2, %v938_v16 }
 0x25e   : > { %v7937_v21 = vmax.f32 %v7888_v10, %v1527_v17  ;;  %v1083_v22 = vmax.f32 %v938_v16, %v1019_v20 }
 0x25f   : > { %v1361_v27 = vpop.f32.mrf.mxu1 }
 0x260   : > { %v1127_v55 = vpack.c.bf16 %v1083_v22, %v1082_v6  ;;  %v1362_v42 = vadd.f32 %v7713_v39, %v1361_v27 }
 0x261   : > { %v940_v19 = vpop.f32.mrf.mxu0 }
 0x262   : > { %v1464_v29 = vmul.f32 0.2, %v1362_v42  ;;  %5300 = vmatmul.msk.bf16.gmra.mxu1 %vm1160_vm2, %v1127_v55  ;;  %v941_v58 = vadd.f32 %v7920_v23, %v940_v19 }
 0x264   : > { %v1528_v30 = vmax.f32 %v1362_v42, %v1464_v29  ;;  %v1020_v11 = vmul.f32 0.2, %v941_v58 }
 0x266   : > { %v7942_v31 = vmax.f32 %v7893_v13, %v1528_v30  ;;  %v1084_v43 = vmax.f32 %v941_v58, %v1020_v11 }
 0x267   : > { %v1363_v34 = vpop.f32.mrf.mxu1 }
 0x268   : > { %v1364_v36 = vadd.f32 %v7713_v39, %v1363_v34 }
 0x269   : > { %v943_v10 = vpop.f32.mrf.mxu0 }
 0x26a   : > { %v1465_v18 = vmul.f32 0.2, %v1364_v36  ;;  %v944_v37 = vadd.f32 %v7920_v23, %v943_v10 }
 0x26c   : > { %v1529_v40 = vmax.f32 %v1364_v36, %v1465_v18  ;;  %v1021_v41 = vmul.f32 0.2, %v944_v37 }
 0x26e   : > { %v7948_v44 = vmax.f32 %v7899_v26, %v1529_v40  ;;  %v1085_v45 = vmax.f32 %v944_v37, %v1021_v41 }
 0x26f   : > { %v1366_v48 = vpop.f32.mrf.mxu1 }
 0x270   : > { %v1128_v13 = vpack.c.bf16 %v1085_v45, %v1084_v43  ;;  %v1367_v49 = vadd.f32 %v7713_v39, %v1366_v48 }
 0x271   : > { %v946_v8 = vpop.f32.mrf.mxu0 }
 0x272   : > { %v1466_v50 = vmul.f32 0.2, %v1367_v49  ;;  %5301 = vmatmul.msk.bf16.gmra.mxu1 %vm1160_vm2, %v1128_v13  ;;  %v947_v52 = vadd.f32 %v7920_v23, %v946_v8  ;;  %v6904_v8 = vld [vmem:[%s9313_s5 + $0x1c4] sm:$0xf] }
 0x274   : > { %v1530_v5 = vmax.f32 %v1367_v49, %v1466_v50  ;;  %v1022_v56 = vmul.f32 0.2, %v947_v52  ;;  %v5531_v49 = vld [vmem:[%s9313_s5 + $0x1c0] sm:$0xf] }
 0x276   : > { %v1586_v51 = vmax.f32 %v7904_v32, %v1530_v5  ;;  %v1086_v59 = vmax.f32 %v947_v52, %v1022_v56  ;;  %v5533_v5 = vld [vmem:[%s9313_s5 + $0x1e0] sm:$0xf0]  ;;  %v6900_v56 = vld [vmem:[%s9313_s5 + $0x19c] sm:$0xf0] }
 0x277   : > { %v7954_v46 = vpop.f32.mrf.mxu1  ;;  %v5536_v52 = vor.u32 %v6904_v8, %v5533_v5 }
 0x279   : > { %v949_v24 = vpop.f32.mrf.mxu0  ;;  %2045 = vmatpush.bf16.msra.mxu3 %v5536_v52 }
 0x27a   : > { %v950_v26 = vadd.f32 %v7920_v23, %v949_v24  ;;  %v5499_v24 = vld [vmem:[%s9313_s5 + $0x180] sm:$0xf] }
 0x27c   : > { %v1023_v57 = vmul.f32 0.2, %v950_v26 }
 0x27e   : > { %v1087_v60 = vmax.f32 %v950_v26, %v1023_v57  ;;  %v6896_v26 = vld [vmem:[%s9313_s5 + $0x184] sm:$0xf]  ;;  %v5500_v57 = vor.u32 %v6900_v56, %v5499_v24 }
 0x27f   : > { %v1371_v61 = vpop.f32.mrf.mxu1 }
 0x280   : > { %v1129_v63 = vpack.c.bf16 %v1087_v60, %v1086_v59  ;;  %v1372_v0 = vadd.f32 %v7713_v39, %v1371_v61  ;;  %v5501_v59 = vld [vmem:[%s9313_s5 + $0x1a0] sm:$0xf0] }
 0x281   : > { %v952_v1 = vpop.f32.mrf.mxu0  ;;  %v5504_v61 = vor.u32 %v6896_v26, %v5501_v59 }
 0x282   : > { %v1468_v25 = vmul.f32 0.2, %v1372_v0  ;;  %5302 = vmatmul.msk.bf16.gmra.mxu1 %vm1160_vm2, %v1129_v63  ;;  %v953_v28 = vadd.f32 %v7920_v23, %v952_v1  ;;  %v6892_v1 = vld [vmem:[%s9313_s5 + $0x15c] sm:$0xf0] }
 0x283   : > { %2046 = vmatpush.bf16.msra.mxu3 %v5504_v61 }
 0x284   : > { %v1532_v32 = vmax.f32 %v1372_v0, %v1468_v25  ;;  %v1024_v7 = vmul.f32 0.2, %v953_v28  ;;  %v5467_v0 = vld [vmem:[%s9313_s5 + $0x140] sm:$0xf]  ;;  %v6888_v25 = vld [vmem:[%s9313_s5 + $0x144] sm:$0xf] }
 0x286   : > { %v1588_v2 = vmax.f32 %v7915_v54, %v1532_v32  ;;  %v1088_v14 = vmax.f32 %v953_v28, %v1024_v7  ;;  %v5468_v32 = vor.u32 %v6892_v1, %v5467_v0  ;;  %v6884_v7 = vld [vmem:[%s9313_s5 + $0x11c] sm:$0xf0] }
 0x287   : > { %v7961_v4 = vpop.f32.mrf.mxu1 }
 0x289   : > { %v955_v62 = vpop.f32.mrf.mxu0 }
 0x28a   : > { %v956_v35 = vadd.f32 %v7920_v23, %v955_v62  ;;  %v5435_v62 = vld [vmem:[%s9313_s5 + $0x100] sm:$0xf] }
 0x28c   : > { %v1025_v12 = vmul.f32 0.2, %v956_v35 }
 0x28e   : > { %v1089_v15 = vmax.f32 %v956_v35, %v1025_v12  ;;  %v6880_v35 = vld [vmem:[%s9313_s5 + $0x104] sm:$0xf]  ;;  %v5436_v12 = vor.u32 %v6884_v7, %v5435_v62 }
 0x28f   : > { %v1376_v3 = vpop.f32.mrf.mxu1 }
 0x290   : > { %v1130_v33 = vpack.c.bf16 %v1089_v15, %v1088_v14  ;;  %v1377_v53 = vadd.f32 %v7713_v39, %v1376_v3  ;;  %v5437_v14 = vld [vmem:[%s9313_s5 + $0x120] sm:$0xf0] }
 0x291   : > { %v958_v16 = vpop.f32.mrf.mxu0  ;;  %v5440_v15 = vor.u32 %v6880_v35, %v5437_v14 }
 0x292   : > { %v1470_v17 = vmul.f32 0.2, %v1377_v53  ;;  %5303 = vmatmul.msk.bf16.gmra.mxu1 %vm1160_vm2, %v1130_v33  ;;  %v959_v6 = vadd.f32 %v7920_v23, %v958_v16  ;;  %v5403_v33 = vld [vmem:[%s9313_s5 + $0xc0] sm:$0xf]  ;;  %v6872_v16 = vld [vmem:[%s9313_s5 + $0xc4] sm:$0xf] }
 0x294   : > { %v1534_v54 = vmax.f32 %v1377_v53, %v1470_v17  ;;  %v1026_v55 = vmul.f32 0.2, %v959_v6  ;;  %v6876_v53 = vld [vmem:[%s9313_s5 + $0xdc] sm:$0xf0] }
 0x295   : > { %v5404_v17 = vor.u32 %v6876_v53, %v5403_v33 }
 0x296   : > { %v7967_v20 = vmax.f32 %v7931_v9, %v1534_v54  ;;  %v1090_v29 = vmax.f32 %v959_v6, %v1026_v55  ;;  %v5405_v54 = vld [vmem:[%s9313_s5 + $0xe0] sm:$0xf0]  ;;  %v6868_v55 = vld [vmem:[%s9313_s5 + $0x9c] sm:$0xf0] }
 0x297   : > { %v7970_v22 = vpop.f32.mrf.mxu1  ;;  %v5408_v6 = vor.u32 %v6872_v16, %v5405_v54  ;;  %v6909_v16 = vld [vmem:[%s9313_s5 + $0x1e4] sm:$0xf0] }
 0x299   : > { %v961_v27 = vpop.f32.mrf.mxu0 }
 0x29a   : > { %v962_v42 = vadd.f32 %v7920_v23, %v961_v27  ;;  %v5371_v27 = vld [vmem:[%s9313_s5 + $0x80] sm:$0xf] }
 0x29c   : > { %v1027_v19 = vmul.f32 0.2, %v962_v42 }
 0x29e   : > { %v1091_v30 = vmax.f32 %v962_v42, %v1027_v19  ;;  %v6864_v42 = vld [vmem:[%s9313_s5 + $0x84] sm:$0xf]  ;;  %v5372_v19 = vor.u32 %v6868_v55, %v5371_v27  ;;  %v5507_v55 = vld [vmem:[%s9313_s5 + $0x188] sm:$0xf] }
 0x29f   : > { %v1381_v58 = vpop.f32.mrf.mxu1 }
 0x2a0   : > { %v1131_v34 = vpack.c.bf16 %v1091_v30, %v1090_v29  ;;  %v1382_v36 = vadd.f32 %v7713_v39, %v1381_v58  ;;  %v5373_v29 = vld [vmem:[%s9313_s5 + $0xa0] sm:$0xf0] }
 0x2a1   : > { %v5376_v30 = vor.u32 %v6864_v42, %v5373_v29  ;;  %v6901_v42 = vld [vmem:[%s9313_s5 + $0x1a4] sm:$0xf0] }
 0x2a2   : > { %v1472_v10 = vmul.f32 0.2, %v1382_v36  ;;  %5304 = vmatmul.msk.bf16.gmra.mxu1 %vm1160_vm2, %v1131_v34  ;;  %v5339_v34 = vld [vmem:[%s9313_s5 + $0x40] sm:$0xf]  ;;  %v5508_v29 = vor.u32 %v6901_v42, %v5507_v55 }
 0x2a4   : > { %v1536_v9 = vmax.f32 %v1382_v36, %v1472_v10  ;;  %v6860_v36 = vld [vmem:[%s9313_s5 + $0x5c] sm:$0xf0]  ;;  %v6856_v10 = vld [vmem:[%s9313_s5 + $0x44] sm:$0xf] }
 0x2a6   : > { %v7976_v11 = vmax.f32 %v7942_v31, %v1536_v9  ;;  %v6908_v31 = vld [vmem:[%s9313_s5 + $0x1dc] sm:$0xf0]  ;;  %v5340_v9 = vor.u32 %v6860_v36, %v5339_v34 }
 0x2a7   : > { %v7978_v18 = vpop.f32.mrf.mxu1  ;;  %v5532_v50 = vor.u32 %v6908_v31, %v5531_v49  ;;  %v5309_v49 = vld [vmem:[%s9313_s5 + $0x20] sm:$0xf0] }
 0x2a9   : > { %2016 = vmatpush.bf16.msra.mxu2 %v5532_v50  ;;  %v8093_v50 = vld [vmem:[%s9312_s4] ss:$0 sm:$0xff] }
 0x2aa   : > { %v1369_v56 = vadd.f32 %v8093_v50, %v7954_v46 }
 0x2ac   : > { %v1467_v59 = vmul.f32 0.2, %v1369_v56 }
 0x2ad   : > { %2017 = vmatpush.bf16.msra.mxu2 %v5500_v57 }
 0x2ae   : > { %v1531_v1 = vmax.f32 %v1369_v56, %v1467_v59  ;;  %v6881_v59 = vld [vmem:[%s9313_s5 + $0x10c] sm:$0xf] }
 0x2af   : > { %v1386_v37 = vpop.f32.mrf.mxu1 }
 0x2b0   : > { %v1387_v40 = vadd.f32 %v7713_v39, %v1386_v37  ;;  %v5341_v37 = vld [vmem:[%s9313_s5 + $0x60] sm:$0xf0] }
 0x2b1   : > { %2018 = vmatpush.bf16.msra.mxu2 %v5468_v32 }
 0x2b2   : > { %v1474_v23 = vmul.f32 0.2, %v1387_v40 }
 0x2b4   : > { %v1538_v41 = vmax.f32 %v1387_v40, %v1474_v23  ;;  %v5344_v40 = vor.u32 %v6856_v10, %v5341_v37  ;;  %v5307_v23 = vld [vmem:[%s9313_s5] sm:$0xf] }
 0x2b5   : > { %2019 = vmatpush.bf16.msra.mxu2 %v5436_v12  ;;  %v1374_v12 = vadd.f32 %v8093_v50, %v7961_v4  ;;  %v6905_v4 = vld [vmem:[%s9313_s5 + $0x1cc] sm:$0xf] }
 0x2b6   : > { %v7981_v43 = vmax.f32 %v1586_v51, %v1538_v41  ;;  %v6852_v41 = vld [vmem:[%s9313_s5 + $0x1c] sm:$0xf0] }
 0x2b7   : > { %v7983_v45 = vpop.f32.mrf.mxu1 }
 0x2b8   : > { %v1389_v57 = vadd.f32 %v8093_v50, %v7983_v45 }
 0x2b9   : > { %2020 = vmatpush.bf16.msra.mxu2 %v5404_v17  ;;  %v1469_v17 = vmul.f32 0.2, %v1374_v12 }
 0x2ba   : > { %v1475_v0 = vmul.f32 0.2, %v1389_v57 }
 0x2bb   : > { %v1533_v34 = vmax.f32 %v1374_v12, %v1469_v17  ;;  %v6861_v17 = vld [vmem:[%s9313_s5 + $0x64] sm:$0xf0] }
 0x2bd   : > { %2021 = vmatpush.bf16.msra.mxu2 %v5372_v19  ;;  %v6897_v19 = vld [vmem:[%s9313_s5 + $0x18c] sm:$0xf] }
 0x2bf   : > { %v1391_v48 = vpop.f32.mrf.mxu1 }
 0x2c0   : > { %v1392_v13 = vadd.f32 %v7713_v39, %v1391_v48  ;;  %v6848_v48 = vld [vmem:[%s9313_s5 + $0x4] sm:$0xf] }
 0x2c1   : > { %2022 = vmatpush.bf16.msra.mxu2 %v5340_v9  ;;  %v5312_v31 = vor.u32 %v6848_v48, %v5309_v49  ;;  %v6889_v48 = vld [vmem:[%s9313_s5 + $0x14c] sm:$0xf] }
 0x2c2   : > { %v1476_v51 = vmul.f32 0.2, %v1392_v13  ;;  %v5477_v49 = vld [vmem:[%s9313_s5 + $0x168] sm:$0xf0] }
 0x2c4   : > { %v1540_v39 = vmax.f32 %v1392_v13, %v1476_v51  ;;  %v5308_v13 = vor.u32 %v6852_v41, %v5307_v23  ;;  %v5475_v23 = vld [vmem:[%s9313_s5 + $0x148] sm:$0xf] }
 0x2c5   : > { %v6893_v41 = vld [vmem:[%s9313_s5 + $0x164] sm:$0xf0] }
 0x2c6   : > { %v8010_v60 = vmax.f32 %v1588_v2, %v1540_v39  ;;  %v5469_v2 = vld [vmem:[%s9313_s5 + $0x160] sm:$0xf0]  ;;  %2023 = vmatpush.bf16.msra.mxu2 %v5308_v13  ;;  %v5476_v13 = vor.u32 %v6893_v41, %v5475_v23 }
 0x2c7   : > { %v8012_v63 = vpop.f32.mrf.mxu1  ;;  %v5472_v28 = vor.u32 %v6888_v25, %v5469_v2  ;;  %v1539_v2 = vmax.f32 %v1389_v57, %v1475_v0  ;;  %v6885_v57 = vld [vmem:[%s9313_s5 + $0x124] sm:$0xf0]  ;;  %v1379_v0 = vadd.f32 %v8093_v50, %v7970_v22 }
 0x2c8   : > { %v6877_v22 = vld [vmem:[%s9313_s5 + $0xe4] sm:$0xf0] }
 0x2c9   : > { %2047 = vmatpush.bf16.msra.mxu3 %v5472_v28  ;;  %v1587_v28 = vmax.f32 %v7910_v47, %v1531_v1  ;;  %v5539_v47 = vld [vmem:[%s9313_s5 + $0x1c8] sm:$0xf] }
 0x2cb   : > { %v1595_v35 = vmax.f32 %v1587_v28, %v1539_v2 }
 0x2cd   : > { %2048 = vmatpush.bf16.msra.mxu3 %v5440_v15  ;;  %v1394_v15 = vadd.f32 %v8093_v50, %v8012_v63  ;;  %v5541_v63 = vld [vmem:[%s9313_s5 + $0x1e8] sm:$0xf0] }
 0x2cf   : > { %v8038_v3 = vpop.f32.mrf.mxu1  ;;  %v1477_v27 = vmul.f32 0.2, %v1394_v15 }
 0x2d0   : > { %v1397_v2 = vadd.f32 %v8093_v50, %v8038_v3 }
 0x2d1   : > { %2049 = vmatpush.bf16.msra.mxu3 %v5408_v6  ;;  %v5544_v6 = vor.u32 %v6905_v4, %v5541_v63  ;;  %v1541_v37 = vmax.f32 %v1394_v15, %v1477_v27  ;;  %v5347_v63 = vld [vmem:[%s9313_s5 + $0x48] sm:$0xf] }
 0x2d2   : > { %v1478_v15 = vmul.f32 0.2, %v1397_v2 }
 0x2d5   : > { %2050 = vmatpush.bf16.msra.mxu3 %v5376_v30  ;;  %v5509_v30 = vld [vmem:[%s9313_s5 + $0x1a8] sm:$0xf0] }
 0x2d6   : > { %v5512_v10 = vor.u32 %v6897_v19, %v5509_v30  ;;  %v5348_v19 = vor.u32 %v6861_v17, %v5347_v63 }
 0x2d7   : > { %v8064_v58 = vpop.f32.mrf.mxu1 }
 0x2d8   : > { %v1399_v28 = vadd.f32 %v8093_v50, %v8064_v58  ;;  %v5413_v58 = vld [vmem:[%s9313_s5 + $0xe8] sm:$0xf0] }
 0x2d9   : > { %2051 = vmatpush.bf16.msra.mxu3 %v5344_v40 }
 0x2da   : > { %v1479_v4 = vmul.f32 0.2, %v1399_v28 }
 0x2dc   : > { %v1543_v30 = vmax.f32 %v1399_v28, %v1479_v4  ;;  %v6890_v4 = vld [vmem:[%s9313_s5 + $0x154] sm:$0xf] }
 0x2dd   : > { %2052 = vmatpush.bf16.msra.mxu3 %v5312_v31  ;;  %v1589_v31 = vmax.f32 %v7926_v38, %v1533_v34 }
 0x2df   : > { %v1401_v8 = vpop.f32.mrf.mxu1 }
 0x2e0   : > { %v1402_v5 = vadd.f32 %v8093_v50, %v1401_v8 }
 0x2e1   : > { %2103 = vmatpush.bf16.msrb.mxu3 %v5544_v6  ;;  %v5349_v6 = vld [vmem:[%s9313_s5 + $0x68] sm:$0xf0] }
 0x2e2   : > { %v1480_v51 = vmul.f32 0.2, %v1402_v5 }
 0x2e4   : > { %v1544_v52 = vmax.f32 %v1402_v5, %v1480_v51  ;;  %v5480_v51 = vor.u32 %v6889_v48, %v5477_v49 }
 0x2e5   : > { %2104 = vmatpush.bf16.msrb.mxu3 %v5512_v10  ;;  %v5315_v10 = vld [vmem:[%s9313_s5 + $0x8] sm:$0xf] }
 0x2e6   : > { %v8097_v39 = vmax.f32 %v7976_v11, %v1544_v52  ;;  %v1597_v52 = vmax.f32 %v1589_v31, %v1541_v37  ;;  %v6849_v37 = vld [vmem:[%s9313_s5 + $0xc] sm:$0xf] }
 0x2e7   : > { %v8099_v24 = vpop.f32.mrf.mxu1 }
 0x2e9   : > { %2105 = vmatpush.bf16.msrb.mxu3 %v5480_v51  ;;  %v1384_v51 = vadd.f32 %v8093_v50, %v7978_v18 }
 0x2ef   : > { %v1406_v26 = vpop.f32.mrf.mxu1 }
 0x2f0   : > { %v1407_v61 = vadd.f32 %v8093_v50, %v1406_v26  ;;  %v5443_v26 = vld [vmem:[%s9313_s5 + $0x108] sm:$0xf] }
 0x2f1   : > { %v5444_v38 = vor.u32 %v6885_v57, %v5443_v26 }
 0x2f2   : > { %v1482_v25 = vmul.f32 0.2, %v1407_v61 }
 0x2f4   : > { %v1546_v62 = vmax.f32 %v1407_v61, %v1482_v25  ;;  %v5445_v61 = vld [vmem:[%s9313_s5 + $0x128] sm:$0xf0] }
 0x2f6   : > { %v1602_v45 = vmax.f32 %v7981_v43, %v1546_v62  ;;  %v5540_v43 = vor.u32 %v6909_v16, %v5539_v47  ;;  %v6865_v47 = vld [vmem:[%s9313_s5 + $0x8c] sm:$0xf] }
 0x2f7   : > { %v1408_v32 = vpop.f32.mrf.mxu1  ;;  %v5381_v16 = vld [vmem:[%s9313_s5 + $0xa8] sm:$0xf0] }
 0x2f8   : > { %v1409_v11 = vadd.f32 %v8093_v50, %v1408_v32  ;;  %2074 = vmatpush.bf16.msrb.mxu2 %v5540_v43  ;;  %v5448_v32 = vor.u32 %v6881_v59, %v5445_v61  ;;  %v5384_v43 = vor.u32 %v6865_v47, %v5381_v16  ;;  %v1473_v59 = vmul.f32 0.2, %v1384_v51  ;;  %v5483_v47 = vld [vmem:[%s9313_s5 + $0x150] sm:$0xf] }
 0x2f9   : > { %v6894_v16 = vld [vmem:[%s9313_s5 + $0x16c] sm:$0xf0] }
 0x2fa   : > { %v1483_v7 = vmul.f32 0.2, %v1409_v11  ;;  %2106 = vmatpush.bf16.msrb.mxu3 %v5448_v32  ;;  %v1537_v61 = vmax.f32 %v1384_v51, %v1473_v59  ;;  %v5484_v63 = vor.u32 %v6894_v16, %v5483_v47  ;;  %v5325_v59 = vld [vmem:[%s9313_s5 + $0x30] sm:$0xf0] }
 0x2fc   : > { %v1547_v46 = vmax.f32 %v1409_v11, %v1483_v7  ;;  %2075 = vmatpush.bf16.msrb.mxu2 %v5508_v29  ;;  %v5411_v7 = vld [vmem:[%s9313_s5 + $0xc8] sm:$0xf]  ;;  %v1542_v29 = vmax.f32 %v1397_v2, %v1478_v15  ;;  %v1593_v32 = vmax.f32 %v7948_v44, %v1537_v61  ;;  %v6910_v44 = vld [vmem:[%s9313_s5 + $0x1ec] sm:$0xf0]  ;;  %v5517_v15 = vld [vmem:[%s9313_s5 + $0x1b0] sm:$0xf0] }
 0x2fd   : > { %v5412_v3 = vor.u32 %v6877_v22, %v5411_v7  ;;  %v5683_v61 = vld [vmem:[#allocation3 + $0xe8] sm:$0xf] }
 0x2fe   : > { %v1603_v14 = vmax.f32 %v1595_v35, %v1547_v46  ;;  %v1471_v35 = vmul.f32 0.2, %v1379_v0  ;;  %v1598_v49 = vmax.f32 %v7967_v20, %v1542_v29  ;;  %v5419_v29 = vld [vmem:[%s9313_s5 + $0xd0] sm:$0xf] }
 0x2ff   : > { %v1411_v33 = vpop.f32.mrf.mxu1 }
 0x300   : > { %v8113_v53 = vpack.c.bf16 %v1603_v14, %v1602_v45  ;;  %v1412_v54 = vadd.f32 %v8093_v50, %v1411_v33  ;;  %2076 = vmatpush.bf16.msrb.mxu2 %v5476_v13  ;;  %v5379_v45 = vld [vmem:[%s9313_s5 + $0x88] sm:$0xf]  ;;  %v1535_v27 = vmax.f32 %v1379_v0, %v1471_v35 }
 0x301   : > { %v6869_v14 = vld [vmem:[%s9313_s5 + $0xa4] sm:$0xf0] }
 0x302   : > { %2024 = vmatmul.bf16.vlgmr.msra.gmra.mxu2 %v8113_v53  ;;  %2053 = vmatmul.bf16.vlgmr.msra.gmra.mxu3 %v8113_v53  ;;  %v1484_v36 = vmul.f32 0.2, %v1412_v54  ;;  %v5380_v33 = vor.u32 %v6869_v14, %v5379_v45  ;;  %v1591_v23 = vmax.f32 %v7937_v21, %v1535_v27  ;;  %v1404_v21 = vadd.f32 %v8093_v50, %v8099_v24  ;;  %v6898_v45 = vld [vmem:[%s9313_s5 + $0x194] sm:$0xf] }
 0x303   : > { %v6882_v27 = vld [vmem:[%s9313_s5 + $0x114] sm:$0xf] }
 0x304   : > { %v1548_v8 = vmax.f32 %v1412_v54, %v1484_v36  ;;  %2077 = vmatpush.bf16.msrb.mxu2 %v5444_v38  ;;  %v6857_v54 = vld [vmem:[%s9313_s5 + $0x4c] sm:$0xf]  ;;  %v1599_v31 = vmax.f32 %v1591_v23, %v1543_v30  ;;  %v1481_v38 = vmul.f32 0.2, %v1404_v21  ;;  %v6878_v30 = vld [vmem:[%s9313_s5 + $0xec] sm:$0xf0] }
 0x305   : > { %v5352_v36 = vor.u32 %v6857_v54, %v5349_v6  ;;  %v5451_v54 = vld [vmem:[%s9313_s5 + $0x110] sm:$0xf]  ;;  %v6866_v23 = vld [vmem:[%s9313_s5 + $0x94] sm:$0xf] }
 0x306   : > { %v1604_v1 = vmax.f32 %v8010_v60, %v1548_v8  ;;  %v6873_v60 = vld [vmem:[%s9313_s5 + $0xcc] sm:$0xf]  ;;  %v6886_v6 = vld [vmem:[%s9313_s5 + $0x12c] sm:$0xf0] }
 0x307   : > { %v1413_v9 = vpop.f32.mrf.mxu1  ;;  %v5416_v12 = vor.u32 %v6873_v60, %v5413_v58  ;;  %v5549_v58 = vld [vmem:[%s9313_s5 + $0x1f0] sm:$0xf0] }
 0x308   : > { %v1414_v40 = vadd.f32 %v8093_v50, %v1413_v9  ;;  %2078 = vmatpush.bf16.msrb.mxu2 %v5412_v3  ;;  %v6853_v9 = vld [vmem:[%s9313_s5 + $0x24] sm:$0xf0]  ;;  %v5547_v3 = vld [vmem:[%s9313_s5 + $0x1d0] sm:$0xf] }
 0x309   : > { %2107 = vmatpush.bf16.msrb.mxu3 %v5416_v12  ;;  %v5316_v13 = vor.u32 %v6853_v9, %v5315_v10  ;;  %v6902_v12 = vld [vmem:[%s9313_s5 + $0x1ac] sm:$0xf0]  ;;  %v5421_v10 = vld [vmem:[%s9313_s5 + $0xf0] sm:$0xf0] }
 0x30a   : > { %v1485_v5 = vmul.f32 0.2, %v1414_v40 }
 0x30c   : > { %v1549_v56 = vmax.f32 %v1414_v40, %v1485_v5  ;;  %2079 = vmatpush.bf16.msrb.mxu2 %v5380_v33  ;;  %v5317_v40 = vld [vmem:[%s9313_s5 + $0x28] sm:$0xf0]  ;;  %v5520_v33 = vor.u32 %v6898_v45, %v5517_v15 }
 0x30d   : > { %2108 = vmatpush.bf16.msrb.mxu3 %v5384_v43  ;;  %v5320_v5 = vor.u32 %v6849_v37, %v5317_v40  ;;  %v5485_v43 = vld [vmem:[%s9313_s5 + $0x170] sm:$0xf0]  ;;  %v5387_v37 = vld [vmem:[%s9313_s5 + $0x90] sm:$0xf] }
 0x30e   : > { %v1605_v25 = vmax.f32 %v1597_v52, %v1549_v56  ;;  %v5488_v17 = vor.u32 %v6890_v4, %v5485_v43  ;;  %v6870_v40 = vld [vmem:[%s9313_s5 + $0xac] sm:$0xf0]  ;;  %v6895_v4 = vld [vmem:[%s9313_s5 + $0x174] sm:$0xf0]  ;;  %v6891_v43 = vld [vmem:[%s9313_s5 + $0x15c] sm:$0xf] }
 0x30f   : > { %v1416_v11 = vpop.f32.mrf.mxu1 }
 0x310   : > { %v8175_v62 = vpack.c.bf16 %v1605_v25, %v1604_v1  ;;  %v1417_v46 = vadd.f32 %v8093_v50, %v1416_v11  ;;  %2080 = vmatpush.bf16.msrb.mxu2 %v5348_v19  ;;  %v1545_v1 = vmax.f32 %v1404_v21, %v1481_v38  ;;  %v6850_v21 = vld [vmem:[%s9313_s5 + $0x14] sm:$0xf] }
 0x311   : > { %2109 = vmatpush.bf16.msrb.mxu3 %v5352_v36  ;;  %v5420_v36 = vor.u32 %v6878_v30, %v5419_v29  ;;  %v5328_v38 = vor.u32 %v6850_v21, %v5325_v59  ;;  %v5395_v59 = vld [vmem:[%s9313_s5 + $0x98] sm:$0xf] }
 0x312   : > { %2029 = vmatmul.bf16.gmra.mxu2 %v8175_v62  ;;  %2058 = vmatmul.bf16.gmra.mxu3 %v8175_v62  ;;  %v1486_v55 = vmul.f32 0.2, %v1417_v46  ;;  %v1601_v11 = vmax.f32 %v1593_v32, %v1545_v1 }
 0x314   : > { %v1550_v41 = vmax.f32 %v1417_v46, %v1486_v55  ;;  %2081 = vmatpush.bf16.msrb.mxu2 %v5316_v13  ;;  %v5515_v46 = vld [vmem:[%s9313_s5 + $0x190] sm:$0xf]  ;;  %v5453_v55 = vld [vmem:[%s9313_s5 + $0x130] sm:$0xf0] }
 0x315   : > { %2110 = vmatpush.bf16.msrb.mxu3 %v5320_v5  ;;  %v5516_v14 = vor.u32 %v6902_v12, %v5515_v46  ;;  %v5456_v19 = vor.u32 %v6882_v27, %v5453_v55  ;;  %v5357_v5 = vld [vmem:[%s9313_s5 + $0x70] sm:$0xf0]  ;;  %v6887_v27 = vld [vmem:[%s9313_s5 + $0x134] sm:$0xf0]  ;;  %v6883_v55 = vld [vmem:[%s9313_s5 + $0x11c] sm:$0xf] }
 0x316   : > { %v1606_v52 = vmax.f32 %v1598_v49, %v1550_v41  ;;  %v5388_v41 = vor.u32 %v6870_v40, %v5387_v37  ;;  %v5355_v49 = vld [vmem:[%s9313_s5 + $0x50] sm:$0xf] }
 0x317   : > { %v1418_v42 = vpop.f32.mrf.mxu1 }
 0x318   : > { %v1419_v34 = vadd.f32 %v8093_v50, %v1418_v42  ;;  %v5452_v42 = vor.u32 %v6886_v6, %v5451_v54  ;;  %v5459_v6 = vld [vmem:[%s9313_s5 + $0x118] sm:$0xf] }
 0x31a   : > { %v1487_v48 = vmul.f32 0.2, %v1419_v34 }
 0x31c   : > { %v1551_v8 = vmax.f32 %v1419_v34, %v1487_v48  ;;  %v6874_v34 = vld [vmem:[%s9313_s5 + $0xd4] sm:$0xf] }
 0x31d   : > { %v5424_v9 = vor.u32 %v6874_v34, %v5421_v10  ;;  %v5389_v48 = vld [vmem:[%s9313_s5 + $0xb0] sm:$0xf0]  ;;  %v5460_v34 = vor.u32 %v6887_v27, %v5459_v6 }
 0x31e   : > { %v1607_v56 = vmax.f32 %v1599_v31, %v1551_v8  ;;  %v5392_v13 = vor.u32 %v6866_v23, %v5389_v48  ;;  %v6862_v31 = vld [vmem:[%s9313_s5 + $0x6c] sm:$0xf0]  ;;  %v6858_v8 = vld [vmem:[%s9313_s5 + $0x54] sm:$0xf] }
 0x31f   : > { %v1421_v26 = vpop.f32.mrf.mxu1  ;;  %v5356_v51 = vor.u32 %v6862_v31, %v5355_v49  ;;  %v6879_v49 = vld [vmem:[%s9313_s5 + $0xf4] sm:$0xf0]  ;;  %v6875_v31 = vld [vmem:[%s9313_s5 + $0xdc] sm:$0xf] }
 0x320   : > { %v8235_v57 = vpack.c.bf16 %v1607_v56, %v1606_v52  ;;  %v1422_v20 = vadd.f32 %v8093_v50, %v1421_v26  ;;  %v5360_v52 = vor.u32 %v6858_v8, %v5357_v5  ;;  %v5323_v56 = vld [vmem:[%s9313_s5 + $0x10] sm:$0xf]  ;;  %v5429_v8 = vld [vmem:[%s9313_s5 + $0xf8] sm:$0xf0] }
 0x321   : > { %v6854_v26 = vld [vmem:[%s9313_s5 + $0x2c] sm:$0xf0] }
 0x322   : > { %2034 = vmatmul.bf16.gmra.mxu2 %v8235_v57  ;;  %2063 = vmatmul.bf16.gmra.mxu3 %v8235_v57  ;;  %v1488_v18 = vmul.f32 0.2, %v1422_v20 }
 0x324   : > { %v1552_v24 = vmax.f32 %v1422_v20, %v1488_v18  ;;  %v5324_v20 = vor.u32 %v6854_v26, %v5323_v56  ;;  %v6943_v18 = vld [vmem:[#allocation3 + $0xf4] sm:$0xf0]  ;;  %v5432_v56 = vor.u32 %v6875_v31, %v5429_v8 }
 0x325   : > { %v5684_v1 = vor.u32 %v6943_v18, %v5683_v61 }
 0x326   : > { %v1608_v7 = vmax.f32 %v8097_v39, %v1552_v24  ;;  %v5548_v39 = vor.u32 %v6910_v44, %v5547_v3  ;;  %v5555_v24 = vld [vmem:[%s9313_s5 + $0x1d8] sm:$0xf] }
 0x327   : > { %v1423_v0 = vpop.f32.mrf.mxu1  ;;  %4296 = vmatpush.bf16.msrb.mxu0 %v5684_v1  ;;  %v5523_v44 = vld [vmem:[%s9313_s5 + $0x198] sm:$0xf]  ;;  %v5397_v1 = vld [vmem:[%s9313_s5 + $0xb8] sm:$0xf0] }
 0x328   : > { %v1424_v25 = vadd.f32 %v8093_v50, %v1423_v0  ;;  %v6906_v50 = vld [vmem:[%s9313_s5 + $0x1d4] sm:$0xf]  ;;  %2132 = vmatpush.bf16.msra.mxu2 %v5548_v39  ;;  %v5811_v0 = vld [vmem:[#allocation3 + $0x1e8] sm:$0xf]  ;;  %v6899_v39 = vld [vmem:[%s9313_s5 + $0x19c] sm:$0xf] }
 0x329   : > { %v5552_v35 = vor.u32 %v6906_v50, %v5549_v58  ;;  %v6903_v50 = vld [vmem:[%s9313_s5 + $0x1b4] sm:$0xf0] }
 0x32a   : > { %v1489_v2 = vmul.f32 0.2, %v1424_v25  ;;  %v5524_v45 = vor.u32 %v6903_v50, %v5523_v44  ;;  %v5365_v44 = vld [vmem:[%s9313_s5 + $0x78] sm:$0xf0] }
 0x32b   : > { %2161 = vmatpush.bf16.msra.mxu3 %v5552_v35 }
 0x32c   : > { %v1553_v28 = vmax.f32 %v1424_v25, %v1489_v2  ;;  %2133 = vmatpush.bf16.msra.mxu2 %v5516_v14  ;;  %v6975_v25 = vld [vmem:[#allocation3 + $0x1f4] sm:$0xf0]  ;;  %v5525_v14 = vld [vmem:[%s9313_s5 + $0x1b8] sm:$0xf0] }
 0x32d   : > { %v5812_v32 = vor.u32 %v6975_v25, %v5811_v0  ;;  %v6911_v2 = vld [vmem:[%s9313_s5 + $0x1f4] sm:$0xf0]  ;;  %v5528_v15 = vor.u32 %v6899_v39, %v5525_v14 }
 0x32e   : > { %v1609_v22 = vmax.f32 %v1601_v11, %v1553_v28  ;;  %v6907_v11 = vld [vmem:[%s9313_s5 + $0x1dc] sm:$0xf]  ;;  %v5556_v28 = vor.u32 %v6911_v2, %v5555_v24 }
 0x32f   : > { %2162 = vmatpush.bf16.msra.mxu3 %v5520_v33  ;;  %4309 = vmatpush.bf16.msrb.mxu1 %v5812_v32  ;;  %v5491_v33 = vld [vmem:[%s9313_s5 + $0x158] sm:$0xf] }
 0x330   : > { %v8243_v60 = vpack.c.bf16 %v1609_v22, %v1608_v7  ;;  %2134 = vmatpush.bf16.msra.mxu2 %v5484_v63  ;;  %v5557_v7 = vld [vmem:[%s9313_s5 + $0x1f8] sm:$0xf0]  ;;  %v8368_v22 = vld [vmem:[%s9314_s6] sm:$0xff] }
 0x331   : > { %v5560_v3 = vor.u32 %v6907_v11, %v5557_v7  ;;  %v8380_v58 = vperm.slane %v8368_v22, 0  ;;  %v8383_v46 = vperm.slane %v8368_v22, 1  ;;  %v5493_v63 = vld [vmem:[%s9313_s5 + $0x178] sm:$0xf0]  ;;  %v6863_v7 = vld [vmem:[%s9313_s5 + $0x74] sm:$0xf0] }
 0x332   : > { %2039 = vmatmul.bf16.gmra.mxu2 %v8243_v60  ;;  %2068 = vmatmul.bf16.gmra.mxu3 %v8243_v60  ;;  %v5496_v54 = vor.u32 %v6891_v43, %v5493_v63  ;;  %v5333_v63 = vld [vmem:[%s9313_s5 + $0x38] sm:$0xf0] }
 0x333   : > { %2163 = vmatpush.bf16.msra.mxu3 %v5488_v17  ;;  %v5492_v17 = vor.u32 %v6895_v4, %v5491_v33  ;;  %v6855_v33 = vld [vmem:[%s9313_s5 + $0x34] sm:$0xf0] }
 0x334   : > { %2135 = vmatpush.bf16.msra.mxu2 %v5452_v42 }
 0x337   : > { %2164 = vmatpush.bf16.msra.mxu3 %v5456_v19 }
 0x338   : > { %2136 = vmatpush.bf16.msra.mxu2 %v5420_v36  ;;  %v5461_v36 = vld [vmem:[%s9313_s5 + $0x138] sm:$0xf0] }
 0x339   : > { %v5464_v37 = vor.u32 %v6883_v55, %v5461_v36 }
 0x33b   : > { %2165 = vmatpush.bf16.msra.mxu3 %v5424_v9 }
 0x33c   : > { %2137 = vmatpush.bf16.msra.mxu2 %v5388_v41  ;;  %v5427_v41 = vld [vmem:[%s9313_s5 + $0xd8] sm:$0xf] }
 0x33f   : > { %2166 = vmatpush.bf16.msra.mxu3 %v5392_v13 }
 0x340   : > { %2138 = vmatpush.bf16.msra.mxu2 %v5356_v51 }
 0x342   : > { %2082 = vmatmul.bf16.vlgmr.msrb.gmra.mxu2 %v8113_v53  ;;  %2111 = vmatmul.bf16.vlgmr.msrb.gmra.mxu3 %v8113_v53 }
 0x343   : > { %2167 = vmatpush.bf16.msra.mxu3 %v5360_v52  ;;  %v5428_v52 = vor.u32 %v6879_v49, %v5427_v41 }
 0x344   : > { %2139 = vmatpush.bf16.msra.mxu2 %v5324_v20  ;;  %v6871_v20 = vld [vmem:[%s9313_s5 + $0xb4] sm:$0xf0] }
 0x345   : > { %v5396_v0 = vor.u32 %v6871_v20, %v5395_v59  ;;  %v5667_v20 = vld [vmem:[#allocation3 + $0xc8] sm:$0xf] }
 0x347   : > { %2168 = vmatpush.bf16.msra.mxu3 %v5328_v38  ;;  %v6867_v38 = vld [vmem:[%s9313_s5 + $0x9c] sm:$0xf] }
 0x348   : > { %2190 = vmatpush.bf16.msrb.mxu2 %v5556_v28  ;;  %v5400_v24 = vor.u32 %v6867_v38, %v5397_v1  ;;  %v5363_v28 = vld [vmem:[%s9313_s5 + $0x58] sm:$0xf] }
 0x349   : > { %v6939_v38 = vld [vmem:[#allocation3 + $0xd4] sm:$0xf0] }
 0x34a   : > { %v5668_v1 = vor.u32 %v6939_v38, %v5667_v20 }
 0x34b   : > { %2219 = vmatpush.bf16.msrb.mxu3 %v5560_v3  ;;  %v6859_v3 = vld [vmem:[%s9313_s5 + $0x5c] sm:$0xf] }
 0x34c   : > { %2191 = vmatpush.bf16.msrb.mxu2 %v5524_v45  ;;  %4297 = vmatpush.bf16.msrb.mxu0 %v5668_v1 }
 0x34f   : > { %2220 = vmatpush.bf16.msrb.mxu3 %v5528_v15  ;;  %v5331_v15 = vld [vmem:[%s9313_s5 + $0x18] sm:$0xf] }
 0x350   : > { %2192 = vmatpush.bf16.msrb.mxu2 %v5492_v17  ;;  %v5332_v43 = vor.u32 %v6855_v33, %v5331_v15 }
 0x352   : > { %2087 = vmatmul.bf16.gmra.mxu2 %v8175_v62  ;;  %2116 = vmatmul.bf16.gmra.mxu3 %v8175_v62 }
 0x353   : > { %2221 = vmatpush.bf16.msrb.mxu3 %v5496_v54 }
 0x354   : > { %2193 = vmatpush.bf16.msrb.mxu2 %v5460_v34 }
 0x357   : > { %2222 = vmatpush.bf16.msrb.mxu3 %v5464_v37 }
 0x358   : > { %2194 = vmatpush.bf16.msrb.mxu2 %v5428_v52 }
 0x35b   : > { %2223 = vmatpush.bf16.msrb.mxu3 %v5432_v56 }
 0x35c   : > { %2195 = vmatpush.bf16.msrb.mxu2 %v5396_v0 }
 0x35f   : > { %2224 = vmatpush.bf16.msrb.mxu3 %v5400_v24 }
 0x362   : > { %2092 = vmatmul.bf16.gmra.mxu2 %v8235_v57  ;;  %2121 = vmatmul.bf16.gmra.mxu3 %v8235_v57 }
 0x372   : > { %2097 = vmatmul.bf16.gmra.mxu2 %v8243_v60  ;;  %2126 = vmatmul.bf16.gmra.mxu3 %v8243_v60 }
 0x382   : > { %2140 = vmatmul.bf16.vlgmr.msra.gmra.mxu2 %v8113_v53  ;;  %2169 = vmatmul.bf16.vlgmr.msra.gmra.mxu3 %v8113_v53 }
 0x385   : > { %v2025_v35 = vpop.f32.mrf.mxu2  ;;  %v2054_v12 = vpop.f32.mrf.mxu3 }
 0x386   : > { %v2026_v47 = vadd.f32 %v2025_v35, %v8380_v58  ;;  %v2055_v16 = vadd.f32 %v2054_v12, %v8383_v46  ;;  %v5364_v35 = vor.u32 %v6863_v7, %v5363_v28  ;;  %v5368_v12 = vor.u32 %v6859_v3, %v5365_v44 }
 0x388   : > { %v2248_v42 = vmul.f32 0.2, %v2026_v47  ;;  %v2249_v19 = vmul.f32 0.2, %v2055_v16  ;;  %2196 = vmatpush.bf16.msrb.mxu2 %v5364_v35  ;;  %2225 = vmatpush.bf16.msrb.mxu3 %v5368_v12 }
 0x38a   : > { %v2312_v48 = vmax.f32 %v2026_v47, %v2248_v42  ;;  %v2313_v13 = vmax.f32 %v2055_v16, %v2249_v19  ;;  %v6851_v47 = vld [vmem:[%s9313_s5 + $0x1c] sm:$0xf] }
 0x38b   : > { %v5336_v6 = vor.u32 %v6851_v47, %v5333_v63 }
 0x38c   : > { %2197 = vmatpush.bf16.msrb.mxu2 %v5332_v43 }
 0x38d   : > { %v2027_v29 = vpop.f32.mrf.mxu2  ;;  %v2056_v30 = vpop.f32.mrf.mxu3  ;;  %2226 = vmatpush.bf16.msrb.mxu3 %v5336_v6 }
 0x38e   : > { %v2028_v10 = vadd.f32 %v2027_v29, %v8380_v58  ;;  %v2057_v9 = vadd.f32 %v2056_v30, %v8383_v46 }
 0x390   : > { %v2256_v40 = vmul.f32 0.2, %v2028_v10  ;;  %v2257_v23 = vmul.f32 0.2, %v2057_v9 }
 0x392   : > { %v2320_v5 = vmax.f32 %v2028_v10, %v2256_v40  ;;  %v2321_v51 = vmax.f32 %v2057_v9, %v2257_v23  ;;  %2145 = vmatmul.bf16.gmra.mxu2 %v8175_v62  ;;  %2174 = vmatmul.bf16.gmra.mxu3 %v8175_v62 }
 0x394   : > { %v2377_v26 = vmax.f32 %v2312_v48, %v2320_v5  ;;  %v2390_v21 = vmax.f32 %v2313_v13, %v2321_v51 }
 0x395   : > { %v2030_v61 = vpop.f32.mrf.mxu2  ;;  %v2059_v18 = vpop.f32.mrf.mxu3 }
 0x396   : > { %v2031_v25 = vadd.f32 %v2030_v61, %v8380_v58  ;;  %v2060_v32 = vadd.f32 %v2059_v18, %v8383_v46  ;;  %v5795_v61 = vld [vmem:[#allocation3 + $0x1c8] sm:$0xf] }
 0x398   : > { %v2264_v2 = vmul.f32 0.2, %v2031_v25  ;;  %v2265_v11 = vmul.f32 0.2, %v2060_v32 }
 0x39a   : > { %v2328_v50 = vmax.f32 %v2031_v25, %v2264_v2  ;;  %v2329_v39 = vmax.f32 %v2060_v32, %v2265_v11  ;;  %v6971_v25 = vld [vmem:[#allocation3 + $0x1d4] sm:$0xf0] }
 0x39b   : > { %v5796_v2 = vor.u32 %v6971_v25, %v5795_v61 }
 0x39c   : > { %v2378_v45 = vmax.f32 %v2377_v26, %v2328_v50  ;;  %v2391_v14 = vmax.f32 %v2390_v21, %v2329_v39 }
 0x39d   : > { %v2032_v16 = vpop.f32.mrf.mxu2  ;;  %v2061_v4 = vpop.f32.mrf.mxu3  ;;  %4310 = vmatpush.bf16.msrb.mxu1 %v5796_v2 }
 0x39e   : > { %v2033_v17 = vadd.f32 %v2032_v16, %v8380_v58  ;;  %v2062_v54 = vadd.f32 %v2061_v4, %v8383_v46 }
 0x3a0   : > { %v2272_v27 = vmul.f32 0.2, %v2033_v17  ;;  %v2273_v55 = vmul.f32 0.2, %v2062_v54 }
 0x3a2   : > { %v2336_v42 = vmax.f32 %v2033_v17, %v2272_v27  ;;  %v2337_v19 = vmax.f32 %v2062_v54, %v2273_v55  ;;  %2150 = vmatmul.bf16.gmra.mxu2 %v8235_v57  ;;  %2179 = vmatmul.bf16.gmra.mxu3 %v8235_v57 }
 0x3a4   : > { %v2379_v29 = vmax.f32 %v2378_v45, %v2336_v42  ;;  %v2392_v30 = vmax.f32 %v2391_v14, %v2337_v19  ;;  %v8485_v19 = vperm.slane %v8368_v22, 2 }
 0x3a5   : > { %v2035_v34 = vpop.f32.mrf.mxu2  ;;  %v2064_v36 = vpop.f32.mrf.mxu3 }
 0x3a6   : > { %v2036_v10 = vadd.f32 %v2035_v34, %v8380_v58  ;;  %v2065_v9 = vadd.f32 %v2064_v36, %v8383_v46 }
 0x3a8   : > { %v2280_v37 = vmul.f32 0.2, %v2036_v10  ;;  %v2281_v40 = vmul.f32 0.2, %v2065_v9 }
 0x3aa   : > { %v2344_v23 = vmax.f32 %v2036_v10, %v2280_v37  ;;  %v2345_v41 = vmax.f32 %v2065_v9, %v2281_v40 }
 0x3ac   : > { %v2380_v48 = vmax.f32 %v2379_v29, %v2344_v23  ;;  %v2393_v13 = vmax.f32 %v2392_v30, %v2345_v41  ;;  %v8488_v29 = vperm.slane %v8368_v22, 3 }
 0x3ad   : > { %v2037_v49 = vpop.f32.mrf.mxu2  ;;  %v2066_v31 = vpop.f32.mrf.mxu3 }
 0x3ae   : > { %v2038_v8 = vadd.f32 %v2037_v49, %v8380_v58  ;;  %v2067_v5 = vadd.f32 %v2066_v31, %v8383_v46 }
 0x3b0   : > { %v2288_v51 = vmul.f32 0.2, %v2038_v8  ;;  %v2289_v52 = vmul.f32 0.2, %v2067_v5 }
 0x3b2   : > { %v2352_v56 = vmax.f32 %v2038_v8, %v2288_v51  ;;  %v2353_v26 = vmax.f32 %v2067_v5, %v2289_v52  ;;  %2155 = vmatmul.bf16.gmra.mxu2 %v8243_v60  ;;  %2184 = vmatmul.bf16.gmra.mxu3 %v8243_v60 }
 0x3b4   : > { %v2381_v21 = vmax.f32 %v2380_v48, %v2352_v56  ;;  %v2394_v59 = vmax.f32 %v2393_v13, %v2353_v26 }
 0x3b5   : > { %v2040_v18 = vpop.f32.mrf.mxu2  ;;  %v2069_v0 = vpop.f32.mrf.mxu3 }
 0x3b6   : > { %v2041_v32 = vadd.f32 %v2040_v18, %v8380_v58  ;;  %v2070_v24 = vadd.f32 %v2069_v0, %v8383_v46 }
 0x3b8   : > { %v2296_v11 = vmul.f32 0.2, %v2041_v32  ;;  %v2297_v28 = vmul.f32 0.2, %v2070_v24 }
 0x3ba   : > { %v2360_v7 = vmax.f32 %v2041_v32, %v2296_v11  ;;  %v2361_v3 = vmax.f32 %v2070_v24, %v2297_v28 }
 0x3bc   : > { %v2382_v44 = vmax.f32 %v2381_v21, %v2360_v7  ;;  %v2395_v50 = vmax.f32 %v2394_v59, %v2361_v3 }
 0x3bd   : > { %v2042_v39 = vpop.f32.mrf.mxu2  ;;  %v2071_v35 = vpop.f32.mrf.mxu3 }
 0x3be   : > { %v2043_v12 = vadd.f32 %v2042_v39, %v8380_v58  ;;  %v2072_v45 = vadd.f32 %v2071_v35, %v8383_v46 }
 0x3c0   : > { %v2304_v14 = vmul.f32 0.2, %v2043_v12  ;;  %v2305_v15 = vmul.f32 0.2, %v2072_v45 }
 0x3c2   : > { %v2368_v33 = vmax.f32 %v2043_v12, %v2304_v14  ;;  %v2369_v47 = vmax.f32 %v2072_v45, %v2305_v15  ;;  %2198 = vmatmul.bf16.vlgmr.msrb.gmra.mxu2 %v8113_v53  ;;  %2227 = vmatmul.bf16.vlgmr.msrb.gmra.mxu3 %v8113_v53 }
 0x3c4   : > { %v2383_v16 = vmax.f32 %v2382_v44, %v2368_v33  ;;  %v2396_v4 = vmax.f32 %v2395_v50, %v2369_v47 }
 0x3c5   : > { %v2083_v43 = vpop.f32.mrf.mxu2  ;;  %v2112_v63 = vpop.f32.mrf.mxu3 }
 0x3c6   : > { %v2384_v17 = vrot.slane %v2383_v16, 4  ;;  %v2397_v54 = vrot.slane %v2396_v4, 4  ;;  %v2084_v40 = vadd.f32 %v2083_v43, %v8485_v19  ;;  %v2113_v23 = vadd.f32 %v2112_v63, %v8488_v29 }
 0x3c8   : > { %v2385_v6 = vmax.f32 %v2383_v16, %v2384_v17  ;;  %v2398_v27 = vmax.f32 %v2396_v4, %v2397_v54  ;;  %v2250_v8 = vmul.f32 0.2, %v2084_v40  ;;  %v2251_v5 = vmul.f32 0.2, %v2113_v23 }
 0x3ca   : > { %v2386_v55 = vrot.slane %v2385_v6, 2  ;;  %v2399_v58 = vrot.slane %v2398_v27, 2  ;;  %v2314_v20 = vmax.f32 %v2084_v40, %v2250_v8  ;;  %v2315_v38 = vmax.f32 %v2113_v23, %v2251_v5  ;;  %v6967_v23 = vld [vmem:[#allocation3 + $0x1b4] sm:$0xf0] }
 0x3cc   : > { %v2387_v42 = vmax.f32 %v2385_v6, %v2386_v55  ;;  %v2400_v46 = vmax.f32 %v2398_v27, %v2399_v58 }
 0x3cd   : > { %v2085_v30 = vpop.f32.mrf.mxu2  ;;  %v2114_v53 = vpop.f32.mrf.mxu3 }
 0x3ce   : > { %v2388_v34 = vrot.slane %v2387_v42, 1  ;;  %v2401_v36 = vrot.slane %v2400_v46, 1  ;;  %v2086_v10 = vadd.f32 %v2085_v30, %v8485_v19  ;;  %v2115_v9 = vadd.f32 %v2114_v53, %v8488_v29  ;;  %v5651_v53 = vld [vmem:[#allocation3 + $0xa8] sm:$0xf] }
 0x3d0   : > { %v2402_v37 = vmax.f32 %v2400_v46, %v2401_v36  ;;  %v2389_v41 = vmax.f32 %v2387_v42, %v2388_v34  ;;  %v2258_v13 = vmul.f32 0.2, %v2086_v10  ;;  %v2259_v49 = vmul.f32 0.2, %v2115_v9  ;;  %v6935_v34 = vld [vmem:[#allocation3 + $0xb4] sm:$0xf0] }
 0x3d1   : > { %v5779_v36 = vld [vmem:[#allocation3 + $0x1a8] sm:$0xf]  ;;  %v5652_v40 = vor.u32 %v6935_v34, %v5651_v53 }
 0x3d2   : > { %v2489_v48 = vrot.slane %v2402_v37, 7  ;;  %2203 = vmatmul.bf16.gmra.mxu2 %v8175_v62  ;;  %2232 = vmatmul.bf16.gmra.mxu3 %v8175_v62  ;;  %v2322_v56 = vmax.f32 %v2086_v10, %v2258_v13  ;;  %v2323_v26 = vmax.f32 %v2115_v9, %v2259_v49 }
 0x3d3   : > { %4298 = vmatpush.bf16.msrb.mxu0 %v5652_v40 }
 0x3d4   : > { %v8496_v31 = vsel %vm2496_vm3, %v2389_v41, %v2489_v48  ;;  %v2403_v0 = vmax.f32 %v2314_v20, %v2322_v56  ;;  %v2416_v1 = vmax.f32 %v2315_v38, %v2323_v26  ;;  %v5780_v41 = vor.u32 %v6967_v23, %v5779_v36 }
 0x3d5   : > { %v2088_v51 = vpop.f32.mrf.mxu2  ;;  %v2117_v52 = vpop.f32.mrf.mxu3 }
 0x3d6   : > { %v2089_v21 = vadd.f32 %v2088_v51, %v8485_v19  ;;  %v2118_v59 = vadd.f32 %v2117_v52, %v8488_v29  ;;  %4311 = vmatpush.bf16.msrb.mxu1 %v5780_v41 }
 0x3d8   : > { %v2266_v61 = vmul.f32 0.2, %v2089_v21  ;;  %v2267_v18 = vmul.f32 0.2, %v2118_v59 }
 0x3da   : > { %v2330_v25 = vmax.f32 %v2089_v21, %v2266_v61  ;;  %v2331_v62 = vmax.f32 %v2118_v59, %v2267_v18 }
 0x3dc   : > { %v2404_v32 = vmax.f32 %v2403_v0, %v2330_v25  ;;  %v2417_v24 = vmax.f32 %v2416_v1, %v2331_v62 }
 0x3dd   : > { %v2090_v2 = vpop.f32.mrf.mxu2  ;;  %v2119_v11 = vpop.f32.mrf.mxu3 }
 0x3de   : > { %v2091_v28 = vadd.f32 %v2090_v2, %v8485_v19  ;;  %v2120_v7 = vadd.f32 %v2119_v11, %v8488_v29 }
 0x3e0   : > { %v2274_v3 = vmul.f32 0.2, %v2091_v28  ;;  %v2275_v44 = vmul.f32 0.2, %v2120_v7 }
 0x3e2   : > { %2208 = vmatmul.bf16.gmra.mxu2 %v8235_v57  ;;  %2237 = vmatmul.bf16.gmra.mxu3 %v8235_v57  ;;  %v2338_v35 = vmax.f32 %v2091_v28, %v2274_v3  ;;  %v2339_v12 = vmax.f32 %v2120_v7, %v2275_v44 }
 0x3e4   : > { %v2405_v47 = vmax.f32 %v2404_v32, %v2338_v35  ;;  %v2418_v16 = vmax.f32 %v2417_v24, %v2339_v12 }
 0x3e5   : > { %v2093_v50 = vpop.f32.mrf.mxu2  ;;  %v2122_v39 = vpop.f32.mrf.mxu3 }
 0x3e6   : > { %v2094_v45 = vadd.f32 %v2093_v50, %v8485_v19  ;;  %v2123_v14 = vadd.f32 %v2122_v39, %v8488_v29 }
 0x3e8   : > { %v2282_v15 = vmul.f32 0.2, %v2094_v45  ;;  %v2283_v33 = vmul.f32 0.2, %v2123_v14 }
 0x3ea   : > { %v2346_v4 = vmax.f32 %v2094_v45, %v2282_v15  ;;  %v2347_v43 = vmax.f32 %v2123_v14, %v2283_v33 }
 0x3ec   : > { %v2406_v63 = vmax.f32 %v2405_v47, %v2346_v4  ;;  %v2419_v17 = vmax.f32 %v2418_v16, %v2347_v43 }
 0x3ed   : > { %v2095_v54 = vpop.f32.mrf.mxu2  ;;  %v2124_v6 = vpop.f32.mrf.mxu3 }
 0x3ee   : > { %v2096_v57 = vadd.f32 %v2095_v54, %v8485_v19  ;;  %v2125_v27 = vadd.f32 %v2124_v6, %v8488_v29 }
 0x3f0   : > { %v2290_v55 = vmul.f32 0.2, %v2096_v57  ;;  %v2291_v58 = vmul.f32 0.2, %v2125_v27 }
 0x3f2   : > { %2213 = vmatmul.bf16.gmra.mxu2 %v8243_v60  ;;  %2242 = vmatmul.bf16.gmra.mxu3 %v8243_v60  ;;  %v2354_v42 = vmax.f32 %v2096_v57, %v2290_v55  ;;  %v2355_v10 = vmax.f32 %v2125_v27, %v2291_v58 }
 0x3f4   : > { %v2407_v49 = vmax.f32 %v2406_v63, %v2354_v42  ;;  %v2420_v60 = vmax.f32 %v2419_v17, %v2355_v10 }
 0x3f5   : > { %v2098_v46 = vpop.f32.mrf.mxu2  ;;  %v2127_v30 = vpop.f32.mrf.mxu3 }
 0x3f6   : > { %v2099_v9 = vadd.f32 %v2098_v46, %v8485_v19  ;;  %v2128_v37 = vadd.f32 %v2127_v30, %v8488_v29 }
 0x3f8   : > { %v2298_v48 = vmul.f32 0.2, %v2099_v9  ;;  %v2299_v13 = vmul.f32 0.2, %v2128_v37 }
 0x3fa   : > { %v2362_v8 = vmax.f32 %v2099_v9, %v2298_v48  ;;  %v2363_v5 = vmax.f32 %v2128_v37, %v2299_v13 }
 0x3fc   : > { %v2408_v51 = vmax.f32 %v2407_v49, %v2362_v8  ;;  %v2421_v52 = vmax.f32 %v2420_v60, %v2363_v5 }
 0x3fd   : > { %v2100_v56 = vpop.f32.mrf.mxu2  ;;  %v2129_v26 = vpop.f32.mrf.mxu3 }
 0x3fe   : > { %v2101_v21 = vadd.f32 %v2100_v56, %v8485_v19  ;;  %v2130_v59 = vadd.f32 %v2129_v26, %v8488_v29  ;;  %v8515_v19 = vperm.slane %v8368_v22, 4  ;;  %v8518_v29 = vperm.slane %v8368_v22, 5 }
 0x400   : > { %v2306_v20 = vmul.f32 0.2, %v2101_v21  ;;  %v2307_v38 = vmul.f32 0.2, %v2130_v59 }
 0x402   : > { %v2370_v61 = vmax.f32 %v2101_v21, %v2306_v20  ;;  %v2371_v18 = vmax.f32 %v2130_v59, %v2307_v38 }
 0x404   : > { %v2409_v0 = vmax.f32 %v2408_v51, %v2370_v61  ;;  %v2422_v1 = vmax.f32 %v2421_v52, %v2371_v18 }
 0x405   : > { %v2141_v25 = vpop.f32.mrf.mxu2  ;;  %v2170_v62 = vpop.f32.mrf.mxu3 }
 0x406   : > { %v2410_v32 = vrot.slane %v2409_v0, 4  ;;  %v2423_v24 = vrot.slane %v2422_v1, 4  ;;  %v2142_v47 = vadd.f32 %v2141_v25, %v8515_v19  ;;  %v2171_v16 = vadd.f32 %v2170_v62, %v8518_v29 }
 0x408   : > { %v2411_v2 = vmax.f32 %v2409_v0, %v2410_v32  ;;  %v2424_v11 = vmax.f32 %v2422_v1, %v2423_v24  ;;  %v2252_v6 = vmul.f32 0.2, %v2142_v47  ;;  %v2253_v57 = vmul.f32 0.2, %v2171_v16 }
 0x40a   : > { %v2412_v28 = vrot.slane %v2411_v2, 2  ;;  %v2425_v7 = vrot.slane %v2424_v11, 2  ;;  %v2316_v34 = vmax.f32 %v2142_v47, %v2252_v6  ;;  %v2317_v36 = vmax.f32 %v2171_v16, %v2253_v57 }
 0x40c   : > { %v2413_v3 = vmax.f32 %v2411_v2, %v2412_v28  ;;  %v2426_v44 = vmax.f32 %v2424_v11, %v2425_v7 }
 0x40d   : > { %v2143_v50 = vpop.f32.mrf.mxu2  ;;  %v2172_v39 = vpop.f32.mrf.mxu3 }
 0x40e   : > { %v2414_v35 = vrot.slane %v2413_v3, 1  ;;  %v2427_v12 = vrot.slane %v2426_v44, 1  ;;  %v2144_v45 = vadd.f32 %v2143_v50, %v8515_v19  ;;  %v2173_v14 = vadd.f32 %v2172_v39, %v8518_v29  ;;  %v6931_v50 = vld [vmem:[#allocation3 + $0x94] sm:$0xf0]  ;;  %v5763_v39 = vld [vmem:[#allocation3 + $0x188] sm:$0xf] }
 0x410   : > { %v2415_v15 = vmax.f32 %v2413_v3, %v2414_v35  ;;  %v2428_v33 = vmax.f32 %v2426_v44, %v2427_v12  ;;  %v2260_v63 = vmul.f32 0.2, %v2144_v45  ;;  %v2261_v17 = vmul.f32 0.2, %v2173_v14  ;;  %v5635_v44 = vld [vmem:[#allocation3 + $0x88] sm:$0xf] }
 0x412   : > { %v2490_v4 = vrot.slane %v2415_v15, 6  ;;  %v2491_v43 = vrot.slane %v2428_v33, 5  ;;  %v2324_v42 = vmax.f32 %v2144_v45, %v2260_v63  ;;  %v2325_v46 = vmax.f32 %v2173_v14, %v2261_v17  ;;  %v6963_v15 = vld [vmem:[#allocation3 + $0x194] sm:$0xf0] }
 0x413   : > { %v5636_v14 = vor.u32 %v6931_v50, %v5635_v44 }
 0x414   : > { %v2499_v54 = vsel %vm2498_vm4, %v2490_v4, %v2491_v43  ;;  %v2429_v37 = vmax.f32 %v2316_v34, %v2324_v42  ;;  %v2442_v40 = vmax.f32 %v2317_v36, %v2325_v46  ;;  %v5764_v4 = vor.u32 %v6963_v15, %v5763_v39  ;;  %v5675_v34 = vld [vmem:[#allocation3 + $0xe0] sm:$0xf]  ;;  %v6942_v36 = vld [vmem:[#allocation3 + $0xec] sm:$0xf0] }
 0x415   : > { %v8525_v27 = vsel %vm2500_vm5, %v8496_v31, %v2499_v54  ;;  %v2146_v55 = vpop.f32.mrf.mxu2  ;;  %v2175_v58 = vpop.f32.mrf.mxu3  ;;  %4299 = vmatpush.bf16.msrb.mxu0 %v5636_v14  ;;  %v5611_v14 = vld [vmem:[#allocation3 + $0x60] sm:$0xf]  ;;  %v6926_v15 = vld [vmem:[#allocation3 + $0x6c] sm:$0xf0] }
 0x416   : > { %v2147_v30 = vadd.f32 %v2146_v55, %v8515_v19  ;;  %v2176_v53 = vadd.f32 %v2175_v58, %v8518_v29  ;;  %4312 = vmatpush.bf16.msrb.mxu1 %v5764_v4  ;;  %v5619_v4 = vld [vmem:[#allocation3 + $0x68] sm:$0xf] }
 0x418   : > { %v2268_v10 = vmul.f32 0.2, %v2147_v30  ;;  %v2269_v9 = vmul.f32 0.2, %v2176_v53 }
 0x41a   : > { %v2332_v23 = vmax.f32 %v2147_v30, %v2268_v10  ;;  %v2333_v41 = vmax.f32 %v2176_v53, %v2269_v9  ;;  %v5803_v10 = vld [vmem:[#allocation3 + $0x1e0] sm:$0xf]  ;;  %v5676_v9 = vor.u32 %v6942_v36, %v5675_v34 }
 0x41b   : > { %v5723_v36 = vld [vmem:[#allocation3 + $0x140] sm:$0xf] }
 0x41c   : > { %v2430_v48 = vmax.f32 %v2429_v37, %v2332_v23  ;;  %v2443_v13 = vmax.f32 %v2442_v40, %v2333_v41  ;;  %v6974_v37 = vld [vmem:[#allocation3 + $0x1ec] sm:$0xf0]  ;;  %4088 = vmatpush.bf16.msra.mxu2 %v5676_v9  ;;  %v5603_v9 = vld [vmem:[#allocation3 + $0x48] sm:$0xf] }
 0x41d   : > { %v2148_v31 = vpop.f32.mrf.mxu2  ;;  %v2177_v49 = vpop.f32.mrf.mxu3  ;;  %v5804_v41 = vor.u32 %v6974_v37, %v5803_v10  ;;  %v6954_v10 = vld [vmem:[#allocation3 + $0x14c] sm:$0xf0] }
 0x41e   : > { %v2149_v60 = vadd.f32 %v2148_v31, %v8515_v19  ;;  %v2178_v8 = vadd.f32 %v2177_v49, %v8518_v29  ;;  %v5659_v31 = vld [vmem:[#allocation3 + $0xc0] sm:$0xf]  ;;  %v6938_v49 = vld [vmem:[#allocation3 + $0xcc] sm:$0xf0] }
 0x41f   : > { %4101 = vmatpush.bf16.msra.mxu3 %v5804_v41  ;;  %v5731_v41 = vld [vmem:[#allocation3 + $0x148] sm:$0xf] }
 0x420   : > { %v2276_v5 = vmul.f32 0.2, %v2149_v60  ;;  %v2277_v51 = vmul.f32 0.2, %v2178_v8 }
 0x422   : > { %v2340_v26 = vmax.f32 %v2149_v60, %v2276_v5  ;;  %v2341_v21 = vmax.f32 %v2178_v8, %v2277_v51  ;;  %v5787_v60 = vld [vmem:[#allocation3 + $0x1c0] sm:$0xf]  ;;  %v5660_v8 = vor.u32 %v6938_v49, %v5659_v31  ;;  %v6970_v5 = vld [vmem:[#allocation3 + $0x1cc] sm:$0xf0] }
 0x424   : > { %v2431_v18 = vmax.f32 %v2430_v48, %v2340_v26  ;;  %v2444_v0 = vmax.f32 %v2443_v13, %v2341_v21  ;;  %4089 = vmatpush.bf16.msra.mxu2 %v5660_v8  ;;  %v5579_v8 = vld [vmem:[#allocation3 + $0x20] sm:$0xf] }
 0x425   : > { %v2151_v52 = vpop.f32.mrf.mxu2  ;;  %v2180_v56 = vpop.f32.mrf.mxu3 }
 0x426   : > { %v2152_v59 = vadd.f32 %v2151_v52, %v8515_v19  ;;  %v2181_v20 = vadd.f32 %v2180_v56, %v8518_v29 }
 0x428   : > { %v2284_v38 = vmul.f32 0.2, %v2152_v59  ;;  %v2285_v61 = vmul.f32 0.2, %v2181_v20 }
 0x42a   : > { %v2348_v1 = vmax.f32 %v2152_v59, %v2284_v38  ;;  %v2349_v25 = vmax.f32 %v2181_v20, %v2285_v61  ;;  %v5643_v59 = vld [vmem:[#allocation3 + $0xa0] sm:$0xf]  ;;  %v6934_v20 = vld [vmem:[#allocation3 + $0xac] sm:$0xf0] }
 0x42b   : > { %v5644_v38 = vor.u32 %v6934_v20, %v5643_v59  ;;  %v5771_v61 = vld [vmem:[#allocation3 + $0x1a0] sm:$0xf] }
 0x42c   : > { %v2432_v62 = vmax.f32 %v2431_v18, %v2348_v1  ;;  %v2445_v32 = vmax.f32 %v2444_v0, %v2349_v25  ;;  %v6966_v18 = vld [vmem:[#allocation3 + $0x1ac] sm:$0xf0] }
 0x42d   : > { %v2153_v24 = vpop.f32.mrf.mxu2  ;;  %v2182_v2 = vpop.f32.mrf.mxu3  ;;  %4090 = vmatpush.bf16.msra.mxu2 %v5644_v38  ;;  %v5772_v25 = vor.u32 %v6966_v18, %v5771_v61  ;;  %v5715_v38 = vld [vmem:[#allocation3 + $0x128] sm:$0xf]  ;;  %v6951_v61 = vld [vmem:[#allocation3 + $0x134] sm:$0xf0] }
 0x42e   : > { %v2154_v11 = vadd.f32 %v2153_v24, %v8515_v19  ;;  %v2183_v28 = vadd.f32 %v2182_v2, %v8518_v29  ;;  %v5627_v24 = vld [vmem:[#allocation3 + $0x80] sm:$0xf]  ;;  %v6930_v2 = vld [vmem:[#allocation3 + $0x8c] sm:$0xf0]  ;;  %v5716_v18 = vor.u32 %v6951_v61, %v5715_v38  ;;  %v6291_v38 = vld [vmem:[#allocation3 + $0x5a8] sm:$0xf] }
 0x42f   : > { %v7095_v61 = vld [vmem:[#allocation3 + $0x5b4] sm:$0xf0] }
 0x430   : > { %v2292_v7 = vmul.f32 0.2, %v2154_v11  ;;  %v2293_v3 = vmul.f32 0.2, %v2183_v28 }
 0x432   : > { %v2356_v35 = vmax.f32 %v2154_v11, %v2292_v7  ;;  %v2357_v33 = vmax.f32 %v2183_v28, %v2293_v3  ;;  %v5628_v11 = vor.u32 %v6930_v2, %v5627_v24  ;;  %v5755_v28 = vld [vmem:[#allocation3 + $0x180] sm:$0xf]  ;;  %v6962_v7 = vld [vmem:[#allocation3 + $0x18c] sm:$0xf0]  ;;  %v5571_v24 = vld [vmem:[#allocation3 + $0x8] sm:$0xf] }
 0x433   : > { %v5756_v50 = vor.u32 %v6962_v7, %v5755_v28  ;;  %v6915_v2 = vld [vmem:[#allocation3 + $0x14] sm:$0xf0]  ;;  %v5699_v7 = vld [vmem:[#allocation3 + $0x108] sm:$0xf] }
 0x434   : > { %v2433_v17 = vmax.f32 %v2432_v62, %v2356_v35  ;;  %v2446_v54 = vmax.f32 %v2445_v32, %v2357_v33  ;;  %4091 = vmatpush.bf16.msra.mxu2 %v5628_v11  ;;  %v5612_v33 = vor.u32 %v6926_v15, %v5611_v14  ;;  %v5572_v28 = vor.u32 %v6915_v2, %v5571_v24  ;;  %v7006_v14 = vld [vmem:[#allocation3 + $0x2ec] sm:$0xf0]  ;;  %v6059_v15 = vld [vmem:[#allocation3 + $0x3e0] sm:$0xf] }
 0x435   : > { %v2156_v12 = vpop.f32.mrf.mxu2  ;;  %v2185_v45 = vpop.f32.mrf.mxu3  ;;  %v7026_v2 = vld [vmem:[#allocation3 + $0x38c] sm:$0xf0] }
 0x436   : > { %v2157_v47 = vadd.f32 %v2156_v12, %v8515_v19  ;;  %v2186_v16 = vadd.f32 %v2185_v45, %v8518_v29 }
 0x438   : > { %v2300_v43 = vmul.f32 0.2, %v2157_v47  ;;  %v2301_v63 = vmul.f32 0.2, %v2186_v16  ;;  %4092 = vmatpush.bf16.msra.mxu2 %v5612_v33  ;;  %v7038_v33 = vld [vmem:[#allocation3 + $0x3ec] sm:$0xf0] }
 0x43a   : > { %v2364_v6 = vmax.f32 %v2157_v47, %v2300_v43  ;;  %v2365_v57 = vmax.f32 %v2186_v16, %v2301_v63  ;;  %v5739_v47 = vld [vmem:[#allocation3 + $0x160] sm:$0xf]  ;;  %v6958_v16 = vld [vmem:[#allocation3 + $0x16c] sm:$0xf0] }
 0x43c   : > { %v2434_v55 = vmax.f32 %v2433_v17, %v2364_v6  ;;  %v2447_v58 = vmax.f32 %v2446_v54, %v2365_v57  ;;  %v6927_v17 = vld [vmem:[#allocation3 + $0x74] sm:$0xf0]  ;;  %v5740_v54 = vor.u32 %v6958_v16, %v5739_v47  ;;  %v5747_v57 = vld [vmem:[#allocation3 + $0x168] sm:$0xf]  ;;  %v6060_v16 = vor.u32 %v7038_v33, %v6059_v15  ;;  %v5867_v33 = vld [vmem:[#allocation3 + $0x260] sm:$0xf] }
 0x43d   : > { %v2158_v42 = vpop.f32.mrf.mxu2  ;;  %v2187_v46 = vpop.f32.mrf.mxu3  ;;  %v5620_v6 = vor.u32 %v6927_v17, %v5619_v4  ;;  %v6195_v4 = vld [vmem:[#allocation3 + $0x4e8] sm:$0xf]  ;;  %v7091_v15 = vld [vmem:[#allocation3 + $0x594] sm:$0xf0] }
 0x43e   : > { %v2159_v30 = vadd.f32 %v2158_v42, %v8515_v19  ;;  %v2188_v53 = vadd.f32 %v2187_v46, %v8518_v29  ;;  %v5788_v29 = vor.u32 %v6970_v5, %v5787_v60  ;;  %v5595_v46 = vld [vmem:[#allocation3 + $0x40] sm:$0xf]  ;;  %v6918_v5 = vld [vmem:[#allocation3 + $0x2c] sm:$0xf0] }
 0x43f   : > { %4300 = vmatpush.bf16.msrb.mxu0 %v5620_v6  ;;  %v5915_v6 = vld [vmem:[#allocation3 + $0x2c0] sm:$0xf] }
 0x440   : > { %v2308_v40 = vmul.f32 0.2, %v2159_v30  ;;  %v2309_v23 = vmul.f32 0.2, %v2188_v53  ;;  %4102 = vmatpush.bf16.msra.mxu3 %v5788_v29  ;;  %v6950_v29 = vld [vmem:[#allocation3 + $0x12c] sm:$0xf0] }
 0x442   : > { %v2372_v48 = vmax.f32 %v2159_v30, %v2308_v40  ;;  %v2373_v13 = vmax.f32 %v2188_v53, %v2309_v23  ;;  %v6922_v30 = vld [vmem:[#allocation3 + $0x4c] sm:$0xf0]  ;;  %v5724_v40 = vor.u32 %v6954_v10, %v5723_v36  ;;  %v6923_v23 = vld [vmem:[#allocation3 + $0x54] sm:$0xf0]  ;;  %v7304_v36 = vld [vmem:[%s9314_s6] sm:$0xff] }
 0x443   : > { %v5596_v34 = vor.u32 %v6922_v30, %v5595_v46  ;;  %v5604_v49 = vor.u32 %v6923_v23, %v5603_v9  ;;  %v6043_v46 = vld [vmem:[#allocation3 + $0x3c0] sm:$0xf]  ;;  %v7034_v30 = vld [vmem:[#allocation3 + $0x3cc] sm:$0xf0]  ;;  %v8564_v10 = vperm.slane %v7304_v36, 7 }
 0x444   : > { %v2435_v19 = vmax.f32 %v2434_v55, %v2372_v48  ;;  %v2448_v51 = vmax.f32 %v2447_v58, %v2373_v13  ;;  %4103 = vmatpush.bf16.msra.mxu3 %v5772_v25  ;;  %v6959_v55 = vld [vmem:[#allocation3 + $0x174] sm:$0xf0]  ;;  %v5691_v25 = vld [vmem:[#allocation3 + $0x100] sm:$0xf]  ;;  %v6044_v9 = vor.u32 %v7034_v30, %v6043_v46  ;;  %v6259_v46 = vld [vmem:[#allocation3 + $0x568] sm:$0xf] }
 0x445   : > { %v8539_v52 = vpop.f32.mrf.mxu2  ;;  %v8541_v56 = vpop.f32.mrf.mxu3  ;;  %v5748_v53 = vor.u32 %v6959_v55, %v5747_v57  ;;  %v6955_v48 = vld [vmem:[#allocation3 + $0x154] sm:$0xf0]  ;;  %4093 = vmatpush.bf16.msra.mxu2 %v5596_v34  ;;  %4301 = vmatpush.bf16.msrb.mxu0 %v5604_v49  ;;  %v7002_v57 = vld [vmem:[#allocation3 + $0x2cc] sm:$0xf0]  ;;  %v8559_v55 = vperm.slane %v8368_v22, 6 }
 0x446   : > { %v2436_v26 = vrot.slane %v2435_v19, 4  ;;  %v2449_v21 = vrot.slane %v2448_v51, 4  ;;  %v5732_v60 = vor.u32 %v6955_v48, %v5731_v41  ;;  %v7067_v34 = vld [vmem:[#allocation3 + $0x4d4] sm:$0xf0]  ;;  %v5899_v48 = vld [vmem:[#allocation3 + $0x2a0] sm:$0xf] }
 0x447   : > { %4313 = vmatpush.bf16.msrb.mxu1 %v5748_v53  ;;  %v6179_v53 = vld [vmem:[#allocation3 + $0x4c8] sm:$0xf]  ;;  %v7099_v23 = vld [vmem:[#allocation3 + $0x5d4] sm:$0xf0]  ;;  %v6998_v49 = vld [vmem:[#allocation3 + $0x2ac] sm:$0xf0] }
 0x448   : > { %v2437_v0 = vmax.f32 %v2435_v19, %v2436_v26  ;;  %v2450_v1 = vmax.f32 %v2448_v51, %v2449_v21  ;;  %4104 = vmatpush.bf16.msra.mxu3 %v5756_v50  ;;  %v5707_v19 = vld [vmem:[#allocation3 + $0x120] sm:$0xf]  ;;  %v5580_v51 = vor.u32 %v6918_v5, %v5579_v8  ;;  %v5587_v26 = vld [vmem:[#allocation3 + $0x28] sm:$0xf]  ;;  %v6919_v21 = vld [vmem:[#allocation3 + $0x34] sm:$0xf0]  ;;  %v6180_v22 = vor.u32 %v7067_v34, %v6179_v53 }
 0x449   : > { %v5708_v59 = vor.u32 %v6950_v29, %v5707_v19  ;;  %v5588_v20 = vor.u32 %v6919_v21, %v5587_v26  ;;  %v8568_v8 = vadd.f32 %v8539_v52, %v8559_v55  ;;  %v5900_v5 = vor.u32 %v6998_v49, %v5899_v48  ;;  %v7030_v19 = vld [vmem:[#allocation3 + $0x3ac] sm:$0xf0]  ;;  %v7063_v29 = vld [vmem:[#allocation3 + $0x4b4] sm:$0xf0] }
 0x44a   : > { %v2438_v62 = vrot.slane %v2437_v0, 2  ;;  %v2451_v32 = vrot.slane %v2450_v1, 2  ;;  %4094 = vmatpush.bf16.msra.mxu2 %v5580_v51  ;;  %v6163_v51 = vld [vmem:[#allocation3 + $0x4a8] sm:$0xf]  ;;  %v7087_v30 = vld [vmem:[#allocation3 + $0x574] sm:$0xf0] }
 0x44b   : > { %4314 = vmatpush.bf16.msrb.mxu1 %v5732_v60  ;;  %4302 = vmatpush.bf16.msrb.mxu0 %v5588_v20  ;;  %v6027_v60 = vld [vmem:[#allocation3 + $0x3a0] sm:$0xf]  ;;  %v6164_v20 = vor.u32 %v7063_v29, %v6163_v51  ;;  %v6260_v36 = vor.u32 %v7087_v30, %v6259_v46  ;;  %v6243_v51 = vld [vmem:[#allocation3 + $0x548] sm:$0xf] }
 0x44c   : > { %v2439_v3 = vmax.f32 %v2437_v0, %v2438_v62  ;;  %v2452_v44 = vmax.f32 %v2450_v1, %v2451_v32  ;;  %4105 = vmatpush.bf16.msra.mxu3 %v5740_v54  ;;  %v5563_v0 = vld [vmem:[#allocation3] sm:$0xf]  ;;  %v6914_v1 = vld [vmem:[#allocation3 + $0xc] sm:$0xf0]  ;;  %v7103_v54 = vld [vmem:[#allocation3 + $0x5f4] sm:$0xf0] }
 0x44d   : > { %v8543_v39 = vpop.f32.mrf.mxu2  ;;  %v8545_v35 = vpop.f32.mrf.mxu3  ;;  %v5564_v62 = vor.u32 %v6914_v1, %v5563_v0  ;;  %v6946_v32 = vld [vmem:[#allocation3 + $0x10c] sm:$0xf0]  ;;  %v6292_v0 = vor.u32 %v7095_v61, %v6291_v38  ;;  %v5883_v1 = vld [vmem:[#allocation3 + $0x280] sm:$0xf]  ;;  %v7083_v38 = vld [vmem:[#allocation3 + $0x554] sm:$0xf0] }
 0x44e   : > { %v2440_v12 = vrot.slane %v2439_v3, 1  ;;  %v2453_v45 = vrot.slane %v2452_v44, 1  ;;  %v5692_v11 = vor.u32 %v6946_v32, %v5691_v25  ;;  %v8578_v52 = vadd.f32 %v8543_v39, %v8559_v55  ;;  %v6994_v25 = vld [vmem:[#allocation3 + $0x28c] sm:$0xf0]  ;;  %v6147_v39 = vld [vmem:[#allocation3 + $0x488] sm:$0xf] }
 0x44f   : > { %4315 = vmatpush.bf16.msrb.mxu1 %v5716_v18  ;;  %4095 = vmatpush.bf16.msra.mxu2 %v5564_v62  ;;  %v8574_v18 = vadd.f32 %v8541_v56, %v8564_v10  ;;  %v6011_v62 = vld [vmem:[#allocation3 + $0x380] sm:$0xf]  ;;  %v8581_v32 = vmul.f32 0.2, %v8568_v8  ;;  %v5884_v24 = vor.u32 %v6994_v25, %v5883_v1  ;;  %v8585_v56 = vadd.f32 %v8545_v35, %v8564_v10  ;;  %v6982_v25 = vld [vmem:[#allocation3 + $0x22c] sm:$0xf0] }
 0x450   : > { %v2441_v43 = vmax.f32 %v2439_v3, %v2440_v12  ;;  %v2454_v63 = vmax.f32 %v2452_v44, %v2453_v45  ;;  %4106 = vmatpush.bf16.msra.mxu3 %v5724_v40  ;;  %v6947_v3 = vld [vmem:[#allocation3 + $0x114] sm:$0xf0]  ;;  %v5931_v44 = vld [vmem:[#allocation3 + $0x2e0] sm:$0xf]  ;;  %4303 = vmatpush.bf16.msrb.mxu0 %v5572_v28  ;;  %v6307_v40 = vld [vmem:[#allocation3 + $0x5c8] sm:$0xf] }
 0x451   : > { %v5700_v45 = vor.u32 %v6947_v3, %v5699_v7  ;;  %v5932_v47 = vor.u32 %v7006_v14, %v5931_v44  ;;  %v6308_v41 = vor.u32 %v7099_v23, %v6307_v40  ;;  %v7059_v28 = vld [vmem:[#allocation3 + $0x494] sm:$0xf0]  ;;  %v6275_v7 = vld [vmem:[#allocation3 + $0x588] sm:$0xf]  ;;  %v8588_v3 = vmul.f32 0.2, %v8574_v18 }
 0x452   : > { %v2492_v58 = vrot.slane %v2441_v43, 4  ;;  %v2493_v42 = vrot.slane %v2454_v63, 3  ;;  %v7071_v43 = vld [vmem:[#allocation3 + $0x4f4] sm:$0xf0]  ;;  %v6323_v63 = vld [vmem:[#allocation3 + $0x5e8] sm:$0xf]  ;;  %v6148_v14 = vor.u32 %v7059_v28, %v6147_v39  ;;  %v6276_v35 = vor.u32 %v7091_v15, %v6275_v7 }
 0x453   : > { %v6196_v17 = vor.u32 %v7071_v43, %v6195_v4  ;;  %4114 = vmatpush.bf16.msrb.mxu2 %v5932_v47  ;;  %4316 = vmatpush.bf16.msrb.mxu1 %v5700_v45  ;;  %v8591_v44 = vmul.f32 0.2, %v8578_v52  ;;  %v6990_v47 = vld [vmem:[#allocation3 + $0x26c] sm:$0xf0]  ;;  %v5979_v40 = vld [vmem:[#allocation3 + $0x340] sm:$0xf]  ;;  %v2319_v61 = vmax.f32 %v8574_v18, %v8588_v3 }
 0x454   : > { %v8548_v37 = vsel %vm2502_vm6, %v2492_v58, %v2493_v42  ;;  %4107 = vmatpush.bf16.msra.mxu3 %v5708_v59  ;;  %v6324_v58 = vor.u32 %v7103_v54, %v6323_v63  ;;  %v5916_v42 = vor.u32 %v7002_v57, %v5915_v6  ;;  %v6028_v59 = vor.u32 %v7030_v19, %v6027_v60  ;;  %v7022_v63 = vld [vmem:[#allocation3 + $0x36c] sm:$0xf0]  ;;  %v7055_v54 = vld [vmem:[#allocation3 + $0x474] sm:$0xf0]  ;;  %v5835_v1 = vld [vmem:[#allocation3 + $0x220] sm:$0xf] }
 0x455   : > { %v8550_v13 = vpop.f32.mrf.mxu2  ;;  %v8552_v31 = vpop.f32.mrf.mxu3  ;;  %4348 = vmatpush.bf16.msra.mxu0 %v6196_v17  ;;  %v5868_v43 = vor.u32 %v6990_v47, %v5867_v33  ;;  %v6131_v17 = vld [vmem:[#allocation3 + $0x468] sm:$0xf]  ;;  %v2326_v49 = vmax.f32 %v8578_v52, %v8591_v44  ;;  %v7051_v19 = vld [vmem:[#allocation3 + $0x454] sm:$0xf0] }
 0x456   : > { %v8595_v45 = vadd.f32 %v8550_v13, %v8559_v55  ;;  %v8599_v4 = vadd.f32 %v8552_v31, %v8564_v10  ;;  %v2263_v13 = vmul.f32 0.2, %v8585_v56 }
 0x457   : > { %4361 = vmatpush.bf16.msra.mxu1 %v6324_v58  ;;  %4115 = vmatpush.bf16.msrb.mxu2 %v5916_v42  ;;  %v6132_v42 = vor.u32 %v7055_v54, %v6131_v17 }
 0x458   : > { %4108 = vmatpush.bf16.msra.mxu3 %v5692_v11  ;;  %v6012_v11 = vor.u32 %v7026_v2, %v6011_v62  ;;  %v2270_v53 = vmul.f32 0.2, %v8595_v45  ;;  %v8612_v23 = vmul.f32 0.2, %v8599_v4  ;;  %v2327_v29 = vmax.f32 %v8585_v56, %v2263_v13  ;;  %v5963_v62 = vld [vmem:[#allocation3 + $0x320] sm:$0xf] }
 0x459   : > { %4349 = vmatpush.bf16.msra.mxu0 %v6180_v22  ;;  %v6986_v22 = vld [vmem:[#allocation3 + $0x24c] sm:$0xf0] }
 0x45a   : > { %v2334_v52 = vmax.f32 %v8595_v45, %v2270_v53  ;;  %v2335_v39 = vmax.f32 %v8599_v4, %v8612_v23  ;;  %v7047_v45 = vld [vmem:[#allocation3 + $0x434] sm:$0xf0]  ;;  %v2468_v15 = vmax.f32 %v2319_v61, %v2327_v29 }
 0x45b   : > { %4362 = vmatpush.bf16.msra.mxu1 %v6308_v41  ;;  %4116 = vmatpush.bf16.msrb.mxu2 %v5900_v5  ;;  %v6115_v5 = vld [vmem:[#allocation3 + $0x448] sm:$0xf]  ;;  %v7075_v23 = vld [vmem:[#allocation3 + $0x514] sm:$0xf0] }
 0x45c   : > { %4127 = vmatpush.bf16.msrb.mxu3 %v6060_v16  ;;  %v5995_v16 = vld [vmem:[#allocation3 + $0x360] sm:$0xf] }
 0x45d   : > { %v8554_v50 = vpop.f32.mrf.mxu2  ;;  %v8556_v12 = vpop.f32.mrf.mxu3  ;;  %4350 = vmatpush.bf16.msra.mxu0 %v6164_v20  ;;  %v5996_v58 = vor.u32 %v7022_v63, %v5995_v16  ;;  %v6116_v20 = vor.u32 %v7051_v19, %v6115_v5  ;;  %v7079_v16 = vld [vmem:[#allocation3 + $0x534] sm:$0xf0]  ;;  %v6978_v63 = vld [vmem:[#allocation3 + $0x20c] sm:$0xf0] }
 0x45e   : > { %v8605_v31 = vadd.f32 %v8554_v50, %v8559_v55  ;;  %v8609_v34 = vadd.f32 %v8556_v12, %v8564_v10  ;;  %v7018_v50 = vld [vmem:[#allocation3 + $0x34c] sm:$0xf0] }
 0x45f   : > { %4363 = vmatpush.bf16.msra.mxu1 %v6292_v0  ;;  %4117 = vmatpush.bf16.msrb.mxu2 %v5884_v24  ;;  %v5980_v60 = vor.u32 %v7018_v50, %v5979_v40  ;;  %v6244_v0 = vor.u32 %v7083_v38, %v6243_v51  ;;  %v6211_v40 = vld [vmem:[#allocation3 + $0x508] sm:$0xf] }
 0x460   : > { %4128 = vmatpush.bf16.msrb.mxu3 %v6044_v9  ;;  %v5851_v9 = vld [vmem:[#allocation3 + $0x240] sm:$0xf] }
 0x461   : > { %4351 = vmatpush.bf16.msra.mxu0 %v6148_v14  ;;  %v5852_v48 = vor.u32 %v6986_v22, %v5851_v9  ;;  %v6227_v14 = vld [vmem:[#allocation3 + $0x528] sm:$0xf]  ;;  %v2469_v9 = vmax.f32 %v2468_v15, %v2335_v39 }
 0x462   : > { %v6228_v13 = vor.u32 %v7079_v16, %v6227_v14 }
 0x463   : > { %4364 = vmatpush.bf16.msra.mxu1 %v6276_v35  ;;  %4118 = vmatpush.bf16.msrb.mxu2 %v5868_v43  ;;  %v5819_v43 = vld [vmem:[#allocation3 + $0x200] sm:$0xf] }
 0x464   : > { %4129 = vmatpush.bf16.msrb.mxu3 %v6028_v59  ;;  %v8628_v59 = vmul.f32 0.2, %v8609_v34  ;;  %v5820_v30 = vor.u32 %v6978_v63, %v5819_v43  ;;  %v7070_v43 = vld [vmem:[#allocation3 + $0x4ec] sm:$0xf0]  ;;  %v6315_v63 = vld [vmem:[#allocation3 + $0x5e0] sm:$0xf] }
 0x465   : > { %v2209_v26 = vpop.f32.mrf.mxu2  ;;  %v8570_v21 = vpop.f32.mrf.mxu3  ;;  %4352 = vmatpush.bf16.msra.mxu0 %v6132_v42 }
 0x466   : > { %v8615_v41 = vadd.f32 %v2209_v26, %v8559_v55  ;;  %v8621_v12 = vadd.f32 %v8570_v21, %v8564_v10  ;;  %v8625_v26 = vmul.f32 0.2, %v8605_v31  ;;  %v2318_v21 = vmax.f32 %v8568_v8, %v8581_v32  ;;  %v7014_v32 = vld [vmem:[#allocation3 + $0x32c] sm:$0xf0] }
 0x467   : > { %4365 = vmatpush.bf16.msra.mxu1 %v6260_v36  ;;  %4119 = vmatpush.bf16.msrb.mxu2 %v5852_v48  ;;  %v5836_v8 = vor.u32 %v6982_v25, %v5835_v1  ;;  %v5964_v44 = vor.u32 %v7014_v32, %v5963_v62  ;;  %v2343_v54 = vmax.f32 %v8609_v34, %v8628_v59  ;;  %v7043_v36 = vld [vmem:[#allocation3 + $0x414] sm:$0xf0] }
 0x468   : > { %4130 = vmatpush.bf16.msrb.mxu3 %v6012_v11  ;;  %v2286_v24 = vmul.f32 0.2, %v8615_v41  ;;  %v6099_v11 = vld [vmem:[#allocation3 + $0x428] sm:$0xf]  ;;  %v2455_v18 = vmax.f32 %v2318_v21, %v2326_v49  ;;  %v2287_v28 = vmul.f32 0.2, %v8621_v12  ;;  %v2342_v4 = vmax.f32 %v8605_v31, %v8625_v26 }
 0x469   : > { %4353 = vmatpush.bf16.msra.mxu0 %v6116_v20  ;;  %v6100_v47 = vor.u32 %v7047_v45, %v6099_v11  ;;  %v6212_v49 = vor.u32 %v7075_v23, %v6211_v40  ;;  %v2470_v5 = vmax.f32 %v2469_v9, %v2343_v54  ;;  %v6941_v54 = vld [vmem:[#allocation3 + $0xec] sm:$0xf]  ;;  %v7066_v9 = vld [vmem:[#allocation3 + $0x4cc] sm:$0xf0]  ;;  %v5669_v23 = vld [vmem:[#allocation3 + $0xd8] sm:$0xf0] }
 0x46a   : > { %v2456_v17 = vmax.f32 %v2455_v18, %v2334_v52  ;;  %v2350_v22 = vmax.f32 %v8615_v41, %v2286_v24  ;;  %v2351_v31 = vmax.f32 %v8621_v12, %v2287_v28  ;;  %v6937_v40 = vld [vmem:[#allocation3 + $0xcc] sm:$0xf] }
 0x46b   : > { %4366 = vmatpush.bf16.msra.mxu1 %v6244_v0  ;;  %4120 = vmatpush.bf16.msrb.mxu2 %v5836_v8 }
 0x46c   : > { %4131 = vmatpush.bf16.msrb.mxu3 %v5996_v58  ;;  %v6083_v58 = vld [vmem:[#allocation3 + $0x408] sm:$0xf]  ;;  %v2471_v41 = vmax.f32 %v2470_v5, %v2351_v31  ;;  %v7098_v31 = vld [vmem:[#allocation3 + $0x5cc] sm:$0xf0]  ;;  %v6155_v5 = vld [vmem:[#allocation3 + $0x4a0] sm:$0xf] }
 0x46d   : > { %v2211_v6 = vpop.f32.mrf.mxu2  ;;  %v2240_v57 = vpop.f32.mrf.mxu3  ;;  %4354 = vmatpush.bf16.msra.mxu0 %v6100_v47  ;;  %v6084_v34 = vor.u32 %v7043_v36, %v6083_v58  ;;  %v6187_v47 = vld [vmem:[#allocation3 + $0x4e0] sm:$0xf]  ;;  %v6973_v58 = vld [vmem:[#allocation3 + $0x1ec] sm:$0xf] }
 0x46e   : > { %v8637_v2 = vadd.f32 %v2211_v6, %v8559_v55  ;;  %v8640_v56 = vadd.f32 %v2240_v57, %v8564_v10  ;;  %v5947_v6 = vld [vmem:[#allocation3 + $0x300] sm:$0xf]  ;;  %v7010_v57 = vld [vmem:[#allocation3 + $0x30c] sm:$0xf0] }
 0x46f   : > { %v5948_v53 = vor.u32 %v7010_v57, %v5947_v6  ;;  %4367 = vmatpush.bf16.msra.mxu1 %v6228_v13  ;;  %4121 = vmatpush.bf16.msrb.mxu2 %v5820_v30  ;;  %v5685_v13 = vld [vmem:[#allocation3 + $0xf8] sm:$0xf0] }
 0x470   : > { %4132 = vmatpush.bf16.msrb.mxu3 %v5980_v60  ;;  %v2294_v42 = vmul.f32 0.2, %v8637_v2  ;;  %v2295_v46 = vmul.f32 0.2, %v8640_v56  ;;  %v2457_v60 = vmax.f32 %v2456_v17, %v2342_v4  ;;  %v7102_v17 = vld [vmem:[#allocation3 + $0x5ec] sm:$0xf0] }
 0x471   : > { %4355 = vmatpush.bf16.msra.mxu0 %v6084_v34  ;;  %v6316_v30 = vor.u32 %v7102_v17, %v6315_v63  ;;  %v6107_v17 = vld [vmem:[#allocation3 + $0x440] sm:$0xf] }
 0x472   : > { %v2358_v19 = vmax.f32 %v8637_v2, %v2294_v42  ;;  %v2359_v51 = vmax.f32 %v8640_v56, %v2295_v46  ;;  %v2458_v29 = vmax.f32 %v2457_v60, %v2350_v22  ;;  %v5813_v42 = vld [vmem:[#allocation3 + $0x1f8] sm:$0xf0]  ;;  %v6188_v46 = vor.u32 %v7070_v43, %v6187_v47  ;;  %v6299_v22 = vld [vmem:[#allocation3 + $0x5c0] sm:$0xf]  ;;  %v6957_v47 = vld [vmem:[#allocation3 + $0x16c] sm:$0xf] }
 0x473   : > { %4368 = vmatpush.bf16.msra.mxu1 %v6212_v49  ;;  %v5816_v34 = vor.u32 %v6973_v58, %v5813_v42  ;;  %v6300_v60 = vor.u32 %v7098_v31, %v6299_v22  ;;  %v7082_v58 = vld [vmem:[#allocation3 + $0x54c] sm:$0xf0]  ;;  %v5605_v22 = vld [vmem:[#allocation3 + $0x58] sm:$0xf0]  ;;  %v6953_v31 = vld [vmem:[#allocation3 + $0x14c] sm:$0xf] }
 0x474   : > { %4133 = vmatpush.bf16.msrb.mxu3 %v5964_v44  ;;  %v2459_v61 = vmax.f32 %v2458_v29, %v2358_v19  ;;  %v2472_v52 = vmax.f32 %v2471_v41, %v2359_v51  ;;  %v7062_v19 = vld [vmem:[#allocation3 + $0x4ac] sm:$0xf0]  ;;  %v6283_v51 = vld [vmem:[#allocation3 + $0x5a0] sm:$0xf]  ;;  %v5672_v41 = vor.u32 %v6937_v40, %v5669_v23 }
 0x475   : > { %v2214_v7 = vpop.f32.mrf.mxu2  ;;  %v2243_v3 = vpop.f32.mrf.mxu3  ;;  %v7094_v29 = vld [vmem:[#allocation3 + $0x5ac] sm:$0xf0]  ;;  %v6091_v23 = vld [vmem:[#allocation3 + $0x420] sm:$0xf] }
 0x476   : > { %v2215_v35 = vadd.f32 %v2214_v7, %v8559_v55  ;;  %v2244_v33 = vadd.f32 %v2243_v3, %v8564_v10 }
 0x478   : > { %v2302_v48 = vmul.f32 0.2, %v2215_v35  ;;  %v2303_v50 = vmul.f32 0.2, %v2244_v33  ;;  %4134 = vmatpush.bf16.msrb.mxu3 %v5948_v53  ;;  %v6171_v53 = vld [vmem:[#allocation3 + $0x4c0] sm:$0xf] }
 0x479   : > { %v6172_v49 = vor.u32 %v7066_v9, %v6171_v53 }
 0x47a   : > { %v2366_v59 = vmax.f32 %v2215_v35, %v2302_v48  ;;  %v2367_v20 = vmax.f32 %v2244_v33, %v2303_v50  ;;  %v6969_v48 = vld [vmem:[#allocation3 + $0x1cc] sm:$0xf]  ;;  %v5797_v50 = vld [vmem:[#allocation3 + $0x1d8] sm:$0xf0] }
 0x47c   : > { %v2460_v25 = vmax.f32 %v2459_v61, %v2366_v59  ;;  %v2473_v62 = vmax.f32 %v2472_v52, %v2367_v20  ;;  %v5653_v59 = vld [vmem:[#allocation3 + $0xb8] sm:$0xf0]  ;;  %v6965_v20 = vld [vmem:[#allocation3 + $0x1ac] sm:$0xf]  ;;  %v6284_v61 = vor.u32 %v7094_v29, %v6283_v51  ;;  %v6139_v52 = vld [vmem:[#allocation3 + $0x480] sm:$0xf] }
 0x47d   : > { %v2216_v26 = vpop.f32.mrf.mxu2  ;;  %v2245_v12 = vpop.f32.mrf.mxu3  ;;  %v5589_v51 = vld [vmem:[#allocation3 + $0x38] sm:$0xf0]  ;;  %v6949_v29 = vld [vmem:[#allocation3 + $0x12c] sm:$0xf] }
 0x47e   : > { %v2217_v38 = vadd.f32 %v2216_v26, %v8559_v55  ;;  %v2246_v21 = vadd.f32 %v2245_v12, %v8564_v10  ;;  %v5800_v26 = vor.u32 %v6969_v48, %v5797_v50  ;;  %v6933_v12 = vld [vmem:[#allocation3 + $0xac] sm:$0xf]  ;;  %v7046_v48 = vld [vmem:[#allocation3 + $0x42c] sm:$0xf0]  ;;  %v6219_v50 = vld [vmem:[#allocation3 + $0x520] sm:$0xf] }
 0x480   : > { %v2310_v0 = vmul.f32 0.2, %v2217_v38  ;;  %v2311_v1 = vmul.f32 0.2, %v2246_v21 }
 0x482   : > { %v2374_v24 = vmax.f32 %v2217_v38, %v2310_v0  ;;  %v2375_v2 = vmax.f32 %v2246_v21, %v2311_v1  ;;  %v5781_v38 = vld [vmem:[#allocation3 + $0x1b8] sm:$0xf0]  ;;  %v6156_v21 = vor.u32 %v7062_v19, %v6155_v5  ;;  %v7058_v0 = vld [vmem:[#allocation3 + $0x48c] sm:$0xf0]  ;;  %v6267_v1 = vld [vmem:[#allocation3 + $0x580] sm:$0xf] }
 0x483   : > { %v6917_v19 = vld [vmem:[#allocation3 + $0x2c] sm:$0xf] }
 0x484   : > { %v2461_v56 = vmax.f32 %v2460_v25, %v2374_v24  ;;  %v2474_v8 = vmax.f32 %v2473_v62, %v2375_v2  ;;  %v7090_v25 = vld [vmem:[#allocation3 + $0x58c] sm:$0xf0]  ;;  %v5656_v62 = vor.u32 %v6933_v12, %v5653_v59  ;;  %v5784_v24 = vor.u32 %v6965_v20, %v5781_v38  ;;  %v6929_v2 = vld [vmem:[#allocation3 + $0x8c] sm:$0xf]  ;;  %v6203_v38 = vld [vmem:[#allocation3 + $0x500] sm:$0xf] }
 0x485   : > { %v6092_v12 = vor.u32 %v7046_v48, %v6091_v23  ;;  %v7042_v20 = vld [vmem:[#allocation3 + $0x40c] sm:$0xf0]  ;;  %v6293_v23 = vld [vmem:[#allocation3 + $0x5b8] sm:$0xf0] }
 0x486   : > { %v2462_v32 = vrot.slane %v2461_v56, 4  ;;  %v2475_v11 = vrot.slane %v2474_v8, 4 }
 0x488   : > { %v2463_v18 = vmax.f32 %v2461_v56, %v2462_v32  ;;  %v2476_v39 = vmax.f32 %v2474_v8, %v2475_v11  ;;  %v5637_v56 = vld [vmem:[#allocation3 + $0x98] sm:$0xf0]  ;;  %v6961_v8 = vld [vmem:[#allocation3 + $0x18c] sm:$0xf]  ;;  %v6140_v11 = vor.u32 %v7058_v0, %v6139_v52  ;;  %v6443_v0 = vld [vmem:[#allocation3 + $0x6e0] sm:$0xf] }
 0x489   : > { %v5765_v32 = vld [vmem:[#allocation3 + $0x198] sm:$0xf0] }
 0x48a   : > { %v2464_v28 = vrot.slane %v2463_v18, 2  ;;  %v2477_v7 = vrot.slane %v2476_v39, 2  ;;  %v5573_v52 = vld [vmem:[#allocation3 + $0x18] sm:$0xf0] }
 0x48c   : > { %v2465_v55 = vmax.f32 %v2463_v18, %v2464_v28  ;;  %v2478_v3 = vmax.f32 %v2476_v39, %v2477_v7  ;;  %v6268_v18 = vor.u32 %v7090_v25, %v6267_v1  ;;  %v6123_v39 = vld [vmem:[#allocation3 + $0x460] sm:$0xf]  ;;  %v7054_v28 = vld [vmem:[#allocation3 + $0x46c] sm:$0xf0]  ;;  %v5592_v1 = vor.u32 %v6917_v19, %v5589_v51 }
 0x48d   : > { %v6124_v43 = vor.u32 %v7054_v28, %v6123_v39  ;;  %v6197_v39 = vld [vmem:[#allocation3 + $0x4f8] sm:$0xf0]  ;;  %v7101_v28 = vld [vmem:[#allocation3 + $0x5ec] sm:$0xf]  ;;  %v6523_v51 = vld [vmem:[#allocation3 + $0x780] sm:$0xf] }
 0x48e   : > { %v2466_v10 = vrot.slane %v2465_v55, 1  ;;  %v2479_v44 = vrot.slane %v2478_v3, 1 }
 0x490   : > { %v2467_v45 = vmax.f32 %v2465_v55, %v2466_v10  ;;  %v2480_v14 = vmax.f32 %v2478_v3, %v2479_v44  ;;  %v6251_v3 = vld [vmem:[#allocation3 + $0x560] sm:$0xf]  ;;  %v7086_v10 = vld [vmem:[#allocation3 + $0x56c] sm:$0xf0]  ;;  %v5640_v44 = vor.u32 %v6929_v2, %v5637_v56  ;;  %v6945_v56 = vld [vmem:[#allocation3 + $0x10c] sm:$0xf] }
 0x491   : > { %v6252_v63 = vor.u32 %v7086_v10, %v6251_v3  ;;  %v7166_v2 = vld [vmem:[#allocation3 + $0x7ec] sm:$0xf0] }
 0x492   : > { %v2494_v15 = vrot.slane %v2467_v45, 2  ;;  %v2495_v35 = vrot.slane %v2480_v14, 1  ;;  %v5768_v45 = vor.u32 %v6961_v8, %v5765_v32  ;;  %v6925_v14 = vld [vmem:[#allocation3 + $0x6c] sm:$0xf]  ;;  %v5701_v8 = vld [vmem:[#allocation3 + $0x118] sm:$0xf0] }
 0x493   : > { %v7069_v32 = vld [vmem:[#allocation3 + $0x4ec] sm:$0xf] }
 0x494   : > { %v2505_v33 = vsel %vm2504_vm7, %v2494_v15, %v2495_v35  ;;  %v5621_v15 = vld [vmem:[#allocation3 + $0x78] sm:$0xf0] }
 0x495   : > { %v2507_v16 = vsel %vm2506_vm8, %v8548_v37, %v2505_v33  ;;  %v5624_v42 = vor.u32 %v6925_v14, %v5621_v15  ;;  %v7130_v14 = vld [vmem:[#allocation3 + $0x6cc] sm:$0xf0]  ;;  %v6200_v15 = vor.u32 %v7069_v32, %v6197_v39 }
 0x496   : > { %v8661_v4 = vsel %vm2508_vm9, %v8525_v27, %v2507_v16  ;;  %v5688_v27 = vor.u32 %v6941_v54, %v5685_v13  ;;  %v5749_v16 = vld [vmem:[#allocation3 + $0x178] sm:$0xf0] }
 0x497   : > { %v2774_v6 = vperm.slane %v8661_v4, 0  ;;  %v2775_v57 = vperm.slane %v8661_v4, 1  ;;  %v2776_v7 = vperm.slane %v8661_v4, 2  ;;  %v2777_v55 = vperm.slane %v8661_v4, 3 }
 0x498   : > { %v2778_v35 = vperm.slane %v8661_v4, 4  ;;  %v2779_v33 = vperm.slane %v8661_v4, 5 }
 0x499   : > { %v8665_v36 = vpack.c.bf16 %v2774_v6, %v2774_v6  ;;  %v8667_v37 = vpack.c.bf16 %v2775_v57, %v2775_v57  ;;  %v8677_v54 = vpack.c.bf16 %v2776_v7, %v2776_v7  ;;  %v8679_v13 = vpack.c.bf16 %v2777_v55, %v2777_v55  ;;  %v7050_v6 = vld [vmem:[#allocation3 + $0x44c] sm:$0xf0]  ;;  %v6235_v57 = vld [vmem:[#allocation3 + $0x540] sm:$0xf]  ;;  %v6325_v7 = vld [vmem:[#allocation3 + $0x5f8] sm:$0xf0] }
 0x49a   : > { %v8683_v53 = vpack.c.bf16 %v2778_v35, %v2778_v35  ;;  %v8685_v9 = vpack.c.bf16 %v2779_v33, %v2779_v33  ;;  %v6236_v40 = vor.u32 %v7082_v58, %v6235_v57  ;;  %v6328_v35 = vor.u32 %v7101_v28, %v6325_v7  ;;  %v6555_v33 = vld [vmem:[#allocation3 + $0x7c0] sm:$0xf] }
 0x49b   : > { %4096 = vmatmul.bf16.vlgmr.msra.gmra.mxu2 %v8665_v36  ;;  %4109 = vmatmul.bf16.vlgmr.msra.gmra.mxu3 %v8667_v37  ;;  %v6411_v58 = vld [vmem:[#allocation3 + $0x6a0] sm:$0xf] }
 0x49c   : > { %4140 = vmatpush.bf16.msra.mxu2 %v6188_v46  ;;  %4153 = vmatpush.bf16.msra.mxu3 %v6316_v30  ;;  %v5752_v46 = vor.u32 %v6957_v47, %v5749_v16  ;;  %v6921_v30 = vld [vmem:[#allocation3 + $0x4c] sm:$0xf]  ;;  %v7162_v47 = vld [vmem:[#allocation3 + $0x7cc] sm:$0xf0]  ;;  %v6491_v7 = vld [vmem:[#allocation3 + $0x740] sm:$0xf] }
 0x49d   : > { %4304 = vmatmul.bf16.vlgmr.msrb.gmra.mxu0 %v8665_v36  ;;  %4317 = vmatmul.bf16.vlgmr.msrb.gmra.mxu1 %v8667_v37  ;;  %v7065_v16 = vld [vmem:[#allocation3 + $0x4cc] sm:$0xf]  ;;  %v6556_v57 = vor.u32 %v7162_v47, %v6555_v33  ;;  %v7110_v33 = vld [vmem:[#allocation3 + $0x62c] sm:$0xf0] }
 0x49e   : > { %4400 = vmatpush.bf16.msrb.mxu0 %v5688_v27  ;;  %4413 = vmatpush.bf16.msrb.mxu1 %v5816_v34  ;;  %v5733_v27 = vld [vmem:[#allocation3 + $0x158] sm:$0xf0]  ;;  %v6108_v34 = vor.u32 %v7050_v6, %v6107_v17 }
 0x49f   : > { %v5736_v5 = vor.u32 %v6953_v31, %v5733_v27  ;;  %v6309_v17 = vld [vmem:[#allocation3 + $0x5d8] sm:$0xf0]  ;;  %v7158_v31 = vld [vmem:[#allocation3 + $0x7ac] sm:$0xf0]  ;;  %v7061_v27 = vld [vmem:[#allocation3 + $0x4ac] sm:$0xf] }
 0x4a0   : > { %4141 = vmatpush.bf16.msra.mxu2 %v6172_v49  ;;  %4154 = vmatpush.bf16.msra.mxu3 %v6300_v60  ;;  %v7078_v49 = vld [vmem:[#allocation3 + $0x52c] sm:$0xf0]  ;;  %v5608_v60 = vor.u32 %v6921_v30, %v5605_v22  ;;  %v6539_v22 = vld [vmem:[#allocation3 + $0x7a0] sm:$0xf] }
 0x4a1   : > { %v6220_v59 = vor.u32 %v7078_v49, %v6219_v50  ;;  %v6540_v50 = vor.u32 %v7158_v31, %v6539_v22  ;;  %v6395_v49 = vld [vmem:[#allocation3 + $0x680] sm:$0xf]  ;;  %v7106_v22 = vld [vmem:[#allocation3 + $0x60c] sm:$0xf0] }
 0x4a2   : > { %4401 = vmatpush.bf16.msrb.mxu0 %v5672_v41  ;;  %4414 = vmatpush.bf16.msrb.mxu1 %v5800_v26  ;;  %v5717_v41 = vld [vmem:[#allocation3 + $0x138] sm:$0xf0]  ;;  %v6075_v26 = vld [vmem:[#allocation3 + $0x400] sm:$0xf] }
 0x4a3   : > { %v5720_v25 = vor.u32 %v6949_v29, %v5717_v41  ;;  %v7154_v29 = vld [vmem:[#allocation3 + $0x78c] sm:$0xf0]  ;;  %v7057_v41 = vld [vmem:[#allocation3 + $0x48c] sm:$0xf]  ;;  %v6459_v31 = vld [vmem:[#allocation3 + $0x700] sm:$0xf] }
 0x4a4   : > { %4142 = vmatpush.bf16.msra.mxu2 %v6156_v21  ;;  %4155 = vmatpush.bf16.msra.mxu3 %v6284_v61  ;;  %v7074_v21 = vld [vmem:[#allocation3 + $0x50c] sm:$0xf0]  ;;  %v6913_v61 = vld [vmem:[#allocation3 + $0xc] sm:$0xf] }
 0x4a5   : > { %v5576_v10 = vor.u32 %v6913_v61, %v5573_v52  ;;  %v7118_v61 = vld [vmem:[#allocation3 + $0x66c] sm:$0xf0] }
 0x4a6   : > { %4402 = vmatpush.bf16.msrb.mxu0 %v5656_v62  ;;  %4415 = vmatpush.bf16.msrb.mxu1 %v5784_v24  ;;  %v7134_v62 = vld [vmem:[#allocation3 + $0x6ec] sm:$0xf0]  ;;  %v6571_v24 = vld [vmem:[#allocation3 + $0x7e0] sm:$0xf] }
 0x4a7   : > { %v6444_v55 = vor.u32 %v7134_v62, %v6443_v0  ;;  %v6572_v3 = vor.u32 %v7166_v2, %v6571_v24  ;;  %v7053_v62 = vld [vmem:[#allocation3 + $0x46c] sm:$0xf]  ;;  %v6133_v24 = vld [vmem:[#allocation3 + $0x478] sm:$0xf0] }
 0x4a8   : > { %4143 = vmatpush.bf16.msra.mxu2 %v6140_v11  ;;  %4156 = vmatpush.bf16.msra.mxu3 %v6268_v18  ;;  %v6076_v11 = vor.u32 %v7042_v20, %v6075_v26  ;;  %v6204_v18 = vor.u32 %v7074_v21, %v6203_v38  ;;  %v6149_v26 = vld [vmem:[#allocation3 + $0x498] sm:$0xf0]  ;;  %v6524_v38 = vor.u32 %v7154_v29, %v6523_v51  ;;  %v6379_v21 = vld [vmem:[#allocation3 + $0x660] sm:$0xf]  ;;  %v7085_v2 = vld [vmem:[#allocation3 + $0x56c] sm:$0xf] }
 0x4a9   : > { %v6152_v52 = vor.u32 %v7057_v41, %v6149_v26  ;;  %v6136_v39 = vor.u32 %v7053_v62, %v6133_v24  ;;  %v5805_v51 = vld [vmem:[#allocation3 + $0x1f0] sm:$0xf0] }
 0x4aa   : > { %4403 = vmatpush.bf16.msrb.mxu0 %v5640_v44  ;;  %4416 = vmatpush.bf16.msrb.mxu1 %v5768_v45  ;;  %v5704_v44 = vor.u32 %v6945_v56, %v5701_v8  ;;  %v6427_v45 = vld [vmem:[#allocation3 + $0x6c0] sm:$0xf]  ;;  %v6261_v56 = vld [vmem:[#allocation3 + $0x578] sm:$0xf0]  ;;  %v6380_v8 = vor.u32 %v7118_v61, %v6379_v21  ;;  %v6936_v61 = vld [vmem:[#allocation3 + $0xc4] sm:$0xf] }
 0x4ab   : > { %4122 = vmatmul.bf16.vlgmr.msrb.gmra.mxu2 %v8677_v54  ;;  %4135 = vmatmul.bf16.vlgmr.msrb.gmra.mxu3 %v8679_v13  ;;  %v6428_v6 = vor.u32 %v7130_v14, %v6427_v45  ;;  %v6264_v28 = vor.u32 %v7085_v2, %v6261_v56  ;;  %v6245_v45 = vld [vmem:[#allocation3 + $0x558] sm:$0xf0]  ;;  %v6932_v56 = vld [vmem:[#allocation3 + $0xa4] sm:$0xf] }
 0x4ac   : > { %4144 = vmatpush.bf16.msra.mxu2 %v6124_v43  ;;  %4157 = vmatpush.bf16.msra.mxu3 %v6252_v63  ;;  %v6181_v43 = vld [vmem:[#allocation3 + $0x4d8] sm:$0xf0]  ;;  %v7097_v63 = vld [vmem:[#allocation3 + $0x5cc] sm:$0xf] }
 0x4ad   : > { %4356 = vmatmul.bf16.vlgmr.msra.gmra.mxu0 %v8683_v53  ;;  %4369 = vmatmul.bf16.vlgmr.msra.gmra.mxu1 %v8685_v9  ;;  %v6312_v30 = vor.u32 %v7097_v63, %v6309_v17  ;;  %v7142_v63 = vld [vmem:[#allocation3 + $0x72c] sm:$0xf0]  ;;  %v7045_v17 = vld [vmem:[#allocation3 + $0x42c] sm:$0xf] }
 0x4ae   : > { %4404 = vmatpush.bf16.msrb.mxu0 %v5624_v42  ;;  %4417 = vmatpush.bf16.msrb.mxu1 %v5752_v46  ;;  %v7126_v42 = vld [vmem:[#allocation3 + $0x6ac] sm:$0xf0]  ;;  %v6184_v46 = vor.u32 %v7065_v16, %v6181_v43  ;;  %v6475_v43 = vld [vmem:[#allocation3 + $0x720] sm:$0xf] }
 0x4af   : > { %v6412_v48 = vor.u32 %v7126_v42, %v6411_v58  ;;  %v6229_v58 = vld [vmem:[#allocation3 + $0x538] sm:$0xf0] }
 0x4b0   : > { %4145 = vmatpush.bf16.msra.mxu2 %v6108_v34  ;;  %4158 = vmatpush.bf16.msra.mxu3 %v6236_v40  ;;  %v6165_v34 = vld [vmem:[#allocation3 + $0x4b8] sm:$0xf0]  ;;  %v7093_v40 = vld [vmem:[#allocation3 + $0x5ac] sm:$0xf] }
 0x4b1   : > { %v6296_v19 = vor.u32 %v7093_v40, %v6293_v23  ;;  %v7138_v40 = vld [vmem:[#allocation3 + $0x70c] sm:$0xf0]  ;;  %v7041_v23 = vld [vmem:[#allocation3 + $0x40c] sm:$0xf] }
 0x4b2   : > { %4405 = vmatpush.bf16.msrb.mxu0 %v5608_v60  ;;  %4418 = vmatpush.bf16.msrb.mxu1 %v5736_v5  ;;  %v7122_v60 = vld [vmem:[#allocation3 + $0x68c] sm:$0xf0]  ;;  %v6168_v5 = vor.u32 %v7061_v27, %v6165_v34  ;;  %v6460_v41 = vor.u32 %v7138_v40, %v6459_v31  ;;  %v6912_v31 = vld [vmem:[#allocation3 + $0x4] sm:$0xf]  ;;  %v5693_v40 = vld [vmem:[#allocation3 + $0x110] sm:$0xf0] }
 0x4b3   : > { %v6396_v20 = vor.u32 %v7122_v60, %v6395_v49  ;;  %v6213_v49 = vld [vmem:[#allocation3 + $0x518] sm:$0xf0]  ;;  %v6940_v60 = vld [vmem:[#allocation3 + $0xe4] sm:$0xf] }
 0x4b4   : > { %4146 = vmatpush.bf16.msra.mxu2 %v6092_v12  ;;  %4159 = vmatpush.bf16.msra.mxu3 %v6220_v59  ;;  %v7089_v12 = vld [vmem:[#allocation3 + $0x58c] sm:$0xf]  ;;  %v6277_v59 = vld [vmem:[#allocation3 + $0x598] sm:$0xf0] }
 0x4b5   : > { %v6280_v0 = vor.u32 %v7089_v12, %v6277_v59  ;;  %v2780_v59 = vperm.slane %v8661_v4, 6 }
 0x4b6   : > { %4406 = vmatpush.bf16.msrb.mxu0 %v5592_v1  ;;  %4419 = vmatpush.bf16.msrb.mxu1 %v5720_v25  ;;  %v6507_v1 = vld [vmem:[#allocation3 + $0x760] sm:$0xf]  ;;  %v7150_v25 = vld [vmem:[#allocation3 + $0x76c] sm:$0xf0] }
 0x4b7   : > { %v6508_v32 = vor.u32 %v7150_v25, %v6507_v1  ;;  %v5789_v1 = vld [vmem:[#allocation3 + $0x1d0] sm:$0xf0]  ;;  %v8695_v25 = vpack.c.bf16 %v2780_v59, %v2780_v59 }
 0x4b8   : > { %4147 = vmatpush.bf16.msra.mxu2 %v6076_v11  ;;  %4160 = vmatpush.bf16.msra.mxu3 %v6204_v18  ;;  %v6363_v11 = vld [vmem:[#allocation3 + $0x640] sm:$0xf]  ;;  %v7114_v18 = vld [vmem:[#allocation3 + $0x64c] sm:$0xf0] }
 0x4b9   : > { %v6364_v14 = vor.u32 %v7114_v18, %v6363_v11 }
 0x4ba   : > { %4407 = vmatpush.bf16.msrb.mxu0 %v5576_v10  ;;  %4420 = vmatpush.bf16.msrb.mxu1 %v5704_v44  ;;  %v6117_v10 = vld [vmem:[#allocation3 + $0x458] sm:$0xf0]  ;;  %v7081_v44 = vld [vmem:[#allocation3 + $0x54c] sm:$0xf] }
 0x4bb   : > { %4148 = vmatmul.bf16.vlgmr.msra.gmra.mxu2 %v8683_v53  ;;  %4161 = vmatmul.bf16.vlgmr.msra.gmra.mxu3 %v8685_v9  ;;  %v6248_v16 = vor.u32 %v7081_v44, %v6245_v45  ;;  %v6924_v44 = vld [vmem:[#allocation3 + $0x64] sm:$0xf]  ;;  %v5613_v45 = vld [vmem:[#allocation3 + $0x70] sm:$0xf0] }
 0x4bc   : > { %4166 = vmatpush.bf16.msrb.mxu2 %v6444_v55  ;;  %4179 = vmatpush.bf16.msrb.mxu3 %v6572_v3  ;;  %v7146_v55 = vld [vmem:[#allocation3 + $0x74c] sm:$0xf0]  ;;  %v7049_v3 = vld [vmem:[#allocation3 + $0x44c] sm:$0xf] }
 0x4bd   : > { %4408 = vmatmul.bf16.vlgmr.msrb.gmra.mxu0 %v8665_v36  ;;  %4421 = vmatmul.bf16.vlgmr.msrb.gmra.mxu1 %v8667_v37  ;;  %v6120_v47 = vor.u32 %v7049_v3, %v6117_v10 }
 0x4be   : > { %4452 = vmatpush.bf16.msra.mxu0 %v6200_v15  ;;  %4465 = vmatpush.bf16.msra.mxu1 %v6328_v35  ;;  %v6492_v15 = vor.u32 %v7146_v55, %v6491_v7  ;;  %v6347_v35 = vld [vmem:[#allocation3 + $0x620] sm:$0xf]  ;;  %v6960_v7 = vld [vmem:[#allocation3 + $0x184] sm:$0xf]  ;;  %v5757_v55 = vld [vmem:[#allocation3 + $0x190] sm:$0xf0] }
 0x4bf   : > { %v6348_v42 = vor.u32 %v7110_v33, %v6347_v35  ;;  %v5760_v10 = vor.u32 %v6960_v7, %v5757_v55  ;;  %v5616_v35 = vor.u32 %v6924_v44, %v5613_v45  ;;  %v6984_v7 = vld [vmem:[#allocation3 + $0x244] sm:$0xf]  ;;  %v5853_v55 = vld [vmem:[#allocation3 + $0x250] sm:$0xf0] }
 0x4c0   : > { %4167 = vmatpush.bf16.msrb.mxu2 %v6428_v6  ;;  %4180 = vmatpush.bf16.msrb.mxu3 %v6556_v57  ;;  %v6101_v6 = vld [vmem:[#allocation3 + $0x438] sm:$0xf0]  ;;  %v7077_v57 = vld [vmem:[#allocation3 + $0x52c] sm:$0xf]  ;;  %v5856_v44 = vor.u32 %v6984_v7, %v5853_v55  ;;  %v7048_v7 = vld [vmem:[#allocation3 + $0x444] sm:$0xf] }
 0x4c1   : > { %v6104_v27 = vor.u32 %v7045_v17, %v6101_v6  ;;  %v6232_v34 = vor.u32 %v7077_v57, %v6229_v58  ;;  %v6916_v57 = vld [vmem:[#allocation3 + $0x24] sm:$0xf]  ;;  %v5581_v58 = vld [vmem:[#allocation3 + $0x30] sm:$0xf0] }
 0x4c2   : > { %4453 = vmatpush.bf16.msra.mxu0 %v6184_v46  ;;  %4466 = vmatpush.bf16.msra.mxu1 %v6312_v30  ;;  %v6476_v46 = vor.u32 %v7142_v63, %v6475_v43  ;;  %v6331_v30 = vld [vmem:[#allocation3 + $0x600] sm:$0xf]  ;;  %v6952_v43 = vld [vmem:[#allocation3 + $0x144] sm:$0xf]  ;;  %v5725_v63 = vld [vmem:[#allocation3 + $0x150] sm:$0xf0] }
 0x4c3   : > { %v6332_v29 = vor.u32 %v7106_v22, %v6331_v30  ;;  %v5728_v6 = vor.u32 %v6952_v43, %v5725_v63  ;;  %v5584_v30 = vor.u32 %v6916_v57, %v5581_v58  ;;  %v6976_v43 = vld [vmem:[#allocation3 + $0x204] sm:$0xf]  ;;  %v5821_v63 = vld [vmem:[#allocation3 + $0x210] sm:$0xf0] }
 0x4c4   : > { %4168 = vmatpush.bf16.msrb.mxu2 %v6412_v48  ;;  %4181 = vmatpush.bf16.msrb.mxu3 %v6540_v50  ;;  %v6085_v48 = vld [vmem:[#allocation3 + $0x418] sm:$0xf0]  ;;  %v7073_v50 = vld [vmem:[#allocation3 + $0x50c] sm:$0xf]  ;;  %v7068_v57 = vld [vmem:[#allocation3 + $0x4e4] sm:$0xf] }
 0x4c5   : > { %v6088_v26 = vor.u32 %v7041_v23, %v6085_v48  ;;  %v6216_v12 = vor.u32 %v7073_v50, %v6213_v49  ;;  %v7004_v23 = vld [vmem:[#allocation3 + $0x2e4] sm:$0xf]  ;;  %v5933_v48 = vld [vmem:[#allocation3 + $0x2f0] sm:$0xf0] }
 0x4c6   : > { %4454 = vmatpush.bf16.msra.mxu0 %v6168_v5  ;;  %4467 = vmatpush.bf16.msra.mxu1 %v6296_v19  ;;  %v5677_v5 = vld [vmem:[#allocation3 + $0xf0] sm:$0xf0]  ;;  %v6972_v19 = vld [vmem:[#allocation3 + $0x1e4] sm:$0xf] }
 0x4c7   : > { %v5808_v21 = vor.u32 %v6972_v19, %v5805_v51  ;;  %v7036_v50 = vld [vmem:[#allocation3 + $0x3e4] sm:$0xf]  ;;  %v6061_v49 = vld [vmem:[#allocation3 + $0x3f0] sm:$0xf0]  ;;  %v5936_v19 = vor.u32 %v7004_v23, %v5933_v48 }
 0x4c8   : > { %4169 = vmatpush.bf16.msrb.mxu2 %v6396_v20  ;;  %4182 = vmatpush.bf16.msrb.mxu3 %v6524_v38  ;;  %v2781_v20 = vperm.slane %v8661_v4, 7  ;;  %v5680_v38 = vor.u32 %v6940_v60, %v5677_v5  ;;  %v5645_v4 = vld [vmem:[#allocation3 + $0xb0] sm:$0xf0]  ;;  %v6064_v51 = vor.u32 %v7036_v50, %v6061_v49  ;;  %v7096_v23 = vld [vmem:[#allocation3 + $0x5c4] sm:$0xf] }
 0x4c9   : > { %v5648_v11 = vor.u32 %v6932_v56, %v5645_v4  ;;  %v7024_v56 = vld [vmem:[#allocation3 + $0x384] sm:$0xf]  ;;  %v6013_v4 = vld [vmem:[#allocation3 + $0x390] sm:$0xf0] }
 0x4ca   : > { %4455 = vmatpush.bf16.msra.mxu0 %v6152_v52  ;;  %4468 = vmatpush.bf16.msra.mxu1 %v6280_v0  ;;  %v5661_v52 = vld [vmem:[#allocation3 + $0xd0] sm:$0xf0]  ;;  %v6968_v0 = vld [vmem:[#allocation3 + $0x1c4] sm:$0xf]  ;;  %v8697_v62 = vpack.c.bf16 %v2781_v20, %v2781_v20 }
 0x4cb   : > { %v5664_v24 = vor.u32 %v6936_v61, %v5661_v52  ;;  %v5792_v2 = vor.u32 %v6968_v0, %v5789_v1  ;;  %v7028_v61 = vld [vmem:[#allocation3 + $0x3a4] sm:$0xf]  ;;  %v6029_v52 = vld [vmem:[#allocation3 + $0x3b0] sm:$0xf0] }
 0x4cc   : > { %4170 = vmatpush.bf16.msrb.mxu2 %v6380_v8  ;;  %4183 = vmatpush.bf16.msrb.mxu3 %v6508_v32  ;;  %v6964_v8 = vld [vmem:[#allocation3 + $0x1a4] sm:$0xf]  ;;  %v5773_v32 = vld [vmem:[#allocation3 + $0x1b0] sm:$0xf0]  ;;  %v6032_v1 = vor.u32 %v7028_v61, %v6029_v52 }
 0x4cd   : > { %v5776_v18 = vor.u32 %v6964_v8, %v5773_v32  ;;  %v6016_v32 = vor.u32 %v7024_v56, %v6013_v4  ;;  %v6189_v58 = vld [vmem:[#allocation3 + $0x4f0] sm:$0xf0]  ;;  %v7084_v4 = vld [vmem:[#allocation3 + $0x564] sm:$0xf] }
 0x4ce   : > { %4456 = vmatpush.bf16.msra.mxu0 %v6136_v39  ;;  %4469 = vmatpush.bf16.msra.mxu1 %v6264_v28  ;;  %v6928_v39 = vld [vmem:[#allocation3 + $0x84] sm:$0xf]  ;;  %v5629_v28 = vld [vmem:[#allocation3 + $0x90] sm:$0xf0] }
 0x4cf   : > { %v5632_v3 = vor.u32 %v6928_v39, %v5629_v28  ;;  %v7020_v39 = vld [vmem:[#allocation3 + $0x364] sm:$0xf]  ;;  %v5997_v28 = vld [vmem:[#allocation3 + $0x370] sm:$0xf0] }
 0x4d0   : > { %4171 = vmatpush.bf16.msrb.mxu2 %v6364_v14  ;;  %4184 = vmatpush.bf16.msrb.mxu3 %v6492_v15  ;;  %v6956_v14 = vld [vmem:[#allocation3 + $0x164] sm:$0xf]  ;;  %v5741_v15 = vld [vmem:[#allocation3 + $0x170] sm:$0xf0] }
 0x4d1   : > { %v5744_v33 = vor.u32 %v6956_v14, %v5741_v15  ;;  %v6980_v14 = vld [vmem:[#allocation3 + $0x224] sm:$0xf]  ;;  %v5837_v15 = vld [vmem:[#allocation3 + $0x230] sm:$0xf0] }
 0x4d2   : > { %4457 = vmatpush.bf16.msra.mxu0 %v6120_v47  ;;  %4470 = vmatpush.bf16.msra.mxu1 %v6248_v16  ;;  %v6920_v47 = vld [vmem:[#allocation3 + $0x44] sm:$0xf]  ;;  %v5597_v16 = vld [vmem:[#allocation3 + $0x50] sm:$0xf0] }
 0x4d3   : > { %v5600_v17 = vor.u32 %v6920_v47, %v5597_v16  ;;  %v5840_v47 = vor.u32 %v6980_v14, %v5837_v15  ;;  %v6301_v48 = vld [vmem:[#allocation3 + $0x5d0] sm:$0xf0]  ;;  %v7181_v14 = vld [vmem:[%s9317_s9 + $0x64] sm:$0xf0] }
 0x4d4   : > { %4172 = vmatpush.bf16.msrb.mxu2 %v6348_v42  ;;  %4185 = vmatpush.bf16.msrb.mxu3 %v6476_v46  ;;  %v6948_v42 = vld [vmem:[#allocation3 + $0x124] sm:$0xf]  ;;  %v5709_v46 = vld [vmem:[#allocation3 + $0x130] sm:$0xf0]  ;;  %v6304_v49 = vor.u32 %v7096_v23, %v6301_v48 }
 0x4d5   : > { %v5712_v22 = vor.u32 %v6948_v42, %v5709_v46  ;;  %v7100_v42 = vld [vmem:[#allocation3 + $0x5e4] sm:$0xf]  ;;  %v6317_v46 = vld [vmem:[#allocation3 + $0x5f0] sm:$0xf0] }
 0x4d6   : > { %4458 = vmatpush.bf16.msra.mxu0 %v6104_v27  ;;  %4471 = vmatpush.bf16.msra.mxu1 %v6232_v34  ;;  %v5565_v27 = vld [vmem:[#allocation3 + $0x10] sm:$0xf0]  ;;  %v6944_v34 = vld [vmem:[#allocation3 + $0x104] sm:$0xf] }
 0x4d7   : > { %v5568_v60 = vor.u32 %v6912_v31, %v5565_v27  ;;  %v5696_v5 = vor.u32 %v6944_v34, %v5693_v40  ;;  %v6192_v31 = vor.u32 %v7068_v57, %v6189_v58  ;;  %v6320_v27 = vor.u32 %v7100_v42, %v6317_v46  ;;  %v7064_v34 = vld [vmem:[#allocation3 + $0x4c4] sm:$0xf]  ;;  %v6173_v40 = vld [vmem:[#allocation3 + $0x4d0] sm:$0xf0]  ;;  %v6627_v57 = vld [vmem:[%s9317_s9 + $0x50] sm:$0xf] }
 0x4d8   : > { %4173 = vmatpush.bf16.msrb.mxu2 %v6332_v29  ;;  %4186 = vmatpush.bf16.msrb.mxu3 %v6460_v41  ;;  %v7000_v29 = vld [vmem:[#allocation3 + $0x2c4] sm:$0xf]  ;;  %v5917_v41 = vld [vmem:[#allocation3 + $0x2d0] sm:$0xf0]  ;;  %v6176_v50 = vor.u32 %v7064_v34, %v6173_v40  ;;  %v7179_v58 = vld [vmem:[%s9317_s9 + $0x54] sm:$0xf0] }
 0x4d9   : > { %v5920_v59 = vor.u32 %v7000_v29, %v5917_v41  ;;  %v8708_v29 = vld [vmem:[%s9316_s8] sm:$0xf]  ;;  %v6125_v56 = vld [vmem:[#allocation3 + $0x470] sm:$0xf0]  ;;  %v7040_v42 = vld [vmem:[#allocation3 + $0x404] sm:$0xf]  ;;  %v6628_v46 = vor.u32 %v7179_v58, %v6627_v57 }
 0x4da   : > { %4459 = vmatpush.bf16.msra.mxu0 %v6088_v26  ;;  %4472 = vmatpush.bf16.msra.mxu1 %v6216_v12  ;;  %v7032_v26 = vld [vmem:[#allocation3 + $0x3c4] sm:$0xf]  ;;  %v6045_v12 = vld [vmem:[#allocation3 + $0x3d0] sm:$0xf0]  ;;  %v4083_v58 = vperm.slane %v8708_v29, 3 }
 0x4db   : > { %4174 = vmatmul.bf16.vlgmr.msrb.gmra.mxu2 %v8695_v25  ;;  %4187 = vmatmul.bf16.vlgmr.msrb.gmra.mxu3 %v8697_v62  ;;  %v6048_v20 = vor.u32 %v7032_v26, %v6045_v12  ;;  %v4082_v12 = vperm.slane %v8708_v29, 2  ;;  %v6109_v55 = vld [vmem:[#allocation3 + $0x450] sm:$0xf0]  ;;  %v7072_v40 = vld [vmem:[#allocation3 + $0x504] sm:$0xf] }
 0x4dc   : > { %4192 = vmatpush.bf16.msra.mxu2 %v5680_v38  ;;  %4205 = vmatpush.bf16.msra.mxu3 %v5808_v21  ;;  %v6996_v38 = vld [vmem:[#allocation3 + $0x2a4] sm:$0xf]  ;;  %v5901_v21 = vld [vmem:[#allocation3 + $0x2b0] sm:$0xf0] }
 0x4dd   : > { %4460 = vmatmul.bf16.vlgmr.msra.gmra.mxu0 %v8683_v53  ;;  %4473 = vmatmul.bf16.vlgmr.msra.gmra.mxu1 %v8685_v9  ;;  %v5904_v0 = vor.u32 %v6996_v38, %v5901_v21  ;;  %v7088_v38 = vld [vmem:[#allocation3 + $0x584] sm:$0xf]  ;;  %v6269_v21 = vld [vmem:[#allocation3 + $0x590] sm:$0xf0] }
 0x4de   : > { %v6077_v34 = vld [vmem:[#allocation3 + $0x410] sm:$0xf0]  ;;  %v7132_v48 = vld [vmem:[#allocation3 + $0x6e4] sm:$0xf] }
 0x4df   : > { %v6205_v23 = vld [vmem:[#allocation3 + $0x510] sm:$0xf0] }
 0x4e0   : > { %4193 = vmatpush.bf16.msra.mxu2 %v5664_v24  ;;  %4206 = vmatpush.bf16.msra.mxu3 %v5792_v2  ;;  %v6992_v24 = vld [vmem:[#allocation3 + $0x284] sm:$0xf]  ;;  %v5885_v2 = vld [vmem:[#allocation3 + $0x290] sm:$0xf0] }
 0x4e1   : > { %v5888_v8 = vor.u32 %v6992_v24, %v5885_v2  ;;  %v7052_v24 = vld [vmem:[#allocation3 + $0x464] sm:$0xf] }
 0x4e4   : > { %4194 = vmatpush.bf16.msra.mxu2 %v5648_v11  ;;  %4207 = vmatpush.bf16.msra.mxu3 %v5776_v18  ;;  %v6988_v11 = vld [vmem:[#allocation3 + $0x264] sm:$0xf]  ;;  %v5869_v18 = vld [vmem:[#allocation3 + $0x270] sm:$0xf0] }
 0x4e8   : > { %4195 = vmatpush.bf16.msra.mxu2 %v5632_v3  ;;  %4208 = vmatpush.bf16.msra.mxu3 %v5760_v10  ;;  %v7016_v3 = vld [vmem:[#allocation3 + $0x344] sm:$0xf]  ;;  %v5981_v10 = vld [vmem:[#allocation3 + $0x350] sm:$0xf0] }
 0x4e9   : > { %v5984_v45 = vor.u32 %v7016_v3, %v5981_v10  ;;  %v7080_v10 = vld [vmem:[#allocation3 + $0x544] sm:$0xf] }
 0x4ec   : > { %4196 = vmatpush.bf16.msra.mxu2 %v5616_v35  ;;  %4209 = vmatpush.bf16.msra.mxu3 %v5744_v33  ;;  %v7012_v35 = vld [vmem:[#allocation3 + $0x324] sm:$0xf]  ;;  %v5965_v33 = vld [vmem:[#allocation3 + $0x330] sm:$0xf0] }
 0x4ed   : > { %v5968_v16 = vor.u32 %v7012_v35, %v5965_v33 }
 0x4f0   : > { %4197 = vmatpush.bf16.msra.mxu2 %v5600_v17  ;;  %4210 = vmatpush.bf16.msra.mxu3 %v5728_v6  ;;  %v7008_v17 = vld [vmem:[#allocation3 + $0x304] sm:$0xf]  ;;  %v5949_v6 = vld [vmem:[#allocation3 + $0x310] sm:$0xf0] }
 0x4f4   : > { %4198 = vmatpush.bf16.msra.mxu2 %v5584_v30  ;;  %4211 = vmatpush.bf16.msra.mxu3 %v5712_v22  ;;  %v5824_v30 = vor.u32 %v6976_v43, %v5821_v63  ;;  %v5952_v22 = vor.u32 %v7008_v17, %v5949_v6  ;;  %v7044_v43 = vld [vmem:[#allocation3 + $0x424] sm:$0xf]  ;;  %v6093_v63 = vld [vmem:[#allocation3 + $0x430] sm:$0xf0] }
 0x4f5   : > { %v7076_v17 = vld [vmem:[#allocation3 + $0x524] sm:$0xf]  ;;  %v6221_v6 = vld [vmem:[#allocation3 + $0x530] sm:$0xf0] }
 0x4f8   : > { %4199 = vmatpush.bf16.msra.mxu2 %v5568_v60  ;;  %4212 = vmatpush.bf16.msra.mxu3 %v5696_v5  ;;  %v7060_v60 = vld [vmem:[#allocation3 + $0x4a4] sm:$0xf]  ;;  %v6157_v5 = vld [vmem:[#allocation3 + $0x4b0] sm:$0xf0] }
 0x4f9   : > { %v6160_v41 = vor.u32 %v7060_v60, %v6157_v5  ;;  %v7164_v60 = vld [vmem:[#allocation3 + $0x7e4] sm:$0xf]  ;;  %v6573_v5 = vld [vmem:[#allocation3 + $0x7f0] sm:$0xf0] }
 0x4fb   : > { %4200 = vmatmul.bf16.vlgmr.msra.gmra.mxu2 %v8665_v36  ;;  %4213 = vmatmul.bf16.vlgmr.msra.gmra.mxu3 %v8667_v37  ;;  %v5872_v36 = vor.u32 %v6988_v11, %v5869_v18  ;;  %v6000_v37 = vor.u32 %v7020_v39, %v5997_v28  ;;  %v6643_v11 = vld [vmem:[%s9317_s9 + $0x70] sm:$0xf]  ;;  %v7183_v18 = vld [vmem:[%s9317_s9 + $0x74] sm:$0xf0] }
 0x4fc   : > { %4218 = vmatpush.bf16.msrb.mxu2 %v5936_v19  ;;  %4231 = vmatpush.bf16.msrb.mxu3 %v6064_v51  ;;  %v7092_v19 = vld [vmem:[#allocation3 + $0x5a4] sm:$0xf]  ;;  %v6285_v51 = vld [vmem:[#allocation3 + $0x5b0] sm:$0xf0]  ;;  %v6644_v3 = vor.u32 %v7183_v18, %v6643_v11 }
 0x4fd   : > { %v6288_v26 = vor.u32 %v7092_v19, %v6285_v51  ;;  %v7177_v19 = vld [vmem:[%s9317_s9 + $0x44] sm:$0xf0]  ;;  %v7124_v18 = vld [vmem:[#allocation3 + $0x6a4] sm:$0xf] }
 0x4fe   : > { %4906 = vmatpush.bf16.msrb.mxu0 %v6644_v3  ;;  %v7173_v3 = vld [vmem:[%s9317_s9 + $0x24] sm:$0xf0] }
 0x500   : > { %4219 = vmatpush.bf16.msrb.mxu2 %v5920_v59  ;;  %4232 = vmatpush.bf16.msrb.mxu3 %v6048_v20  ;;  %v7056_v59 = vld [vmem:[#allocation3 + $0x484] sm:$0xf]  ;;  %v6141_v20 = vld [vmem:[#allocation3 + $0x490] sm:$0xf0] }
 0x504   : > { %4220 = vmatpush.bf16.msrb.mxu2 %v5904_v0  ;;  %4233 = vmatpush.bf16.msrb.mxu3 %v6032_v1  ;;  %v6144_v0 = vor.u32 %v7056_v59, %v6141_v20  ;;  %v6272_v1 = vor.u32 %v7088_v38, %v6269_v21  ;;  %v6208_v59 = vor.u32 %v7072_v40, %v6205_v23  ;;  %v7128_v21 = vld [vmem:[#allocation3 + $0x6c4] sm:$0xf]  ;;  %v6645_v40 = vld [vmem:[%s9317_s9 + $0x78] sm:$0xf0] }
 0x505   : > { %v6576_v38 = vor.u32 %v7164_v60, %v6573_v5 }
 0x508   : > { %4221 = vmatpush.bf16.msrb.mxu2 %v5888_v8  ;;  %4234 = vmatpush.bf16.msrb.mxu3 %v6016_v32  ;;  %v6253_v8 = vld [vmem:[#allocation3 + $0x570] sm:$0xf0] }
 0x50c   : > { %4222 = vmatpush.bf16.msrb.mxu2 %v5872_v36  ;;  %4235 = vmatpush.bf16.msrb.mxu3 %v6000_v37  ;;  %v6128_v36 = vor.u32 %v7052_v24, %v6125_v56  ;;  %v6256_v37 = vor.u32 %v7084_v4, %v6253_v8  ;;  %v7175_v24 = vld [vmem:[%s9317_s9 + $0x34] sm:$0xf0] }
 0x510   : > { %4223 = vmatpush.bf16.msrb.mxu2 %v5856_v44  ;;  %4236 = vmatpush.bf16.msrb.mxu3 %v5984_v45  ;;  %v6237_v44 = vld [vmem:[#allocation3 + $0x550] sm:$0xf0]  ;;  %v6635_v45 = vld [vmem:[%s9317_s9 + $0x60] sm:$0xf] }
 0x511   : > { %v6636_v15 = vor.u32 %v7181_v14, %v6635_v45 }
 0x513   : > { %4907 = vmatpush.bf16.msrb.mxu0 %v6636_v15 }
 0x514   : > { %4224 = vmatpush.bf16.msrb.mxu2 %v5840_v47  ;;  %4237 = vmatpush.bf16.msrb.mxu3 %v5968_v16  ;;  %v6112_v47 = vor.u32 %v7048_v7, %v6109_v55  ;;  %v6240_v16 = vor.u32 %v7080_v10, %v6237_v44  ;;  %v6541_v7 = vld [vmem:[#allocation3 + $0x7b0] sm:$0xf0]  ;;  %v6603_v55 = vld [vmem:[%s9317_s9 + $0x20] sm:$0xf] }
 0x515   : > { %v6604_v45 = vor.u32 %v7173_v3, %v6603_v55  ;;  %v7104_v3 = vld [vmem:[#allocation3 + $0x604] sm:$0xf] }
 0x517   : > { %4908 = vmatpush.bf16.msrb.mxu0 %v6628_v46  ;;  %v6381_v46 = vld [vmem:[#allocation3 + $0x670] sm:$0xf0] }
 0x518   : > { %4225 = vmatpush.bf16.msrb.mxu2 %v5824_v30  ;;  %4238 = vmatpush.bf16.msrb.mxu3 %v5952_v22 }
 0x51a   : > { %v4305_v61 = vpop.f32.mrf.mxu0  ;;  %v4318_v52 = vpop.f32.mrf.mxu1 }
 0x51b   : > { %4226 = vmatmul.bf16.vlgmr.msrb.gmra.mxu2 %v8677_v54  ;;  %4239 = vmatmul.bf16.vlgmr.msrb.gmra.mxu3 %v8679_v13  ;;  %v4306_v2 = vadd.f32 %v4305_v61, %v4082_v12  ;;  %v6080_v12 = vor.u32 %v7040_v42, %v6077_v34  ;;  %v6429_v61 = vld [vmem:[#allocation3 + $0x6d0] sm:$0xf0]  ;;  %v7116_v42 = vld [vmem:[#allocation3 + $0x664] sm:$0xf] }
 0x51c   : > { %4244 = vmatpush.bf16.msra.mxu2 %v6192_v31  ;;  %4257 = vmatpush.bf16.msra.mxu3 %v6320_v27  ;;  %v6096_v31 = vor.u32 %v7044_v43, %v6093_v63  ;;  %v6224_v27 = vor.u32 %v7076_v17, %v6221_v6  ;;  %v6432_v8 = vor.u32 %v7128_v21, %v6429_v61  ;;  %v7182_v34 = vld [vmem:[%s9317_s9 + $0x74] sm:$0xf] }
 0x51d   : > { %v8713_v32 = vadd.f32 %v4318_v52, %v4306_v2  ;;  %v7160_v52 = vld [vmem:[#allocation3 + $0x7c4] sm:$0xf]  ;;  %v6384_v5 = vor.u32 %v7116_v42, %v6381_v46  ;;  %v5923_v46 = vld [vmem:[#allocation3 + $0x2c8] sm:$0xf] }
 0x51e   : > { %v8721_v39 = vpop.f32.mrf.mxu2  ;;  %v8723_v28 = vpop.f32.mrf.mxu3 }
 0x520   : > { %4245 = vmatpush.bf16.msra.mxu2 %v6176_v50  ;;  %4258 = vmatpush.bf16.msra.mxu3 %v6304_v49  ;;  %v6445_v50 = vld [vmem:[#allocation3 + $0x6f0] sm:$0xf0]  ;;  %v6619_v49 = vld [vmem:[%s9317_s9 + $0x40] sm:$0xf] }
 0x521   : > { %v6620_v51 = vor.u32 %v7177_v19, %v6619_v49  ;;  %v6448_v20 = vor.u32 %v7132_v48, %v6445_v50  ;;  %v6648_v49 = vor.u32 %v7182_v34, %v6645_v40  ;;  %v7035_v34 = vld [vmem:[#allocation3 + $0x3d4] sm:$0xf0] }
 0x522   : > { %v4307_v35 = vpop.f32.mrf.mxu0  ;;  %v4320_v33 = vpop.f32.mrf.mxu1 }
 0x523   : > { %4909 = vmatpush.bf16.msrb.mxu0 %v6620_v51  ;;  %v7120_v35 = vld [vmem:[#allocation3 + $0x684] sm:$0xf]  ;;  %v6397_v33 = vld [vmem:[#allocation3 + $0x690] sm:$0xf0] }
 0x524   : > { %4246 = vmatpush.bf16.msra.mxu2 %v6160_v41  ;;  %4259 = vmatpush.bf16.msra.mxu3 %v6288_v26  ;;  %v6400_v6 = vor.u32 %v7120_v35, %v6397_v33  ;;  %v7112_v51 = vld [vmem:[#allocation3 + $0x644] sm:$0xf]  ;;  %v7007_v35 = vld [vmem:[#allocation3 + $0x2f4] sm:$0xf0]  ;;  %v6067_v33 = vld [vmem:[#allocation3 + $0x3e8] sm:$0xf] }
 0x526   : > { %v4099_v30 = vpop.f32.mrf.mxu2  ;;  %v4112_v22 = vpop.f32.mrf.mxu3 }
 0x527   : > { %v7148_v30 = vld [vmem:[#allocation3 + $0x764] sm:$0xf]  ;;  %v6509_v22 = vld [vmem:[#allocation3 + $0x770] sm:$0xf0] }
 0x528   : > { %4247 = vmatpush.bf16.msra.mxu2 %v6144_v0  ;;  %4260 = vmatpush.bf16.msra.mxu3 %v6272_v1  ;;  %v6557_v0 = vld [vmem:[#allocation3 + $0x7d0] sm:$0xf0]  ;;  %v6611_v1 = vld [vmem:[%s9317_s9 + $0x30] sm:$0xf]  ;;  %v6512_v19 = vor.u32 %v7148_v30, %v6509_v22  ;;  %v7176_v30 = vld [vmem:[%s9317_s9 + $0x44] sm:$0xf] }
 0x529   : > { %v6612_v4 = vor.u32 %v7175_v24, %v6611_v1  ;;  %v6560_v11 = vor.u32 %v7160_v52, %v6557_v0  ;;  %v7108_v1 = vld [vmem:[#allocation3 + $0x624] sm:$0xf]  ;;  %v6349_v24 = vld [vmem:[#allocation3 + $0x630] sm:$0xf0]  ;;  %v6621_v22 = vld [vmem:[%s9317_s9 + $0x48] sm:$0xf0] }
 0x52a   : > { %v8743_v41 = vpop.f32.mrf.mxu0  ;;  %v8745_v26 = vpop.f32.mrf.mxu1  ;;  %v6624_v40 = vor.u32 %v7176_v30, %v6621_v22  ;;  %v5843_v30 = vld [vmem:[#allocation3 + $0x228] sm:$0xf] }
 0x52b   : > { %4910 = vmatpush.bf16.msrb.mxu0 %v6612_v4  ;;  %v7140_v4 = vld [vmem:[#allocation3 + $0x724] sm:$0xf] }
 0x52c   : > { %4248 = vmatpush.bf16.msra.mxu2 %v6128_v36  ;;  %4261 = vmatpush.bf16.msra.mxu3 %v6256_v37  ;;  %v6413_v36 = vld [vmem:[#allocation3 + $0x6b0] sm:$0xf0]  ;;  %v7156_v37 = vld [vmem:[#allocation3 + $0x7a4] sm:$0xf] }
 0x52d   : > { %v6416_v14 = vor.u32 %v7124_v18, %v6413_v36  ;;  %v6544_v15 = vor.u32 %v7156_v37, %v6541_v7  ;;  %v7180_v36 = vld [vmem:[%s9317_s9 + $0x64] sm:$0xf]  ;;  %v6637_v37 = vld [vmem:[%s9317_s9 + $0x68] sm:$0xf0]  ;;  %v6352_v7 = vor.u32 %v7108_v1, %v6349_v24  ;;  %v5891_v24 = vld [vmem:[#allocation3 + $0x288] sm:$0xf] }
 0x52e   : > { %v8753_v2 = vpop.f32.mrf.mxu2  ;;  %v8755_v56 = vpop.f32.mrf.mxu3 }
 0x52f   : > { %4911 = vmatpush.bf16.msrb.mxu0 %v6604_v45  ;;  %v7136_v45 = vld [vmem:[#allocation3 + $0x704] sm:$0xf] }
 0x530   : > { %4249 = vmatpush.bf16.msra.mxu2 %v6112_v47  ;;  %4262 = vmatpush.bf16.msra.mxu3 %v6240_v16  ;;  %v7152_v47 = vld [vmem:[#allocation3 + $0x784] sm:$0xf]  ;;  %v6525_v16 = vld [vmem:[#allocation3 + $0x790] sm:$0xf0] }
 0x531   : > { %v6528_v57 = vor.u32 %v7152_v47, %v6525_v16  ;;  %v7039_v47 = vld [vmem:[#allocation3 + $0x3f4] sm:$0xf0]  ;;  %v7178_v16 = vld [vmem:[%s9317_s9 + $0x54] sm:$0xf] }
 0x532   : > { %v4359_v10 = vpop.f32.mrf.mxu0  ;;  %v4372_v44 = vpop.f32.mrf.mxu1  ;;  %v6068_v42 = vor.u32 %v7039_v47, %v6067_v33 }
 0x533   : > { %v6333_v10 = vld [vmem:[#allocation3 + $0x610] sm:$0xf0]  ;;  %v6640_v44 = vor.u32 %v7180_v36, %v6637_v37 }
 0x534   : > { %4250 = vmatpush.bf16.msra.mxu2 %v6096_v31  ;;  %4263 = vmatpush.bf16.msra.mxu3 %v6224_v27  ;;  %v6587_v31 = vld [vmem:[%s9317_s9] sm:$0xf]  ;;  %v7169_v27 = vld [vmem:[%s9317_s9 + $0x4] sm:$0xf0]  ;;  %v7170_v37 = vld [vmem:[%s9317_s9 + $0x14] sm:$0xf] }
 0x535   : > { %v6588_v50 = vor.u32 %v7169_v27, %v6587_v31  ;;  %v7003_v31 = vld [vmem:[#allocation3 + $0x2d4] sm:$0xf0]  ;;  %v6051_v27 = vld [vmem:[#allocation3 + $0x3c8] sm:$0xf] }
 0x536   : > { %v4125_v43 = vpop.f32.mrf.mxu2  ;;  %v4138_v63 = vpop.f32.mrf.mxu3 }
 0x538   : > { %4251 = vmatpush.bf16.msra.mxu2 %v6080_v12  ;;  %4264 = vmatpush.bf16.msra.mxu3 %v6208_v59  ;;  %v6365_v12 = vld [vmem:[#allocation3 + $0x650] sm:$0xf0]  ;;  %v7144_v59 = vld [vmem:[#allocation3 + $0x744] sm:$0xf] }
 0x539   : > { %v6368_v52 = vor.u32 %v7112_v51, %v6365_v12  ;;  %v6035_v51 = vld [vmem:[#allocation3 + $0x3a8] sm:$0xf]  ;;  %v7031_v12 = vld [vmem:[#allocation3 + $0x3b4] sm:$0xf0] }
 0x53a   : > { %v4409_v23 = vpop.f32.mrf.mxu0  ;;  %v4422_v48 = vpop.f32.mrf.mxu1  ;;  %v6036_v1 = vor.u32 %v7031_v12, %v6035_v51  ;;  %v7011_v51 = vld [vmem:[#allocation3 + $0x314] sm:$0xf0]  ;;  %v6451_v12 = vld [vmem:[#allocation3 + $0x6e8] sm:$0xf] }
 0x53b   : > { %4252 = vmatmul.bf16.vlgmr.msra.gmra.mxu2 %v8683_v53  ;;  %4265 = vmatmul.bf16.vlgmr.msra.gmra.mxu3 %v8685_v9  ;;  %v6595_v53 = vld [vmem:[%s9317_s9 + $0x10] sm:$0xf]  ;;  %v7171_v9 = vld [vmem:[%s9317_s9 + $0x14] sm:$0xf0]  ;;  %v4410_v60 = vadd.f32 %v4409_v23, %v4083_v58 }
 0x53c   : > { %4270 = vmatpush.bf16.msrb.mxu2 %v6448_v20  ;;  %4283 = vmatpush.bf16.msrb.mxu3 %v6576_v38  ;;  %v6596_v17 = vor.u32 %v7171_v9, %v6595_v53  ;;  %v6493_v20 = vld [vmem:[#allocation3 + $0x750] sm:$0xf0]  ;;  %v6629_v53 = vld [vmem:[%s9317_s9 + $0x58] sm:$0xf0]  ;;  %v4080_v9 = vperm.slane %v8708_v29, 0 }
 0x53d   : > { %v8784_v38 = vadd.f32 %v4422_v48, %v4410_v60  ;;  %v6496_v0 = vor.u32 %v7144_v59, %v6493_v20  ;;  %v7174_v48 = vld [vmem:[%s9317_s9 + $0x34] sm:$0xf]  ;;  %v5907_v60 = vld [vmem:[#allocation3 + $0x2a8] sm:$0xf]  ;;  %v7172_v59 = vld [vmem:[%s9317_s9 + $0x24] sm:$0xf] }
 0x53e   : > { %4912 = vmatpush.bf16.msrb.mxu0 %v6596_v17  ;;  %v8786_v21 = vpop.f32.mrf.mxu2  ;;  %v8788_v61 = vpop.f32.mrf.mxu3  ;;  %v6336_v17 = vor.u32 %v7104_v3, %v6333_v10  ;;  %v4098_v23 = vadd.f32 %v8721_v39, %v4080_v9  ;;  %v6605_v20 = vld [vmem:[%s9317_s9 + $0x28] sm:$0xf0]  ;;  %v5875_v3 = vld [vmem:[#allocation3 + $0x268] sm:$0xf]  ;;  %v6991_v10 = vld [vmem:[#allocation3 + $0x274] sm:$0xf0] }
 0x53f   : > { %v6608_v36 = vor.u32 %v7172_v59, %v6605_v20  ;;  %v5859_v9 = vld [vmem:[#allocation3 + $0x248] sm:$0xf]  ;;  %v7167_v20 = vld [vmem:[#allocation3 + $0x7f4] sm:$0xf0] }
 0x540   : > { %4271 = vmatpush.bf16.msrb.mxu2 %v6432_v8  ;;  %4284 = vmatpush.bf16.msrb.mxu3 %v6560_v11  ;;  %v6477_v8 = vld [vmem:[#allocation3 + $0x730] sm:$0xf0]  ;;  %v6579_v59 = vld [vmem:[#allocation3 + $0x7e8] sm:$0xf] }
 0x541   : > { %v6480_v55 = vor.u32 %v7140_v4, %v6477_v8  ;;  %v6995_v8 = vld [vmem:[#allocation3 + $0x294] sm:$0xf0] }
 0x542   : > { %4913 = vmatpush.bf16.msrb.mxu0 %v6588_v50  ;;  %v4411_v11 = vpop.f32.mrf.mxu0  ;;  %v4424_v18 = vpop.f32.mrf.mxu1  ;;  %v5924_v50 = vor.u32 %v7003_v31, %v5923_v46  ;;  %v6983_v31 = vld [vmem:[#allocation3 + $0x234] sm:$0xf0] }
 0x543   : > { %v6019_v11 = vld [vmem:[#allocation3 + $0x388] sm:$0xf]  ;;  %v7027_v18 = vld [vmem:[#allocation3 + $0x394] sm:$0xf0] }
 0x544   : > { %4272 = vmatpush.bf16.msrb.mxu2 %v6416_v14  ;;  %4285 = vmatpush.bf16.msrb.mxu3 %v6544_v15  ;;  %v6461_v14 = vld [vmem:[#allocation3 + $0x710] sm:$0xf0]  ;;  %v5939_v15 = vld [vmem:[#allocation3 + $0x2e8] sm:$0xf] }
 0x545   : > { %v5940_v58 = vor.u32 %v7007_v35, %v5939_v15  ;;  %v7168_v15 = vld [vmem:[%s9317_s9 + $0x4] sm:$0xf]  ;;  %v6589_v35 = vld [vmem:[%s9317_s9 + $0x8] sm:$0xf0] }
 0x546   : > { %4958 = vmatpush.bf16.msra.mxu0 %v6648_v49  ;;  %v4151_v43 = vpop.f32.mrf.mxu2  ;;  %v4164_v63 = vpop.f32.mrf.mxu3  ;;  %v6052_v49 = vor.u32 %v7035_v34, %v6051_v27  ;;  %v5971_v27 = vld [vmem:[#allocation3 + $0x328] sm:$0xf]  ;;  %v7015_v34 = vld [vmem:[#allocation3 + $0x334] sm:$0xf0] }
 0x547   : > { %v6987_v43 = vld [vmem:[#allocation3 + $0x254] sm:$0xf0]  ;;  %v5987_v63 = vld [vmem:[#allocation3 + $0x348] sm:$0xf] }
 0x548   : > { %4273 = vmatpush.bf16.msrb.mxu2 %v6400_v6  ;;  %4286 = vmatpush.bf16.msrb.mxu3 %v6528_v57  ;;  %v6464_v6 = vor.u32 %v7136_v45, %v6461_v14  ;;  %v6632_v57 = vor.u32 %v7178_v16, %v6629_v53  ;;  %v7023_v45 = vld [vmem:[#allocation3 + $0x374] sm:$0xf0] }
 0x54a   : > { %4959 = vmatpush.bf16.msra.mxu0 %v6640_v44  ;;  %v6003_v44 = vld [vmem:[#allocation3 + $0x368] sm:$0xf] }
 0x54b   : > { %v6004_v53 = vor.u32 %v7023_v45, %v6003_v44  ;;  %v6547_v44 = vld [vmem:[#allocation3 + $0x7a8] sm:$0xf]  ;;  %v7159_v45 = vld [vmem:[#allocation3 + $0x7b4] sm:$0xf0] }
 0x54c   : > { %4274 = vmatpush.bf16.msrb.mxu2 %v6384_v5  ;;  %4287 = vmatpush.bf16.msrb.mxu3 %v6512_v19  ;;  %v6613_v5 = vld [vmem:[%s9317_s9 + $0x38] sm:$0xf0]  ;;  %v6999_v19 = vld [vmem:[#allocation3 + $0x2b4] sm:$0xf0] }
 0x54d   : > { %v6616_v39 = vor.u32 %v7174_v48, %v6613_v5  ;;  %v5955_v5 = vld [vmem:[#allocation3 + $0x308] sm:$0xf] }
 0x54e   : > { %4960 = vmatpush.bf16.msra.mxu0 %v6632_v57 }
 0x550   : > { %4275 = vmatpush.bf16.msrb.mxu2 %v6368_v52  ;;  %4288 = vmatpush.bf16.msrb.mxu3 %v6496_v0  ;;  %v4111_v52 = vadd.f32 %v8723_v28, %v4098_v23  ;;  %v5908_v0 = vor.u32 %v6999_v19, %v5907_v60  ;;  %v6597_v28 = vld [vmem:[%s9317_s9 + $0x18] sm:$0xf0]  ;;  %v6979_v60 = vld [vmem:[#allocation3 + $0x214] sm:$0xf0] }
 0x551   : > { %v6600_v14 = vor.u32 %v7170_v37, %v6597_v28  ;;  %v7131_v37 = vld [vmem:[#allocation3 + $0x6d4] sm:$0xf0]  ;;  %v6563_v28 = vld [vmem:[#allocation3 + $0x7c8] sm:$0xf] }
 0x552   : > { %4961 = vmatpush.bf16.msra.mxu0 %v6624_v40  ;;  %v4124_v4 = vadd.f32 %v8753_v2, %v4111_v52 }
 0x554   : > { %4276 = vmatpush.bf16.msrb.mxu2 %v6352_v7  ;;  %4289 = vmatpush.bf16.msrb.mxu3 %v6480_v55  ;;  %v5892_v7 = vor.u32 %v6995_v8, %v5891_v24  ;;  %v6020_v55 = vor.u32 %v7027_v18, %v6019_v11  ;;  %v4137_v2 = vadd.f32 %v8755_v56, %v4124_v4 }
 0x555   : > { %v5876_v56 = vor.u32 %v6991_v10, %v5875_v3  ;;  %v5956_v4 = vor.u32 %v7011_v51, %v5955_v5  ;;  %v6580_v18 = vor.u32 %v7167_v20, %v6579_v59  ;;  %v7127_v10 = vld [vmem:[#allocation3 + $0x6b4] sm:$0xf0]  ;;  %v7005_v20 = vld [vmem:[#allocation3 + $0x2ec] sm:$0xf] }
 0x556   : > { %4962 = vmatpush.bf16.msra.mxu0 %v6616_v39  ;;  %v4150_v33 = vadd.f32 %v8786_v21, %v4137_v2  ;;  %v7135_v39 = vld [vmem:[#allocation3 + $0x6f4] sm:$0xf0]  ;;  %v6419_v2 = vld [vmem:[#allocation3 + $0x6a8] sm:$0xf] }
 0x557   : > { %v6452_v11 = vor.u32 %v7135_v39, %v6451_v12  ;;  %v6339_v12 = vld [vmem:[#allocation3 + $0x608] sm:$0xf]  ;;  %v7107_v39 = vld [vmem:[#allocation3 + $0x614] sm:$0xf0] }
 0x558   : > { %4277 = vmatpush.bf16.msrb.mxu2 %v6336_v17  ;;  %4290 = vmatpush.bf16.msrb.mxu3 %v6464_v6  ;;  %v7019_v17 = vld [vmem:[#allocation3 + $0x354] sm:$0xf0]  ;;  %v6592_v6 = vor.u32 %v7168_v15, %v6589_v35  ;;  %v4163_v57 = vadd.f32 %v8788_v61, %v4150_v33  ;;  %v5827_v61 = vld [vmem:[#allocation3 + $0x208] sm:$0xf]  ;;  %v6548_v15 = vor.u32 %v7159_v45, %v6547_v44  ;;  %v5909_v44 = vld [vmem:[#allocation3 + $0x2b8] sm:$0xf0] }
 0x559   : > { %v5988_v46 = vor.u32 %v7019_v17, %v5987_v63  ;;  %v5828_v24 = vor.u32 %v6979_v60, %v5827_v61  ;;  %v6403_v35 = vld [vmem:[#allocation3 + $0x688] sm:$0xf]  ;;  %v7123_v33 = vld [vmem:[#allocation3 + $0x694] sm:$0xf0]  ;;  %v7029_v45 = vld [vmem:[#allocation3 + $0x3ac] sm:$0xf] }
 0x55a   : > { %4963 = vmatpush.bf16.msra.mxu0 %v6608_v36  ;;  %v8840_v47 = vpop.f32.mrf.mxu0  ;;  %v8842_v16 = vpop.f32.mrf.mxu1  ;;  %v6435_v36 = vld [vmem:[#allocation3 + $0x6c8] sm:$0xf]  ;;  %v7119_v17 = vld [vmem:[#allocation3 + $0x674] sm:$0xf0] }
 0x55b   : > { %4278 = vmatmul.bf16.vlgmr.msrb.gmra.mxu2 %v8695_v25  ;;  %4291 = vmatmul.bf16.vlgmr.msrb.gmra.mxu3 %v8697_v62  ;;  %v6387_v63 = vld [vmem:[#allocation3 + $0x668] sm:$0xf]  ;;  %v7143_v61 = vld [vmem:[#allocation3 + $0x734] sm:$0xf0] }
 0x55c   : > { %4322 = vmatpush.bf16.msra.mxu2 %v5940_v58  ;;  %4335 = vmatpush.bf16.msra.mxu3 %v6068_v42  ;;  %v5860_v42 = vor.u32 %v6987_v43, %v5859_v9  ;;  %v6404_v9 = vor.u32 %v7123_v33, %v6403_v35  ;;  %v7139_v59 = vld [vmem:[#allocation3 + $0x714] sm:$0xf0]  ;;  %v6993_v33 = vld [vmem:[#allocation3 + $0x28c] sm:$0xf] }
 0x55e   : > { %4964 = vmatpush.bf16.msra.mxu0 %v6600_v14  ;;  %v4175_v58 = vpop.f32.mrf.mxu2  ;;  %v4188_v21 = vpop.f32.mrf.mxu3  ;;  %v6420_v14 = vor.u32 %v7127_v10, %v6419_v2  ;;  %v6997_v10 = vld [vmem:[#allocation3 + $0x2ac] sm:$0xf] }
 0x55f   : > { %v4176_v22 = vadd.f32 %v4175_v58, %v4163_v57  ;;  %v7151_v57 = vld [vmem:[#allocation3 + $0x774] sm:$0xf0]  ;;  %v6388_v58 = vor.u32 %v7119_v17, %v6387_v63  ;;  %v6989_v17 = vld [vmem:[#allocation3 + $0x26c] sm:$0xf] }
 0x560   : > { %4323 = vmatpush.bf16.msra.mxu2 %v5924_v50  ;;  %4336 = vmatpush.bf16.msra.mxu3 %v6052_v49  ;;  %v5844_v50 = vor.u32 %v6983_v31, %v5843_v30  ;;  %v5972_v49 = vor.u32 %v7015_v34, %v5971_v27  ;;  %v6499_v30 = vld [vmem:[#allocation3 + $0x748] sm:$0xf]  ;;  %v4081_v31 = vperm.slane %v8708_v29, 1 }
 0x561   : > { %v4189_v40 = vadd.f32 %v4188_v21, %v4176_v22  ;;  %v7147_v22 = vld [vmem:[#allocation3 + $0x754] sm:$0xf0]  ;;  %v6467_v29 = vld [vmem:[#allocation3 + $0x708] sm:$0xf] }
 0x562   : > { %4965 = vmatpush.bf16.msra.mxu0 %v6592_v6  ;;  %v4463_v23 = vpop.f32.mrf.mxu0  ;;  %v4476_v48 = vpop.f32.mrf.mxu1  ;;  %v6515_v6 = vld [vmem:[#allocation3 + $0x768] sm:$0xf]  ;;  %v6500_v34 = vor.u32 %v7147_v22, %v6499_v30 }
 0x563   : > { %v4504_v19 = vmul.f32 0.2, %v4189_v40  ;;  %v6516_v21 = vor.u32 %v7151_v57, %v6515_v6  ;;  %v5877_v6 = vld [vmem:[#allocation3 + $0x278] sm:$0xf0]  ;;  %v7021_v57 = vld [vmem:[#allocation3 + $0x36c] sm:$0xf] }
 0x564   : > { %4324 = vmatpush.bf16.msra.mxu2 %v5908_v0  ;;  %4337 = vmatpush.bf16.msra.mxu3 %v6036_v1  ;;  %v5880_v30 = vor.u32 %v6989_v17, %v5877_v6  ;;  %v7125_v6 = vld [vmem:[#allocation3 + $0x6ac] sm:$0xf] }
 0x565   : > { %v4508_v52 = vmax.f32 %v4189_v40, %v4504_v19  ;;  %v6355_v40 = vld [vmem:[#allocation3 + $0x628] sm:$0xf] }
 0x566   : > { %v4177_v0 = vpop.f32.mrf.mxu2  ;;  %v4190_v1 = vpop.f32.mrf.mxu3 }
 0x567   : > { %v4576_v8 = vpack.c.bf16 %v4508_v52, %v4508_v52  ;;  %v5941_v52 = vld [vmem:[#allocation3 + $0x2f8] sm:$0xf0]  ;;  %v7037_v0 = vld [vmem:[#allocation3 + $0x3ec] sm:$0xf] }
 0x568   : > { %4325 = vmatpush.bf16.msra.mxu2 %v5892_v7  ;;  %4338 = vmatpush.bf16.msra.mxu3 %v6020_v55  ;;  %v7163_v7 = vld [vmem:[#allocation3 + $0x7d4] sm:$0xf0]  ;;  %v6436_v55 = vor.u32 %v7131_v37, %v6435_v36  ;;  %v6069_v1 = vld [vmem:[#allocation3 + $0x3f8] sm:$0xf0]  ;;  %v7001_v37 = vld [vmem:[#allocation3 + $0x2cc] sm:$0xf] }
 0x569   : > { %4914 = vmatmul.bf16.vlgmr.msrb.gmra.mxu0 %v4576_v8  ;;  %v6564_v3 = vor.u32 %v7163_v7, %v6563_v28  ;;  %v6072_v36 = vor.u32 %v7037_v0, %v6069_v1  ;;  %v5925_v28 = vld [vmem:[#allocation3 + $0x2d8] sm:$0xf0]  ;;  %v7033_v7 = vld [vmem:[#allocation3 + $0x3cc] sm:$0xf] }
 0x56a   : > { %v6977_v1 = vld [vmem:[#allocation3 + $0x20c] sm:$0xf] }
 0x56c   : > { %4326 = vmatpush.bf16.msra.mxu2 %v5876_v56  ;;  %4339 = vmatpush.bf16.msra.mxu3 %v6004_v53  ;;  %v6531_v56 = vld [vmem:[#allocation3 + $0x788] sm:$0xf]  ;;  %v7155_v53 = vld [vmem:[#allocation3 + $0x794] sm:$0xf0] }
 0x56d   : > { %v6532_v43 = vor.u32 %v7155_v53, %v6531_v56  ;;  %v5893_v56 = vld [vmem:[#allocation3 + $0x298] sm:$0xf0]  ;;  %v7025_v53 = vld [vmem:[#allocation3 + $0x38c] sm:$0xf] }
 0x570   : > { %4327 = vmatpush.bf16.msra.mxu2 %v5860_v42  ;;  %4340 = vmatpush.bf16.msra.mxu3 %v5988_v46  ;;  %v6371_v42 = vld [vmem:[#allocation3 + $0x648] sm:$0xf]  ;;  %v7115_v46 = vld [vmem:[#allocation3 + $0x654] sm:$0xf0] }
 0x571   : > { %v6372_v27 = vor.u32 %v7115_v46, %v6371_v42  ;;  %v7199_v42 = vld [vmem:[%s9317_s9 + $0xf4] sm:$0xf0] }
 0x574   : > { %4328 = vmatpush.bf16.msra.mxu2 %v5844_v50  ;;  %4341 = vmatpush.bf16.msra.mxu3 %v5972_v49  ;;  %v7111_v50 = vld [vmem:[#allocation3 + $0x634] sm:$0xf0]  ;;  %v6483_v49 = vld [vmem:[#allocation3 + $0x728] sm:$0xf] }
 0x575   : > { %v6356_v19 = vor.u32 %v7111_v50, %v6355_v40  ;;  %v6484_v51 = vor.u32 %v7143_v61, %v6483_v49  ;;  %v5989_v40 = vld [vmem:[#allocation3 + $0x358] sm:$0xf0]  ;;  %v6981_v50 = vld [vmem:[#allocation3 + $0x22c] sm:$0xf] }
 0x576   : > { %v5845_v49 = vld [vmem:[#allocation3 + $0x238] sm:$0xf0]  ;;  %v7013_v61 = vld [vmem:[#allocation3 + $0x32c] sm:$0xf] }
 0x578   : > { %4329 = vmatpush.bf16.msra.mxu2 %v5828_v24  ;;  %4342 = vmatpush.bf16.msra.mxu3 %v5956_v4  ;;  %v6340_v24 = vor.u32 %v7107_v39, %v6339_v12  ;;  %v6468_v4 = vor.u32 %v7139_v59, %v6467_v29  ;;  %v6699_v12 = vld [vmem:[%s9317_s9 + $0xe0] sm:$0xf]  ;;  %v7197_v39 = vld [vmem:[%s9317_s9 + $0xe4] sm:$0xf0]  ;;  %v6691_v59 = vld [vmem:[%s9317_s9 + $0xd0] sm:$0xf] }
 0x579   : > { %4966 = vmatmul.bf16.vlgmr.msra.gmra.mxu0 %v4576_v8  ;;  %v6700_v29 = vor.u32 %v7197_v39, %v6699_v12  ;;  %v7149_v12 = vld [vmem:[#allocation3 + $0x76c] sm:$0xf]  ;;  %v6517_v39 = vld [vmem:[#allocation3 + $0x778] sm:$0xf0] }
 0x57b   : > { %4330 = vmatmul.bf16.vlgmr.msra.gmra.mxu2 %v8677_v54  ;;  %4343 = vmatmul.bf16.vlgmr.msra.gmra.mxu3 %v8679_v13 }
 0x57c   : > { %4374 = vmatpush.bf16.msrb.mxu2 %v6452_v11  ;;  %4387 = vmatpush.bf16.msrb.mxu3 %v6580_v18  ;;  %v5944_v18 = vor.u32 %v7005_v20, %v5941_v52  ;;  %v7195_v20 = vld [vmem:[%s9317_s9 + $0xd4] sm:$0xf0]  ;;  %v5848_v52 = vor.u32 %v6981_v50, %v5845_v49 }
 0x57e   : > { %v4201_v23 = vpop.f32.mrf.mxu2  ;;  %v4214_v48 = vpop.f32.mrf.mxu3 }
 0x57f   : > { %v4202_v60 = vadd.f32 %v4201_v23, %v4081_v31  ;;  %v6985_v31 = vld [vmem:[#allocation3 + $0x24c] sm:$0xf] }
 0x580   : > { %4375 = vmatpush.bf16.msrb.mxu2 %v6436_v55  ;;  %4388 = vmatpush.bf16.msrb.mxu3 %v6564_v3  ;;  %v6053_v55 = vld [vmem:[#allocation3 + $0x3d8] sm:$0xf0]  ;;  %v5928_v3 = vor.u32 %v7001_v37, %v5925_v28  ;;  %v7165_v37 = vld [vmem:[#allocation3 + $0x7ec] sm:$0xf] }
 0x581   : > { %v8848_v5 = vadd.f32 %v4214_v48, %v4202_v60  ;;  %v6056_v2 = vor.u32 %v7033_v7, %v6053_v55  ;;  %v6581_v28 = vld [vmem:[#allocation3 + $0x7f8] sm:$0xf0]  ;;  %v6683_v7 = vld [vmem:[%s9317_s9 + $0xc0] sm:$0xf]  ;;  %v7193_v55 = vld [vmem:[%s9317_s9 + $0xc4] sm:$0xf0] }
 0x584   : > { %4376 = vmatpush.bf16.msrb.mxu2 %v6420_v14  ;;  %4389 = vmatpush.bf16.msrb.mxu3 %v6548_v15  ;;  %v6037_v14 = vld [vmem:[#allocation3 + $0x3b8] sm:$0xf0]  ;;  %v5912_v15 = vor.u32 %v6997_v10, %v5909_v44 }
 0x585   : > { %v6040_v35 = vor.u32 %v7029_v45, %v6037_v14  ;;  %v6584_v14 = vor.u32 %v7165_v37, %v6581_v28 }
 0x586   : > { %v4203_v8 = vpop.f32.mrf.mxu2  ;;  %v4216_v11 = vpop.f32.mrf.mxu3 }
 0x587   : > { %v5957_v8 = vld [vmem:[#allocation3 + $0x318] sm:$0xf0]  ;;  %v7133_v11 = vld [vmem:[#allocation3 + $0x6ec] sm:$0xf] }
 0x588   : > { %4377 = vmatpush.bf16.msrb.mxu2 %v6404_v9  ;;  %4390 = vmatpush.bf16.msrb.mxu3 %v6532_v43  ;;  %v6021_v9 = vld [vmem:[#allocation3 + $0x398] sm:$0xf0]  ;;  %v5896_v43 = vor.u32 %v6993_v33, %v5893_v56  ;;  %v7161_v33 = vld [vmem:[#allocation3 + $0x7cc] sm:$0xf] }
 0x589   : > { %v6024_v63 = vor.u32 %v7025_v53, %v6021_v9  ;;  %v6565_v56 = vld [vmem:[#allocation3 + $0x7d8] sm:$0xf0]  ;;  %v6684_v53 = vor.u32 %v7193_v55, %v6683_v7  ;;  %v6675_v9 = vld [vmem:[%s9317_s9 + $0xb0] sm:$0xf]  ;;  %v7109_v55 = vld [vmem:[#allocation3 + $0x62c] sm:$0xf] }
 0x58a   : > { %v6568_v17 = vor.u32 %v7161_v33, %v6565_v56  ;;  %v7105_v56 = vld [vmem:[#allocation3 + $0x60c] sm:$0xf] }
 0x58c   : > { %4378 = vmatpush.bf16.msrb.mxu2 %v6388_v58  ;;  %4391 = vmatpush.bf16.msrb.mxu3 %v6516_v21  ;;  %v6005_v58 = vld [vmem:[#allocation3 + $0x378] sm:$0xf0]  ;;  %v6707_v21 = vld [vmem:[%s9317_s9 + $0xf0] sm:$0xf] }
 0x58d   : > { %v6708_v46 = vor.u32 %v7199_v42, %v6707_v21  ;;  %v6008_v22 = vor.u32 %v7021_v57, %v6005_v58  ;;  %v6421_v57 = vld [vmem:[#allocation3 + $0x6b8] sm:$0xf0]  ;;  %v7157_v58 = vld [vmem:[#allocation3 + $0x7ac] sm:$0xf] }
 0x58e   : > { %v6549_v21 = vld [vmem:[#allocation3 + $0x7b8] sm:$0xf0] }
 0x58f   : > { %4919 = vmatpush.bf16.msrb.mxu1 %v6708_v46  ;;  %v6667_v46 = vld [vmem:[%s9317_s9 + $0xa0] sm:$0xf] }
 0x590   : > { %4379 = vmatpush.bf16.msrb.mxu2 %v6372_v27  ;;  %4392 = vmatpush.bf16.msrb.mxu3 %v6500_v34  ;;  %v5861_v27 = vld [vmem:[#allocation3 + $0x258] sm:$0xf0]  ;;  %v7017_v34 = vld [vmem:[#allocation3 + $0x34c] sm:$0xf] }
 0x591   : > { %v5864_v23 = vor.u32 %v6985_v31, %v5861_v27  ;;  %v5992_v48 = vor.u32 %v7017_v34, %v5989_v40  ;;  %v6552_v31 = vor.u32 %v7157_v58, %v6549_v21  ;;  %v7121_v27 = vld [vmem:[#allocation3 + $0x68c] sm:$0xf]  ;;  %v6405_v34 = vld [vmem:[#allocation3 + $0x698] sm:$0xf0] }
 0x592   : > { %v7153_v40 = vld [vmem:[#allocation3 + $0x78c] sm:$0xf]  ;;  %v6408_v50 = vor.u32 %v7121_v27, %v6405_v34  ;;  %v7190_v27 = vld [vmem:[%s9317_s9 + $0xb4] sm:$0xf]  ;;  %v6677_v34 = vld [vmem:[%s9317_s9 + $0xb8] sm:$0xf0] }
 0x593   : > { %4920 = vmatpush.bf16.msrb.mxu1 %v6700_v29 }
 0x594   : > { %4380 = vmatpush.bf16.msrb.mxu2 %v6356_v19  ;;  %4393 = vmatpush.bf16.msrb.mxu3 %v6484_v51  ;;  %v5973_v51 = vld [vmem:[#allocation3 + $0x338] sm:$0xf0] }
 0x595   : > { %v5976_v0 = vor.u32 %v7013_v61, %v5973_v51  ;;  %v7117_v61 = vld [vmem:[#allocation3 + $0x66c] sm:$0xf]  ;;  %v6389_v51 = vld [vmem:[#allocation3 + $0x678] sm:$0xf0] }
 0x598   : > { %4381 = vmatpush.bf16.msrb.mxu2 %v6340_v24  ;;  %4394 = vmatpush.bf16.msrb.mxu3 %v6468_v4  ;;  %v5829_v24 = vld [vmem:[#allocation3 + $0x218] sm:$0xf0]  ;;  %v7009_v4 = vld [vmem:[#allocation3 + $0x30c] sm:$0xf] }
 0x59b   : > { %4382 = vmatmul.bf16.vlgmr.msrb.gmra.mxu2 %v8695_v25  ;;  %4395 = vmatmul.bf16.vlgmr.msrb.gmra.mxu3 %v8697_v62 }
 0x59c   : > { %4426 = vmatpush.bf16.msra.mxu2 %v5944_v18  ;;  %4439 = vmatpush.bf16.msra.mxu3 %v6072_v36  ;;  %v6692_v18 = vor.u32 %v7195_v20, %v6691_v59  ;;  %v6453_v36 = vld [vmem:[#allocation3 + $0x6f8] sm:$0xf0]  ;;  %v6651_v59 = vld [vmem:[%s9317_s9 + $0x80] sm:$0xf]  ;;  %v7185_v20 = vld [vmem:[%s9317_s9 + $0x84] sm:$0xf0] }
 0x59d   : > { %v6456_v45 = vor.u32 %v7133_v11, %v6453_v36  ;;  %v7145_v11 = vld [vmem:[#allocation3 + $0x74c] sm:$0xf]  ;;  %v6652_v36 = vor.u32 %v7185_v20, %v6651_v59 }
 0x59e   : > { %v8858_v60 = vpop.f32.mrf.mxu2  ;;  %v8860_v19 = vpop.f32.mrf.mxu3  ;;  %4921 = vmatpush.bf16.msrb.mxu1 %v6692_v18  ;;  %v6501_v18 = vld [vmem:[#allocation3 + $0x758] sm:$0xf0] }
 0x59f   : > { %v6504_v7 = vor.u32 %v7145_v11, %v6501_v18  ;;  %v7211_v11 = vld [vmem:[%s9317_s9 + $0x154] sm:$0xf0] }
 0x5a0   : > { %4427 = vmatpush.bf16.msra.mxu2 %v5928_v3  ;;  %4440 = vmatpush.bf16.msra.mxu3 %v6056_v2  ;;  %v5832_v3 = vor.u32 %v6977_v1, %v5829_v24  ;;  %v5960_v2 = vor.u32 %v7009_v4, %v5957_v8  ;;  %v6392_v1 = vor.u32 %v7117_v61, %v6389_v51  ;;  %v7113_v4 = vld [vmem:[#allocation3 + $0x64c] sm:$0xf]  ;;  %v6373_v8 = vld [vmem:[#allocation3 + $0x658] sm:$0xf0] }
 0x5a1   : > { %v6520_v24 = vor.u32 %v7149_v12, %v6517_v39  ;;  %v6376_v28 = vor.u32 %v7113_v4, %v6373_v8 }
 0x5a2   : > { %4922 = vmatpush.bf16.msrb.mxu1 %v6684_v53 }
 0x5a4   : > { %4428 = vmatpush.bf16.msra.mxu2 %v5912_v15  ;;  %4441 = vmatpush.bf16.msra.mxu3 %v6040_v35  ;;  %v7129_v15 = vld [vmem:[#allocation3 + $0x6cc] sm:$0xf]  ;;  %v6437_v35 = vld [vmem:[#allocation3 + $0x6d8] sm:$0xf0] }
 0x5a6   : > { %v4229_v10 = vpop.f32.mrf.mxu2  ;;  %v4242_v44 = vpop.f32.mrf.mxu3 }
 0x5a7   : > { %v6357_v10 = vld [vmem:[#allocation3 + $0x638] sm:$0xf0]  ;;  %v7141_v44 = vld [vmem:[#allocation3 + $0x72c] sm:$0xf] }
 0x5a8   : > { %4429 = vmatpush.bf16.msra.mxu2 %v5896_v43  ;;  %4442 = vmatpush.bf16.msra.mxu3 %v6024_v63  ;;  %v7191_v43 = vld [vmem:[%s9317_s9 + $0xb4] sm:$0xf0]  ;;  %v6440_v63 = vor.u32 %v7129_v15, %v6437_v35  ;;  %v6701_v15 = vld [vmem:[%s9317_s9 + $0xe8] sm:$0xf0]  ;;  %v6360_v35 = vor.u32 %v7109_v55, %v6357_v10 }
 0x5a9   : > { %v6676_v42 = vor.u32 %v7191_v43, %v6675_v9  ;;  %v6341_v9 = vld [vmem:[#allocation3 + $0x618] sm:$0xf0]  ;;  %v7137_v43 = vld [vmem:[#allocation3 + $0x70c] sm:$0xf] }
 0x5aa   : > { %v6344_v58 = vor.u32 %v7105_v56, %v6341_v9  ;;  %v6723_v56 = vld [vmem:[%s9317_s9 + $0x110] sm:$0xf] }
 0x5ab   : > { %4923 = vmatpush.bf16.msrb.mxu1 %v6676_v42 }
 0x5ac   : > { %4430 = vmatpush.bf16.msra.mxu2 %v5880_v30  ;;  %4443 = vmatpush.bf16.msra.mxu3 %v6008_v22  ;;  %v7189_v30 = vld [vmem:[%s9317_s9 + $0xa4] sm:$0xf0]  ;;  %v6424_v22 = vor.u32 %v7125_v6, %v6421_v57  ;;  %v6693_v6 = vld [vmem:[%s9317_s9 + $0xd8] sm:$0xf0]  ;;  %v7192_v57 = vld [vmem:[%s9317_s9 + $0xc4] sm:$0xf] }
 0x5b0   : > { %4431 = vmatpush.bf16.msra.mxu2 %v5864_v23  ;;  %4444 = vmatpush.bf16.msra.mxu3 %v5992_v48  ;;  %v6533_v23 = vld [vmem:[#allocation3 + $0x798] sm:$0xf0]  ;;  %v7187_v48 = vld [vmem:[%s9317_s9 + $0x94] sm:$0xf0] }
 0x5b1   : > { %v6536_v49 = vor.u32 %v7153_v40, %v6533_v23  ;;  %v6680_v40 = vor.u32 %v7190_v27, %v6677_v34  ;;  %v7188_v23 = vld [vmem:[%s9317_s9 + $0xa4] sm:$0xf] }
 0x5b4   : > { %4432 = vmatpush.bf16.msra.mxu2 %v5848_v52  ;;  %4445 = vmatpush.bf16.msra.mxu3 %v5976_v0  ;;  %v7198_v52 = vld [vmem:[%s9317_s9 + $0xf4] sm:$0xf]  ;;  %v6709_v0 = vld [vmem:[%s9317_s9 + $0xf8] sm:$0xf0] }
 0x5b5   : > { %v6712_v37 = vor.u32 %v7198_v52, %v6709_v0 }
 0x5b8   : > { %4433 = vmatpush.bf16.msra.mxu2 %v5832_v3  ;;  %4446 = vmatpush.bf16.msra.mxu3 %v5960_v2 }
 0x5bb   : > { %4434 = vmatmul.bf16.vlgmr.msra.gmra.mxu2 %v8677_v54  ;;  %4447 = vmatmul.bf16.vlgmr.msra.gmra.mxu3 %v8679_v13  ;;  %v6668_v54 = vor.u32 %v7189_v30, %v6667_v46  ;;  %v6659_v13 = vld [vmem:[%s9317_s9 + $0x90] sm:$0xf]  ;;  %v6685_v46 = vld [vmem:[%s9317_s9 + $0xc8] sm:$0xf0] }
 0x5bc   : > { %4478 = vmatpush.bf16.msrb.mxu2 %v6456_v45  ;;  %4491 = vmatpush.bf16.msrb.mxu3 %v6584_v14  ;;  %v6660_v29 = vor.u32 %v7187_v48, %v6659_v13  ;;  %v6485_v45 = vld [vmem:[#allocation3 + $0x738] sm:$0xf0]  ;;  %v7196_v14 = vld [vmem:[%s9317_s9 + $0xe4] sm:$0xf]  ;;  %v7186_v48 = vld [vmem:[%s9317_s9 + $0x94] sm:$0xf] }
 0x5bd   : > { %4924 = vmatpush.bf16.msrb.mxu1 %v6668_v54  ;;  %v6488_v33 = vor.u32 %v7141_v44, %v6485_v45  ;;  %v6704_v53 = vor.u32 %v7196_v14, %v6701_v15  ;;  %v6669_v54 = vld [vmem:[%s9317_s9 + $0xa8] sm:$0xf0]  ;;  %v6739_v44 = vld [vmem:[%s9317_s9 + $0x130] sm:$0xf]  ;;  %v7207_v45 = vld [vmem:[%s9317_s9 + $0x134] sm:$0xf0] }
 0x5be   : > { %v4253_v3 = vpop.f32.mrf.mxu2  ;;  %v4266_v2 = vpop.f32.mrf.mxu3  ;;  %v6672_v13 = vor.u32 %v7188_v23, %v6669_v54  ;;  %v6740_v14 = vor.u32 %v7207_v45, %v6739_v44  ;;  %v6731_v15 = vld [vmem:[%s9317_s9 + $0x120] sm:$0xf]  ;;  %v6757_v23 = vld [vmem:[%s9317_s9 + $0x158] sm:$0xf0]  ;;  %v7208_v54 = vld [vmem:[%s9317_s9 + $0x144] sm:$0xf] }
 0x5bf   : > { %v6811_v45 = vld [vmem:[%s9317_s9 + $0x1c0] sm:$0xf] }
 0x5c0   : > { %4479 = vmatpush.bf16.msrb.mxu2 %v6440_v63  ;;  %4492 = vmatpush.bf16.msrb.mxu3 %v6568_v17  ;;  %v6469_v63 = vld [vmem:[#allocation3 + $0x718] sm:$0xf0]  ;;  %v7194_v17 = vld [vmem:[%s9317_s9 + $0xd4] sm:$0xf] }
 0x5c1   : > { %4925 = vmatpush.bf16.msrb.mxu1 %v6660_v29  ;;  %v6472_v21 = vor.u32 %v7137_v43, %v6469_v63  ;;  %v6696_v42 = vor.u32 %v7194_v17, %v6693_v6  ;;  %v6715_v63 = vld [vmem:[%s9317_s9 + $0x100] sm:$0xf]  ;;  %v7201_v17 = vld [vmem:[%s9317_s9 + $0x104] sm:$0xf0]  ;;  %v7214_v6 = vld [vmem:[%s9317_s9 + $0x174] sm:$0xf] }
 0x5c4   : > { %4480 = vmatpush.bf16.msrb.mxu2 %v6424_v22  ;;  %4493 = vmatpush.bf16.msrb.mxu3 %v6552_v31  ;;  %v6688_v31 = vor.u32 %v7192_v57, %v6685_v46  ;;  %v6773_v57 = vld [vmem:[%s9317_s9 + $0x178] sm:$0xf0] }
 0x5c5   : > { %4926 = vmatpush.bf16.msrb.mxu1 %v6652_v36 }
 0x5c6   : > { %v4255_v30 = vpop.f32.mrf.mxu2  ;;  %v4268_v22 = vpop.f32.mrf.mxu3 }
 0x5c7   : > { %v7212_v22 = vld [vmem:[%s9317_s9 + $0x164] sm:$0xf] }
 0x5c8   : > { %4481 = vmatpush.bf16.msrb.mxu2 %v6408_v50  ;;  %4494 = vmatpush.bf16.msrb.mxu3 %v6536_v49  ;;  %v4228_v50 = vadd.f32 %v8858_v60, %v8848_v5  ;;  %v7215_v49 = vld [vmem:[%s9317_s9 + $0x174] sm:$0xf0]  ;;  %v7184_v5 = vld [vmem:[%s9317_s9 + $0x84] sm:$0xf]  ;;  %v6653_v60 = vld [vmem:[%s9317_s9 + $0x88] sm:$0xf0] }
 0x5c9   : > { %4971 = vmatpush.bf16.msra.mxu1 %v6712_v37  ;;  %v6656_v29 = vor.u32 %v7184_v5, %v6653_v60  ;;  %v6747_v37 = vld [vmem:[%s9317_s9 + $0x140] sm:$0xf] }
 0x5ca   : > { %v4241_v12 = vadd.f32 %v8860_v19, %v4228_v50  ;;  %v6763_v19 = vld [vmem:[%s9317_s9 + $0x160] sm:$0xf] }
 0x5cc   : > { %4482 = vmatpush.bf16.msrb.mxu2 %v6392_v1  ;;  %4495 = vmatpush.bf16.msrb.mxu3 %v6520_v24  ;;  %v4254_v39 = vadd.f32 %v4253_v3, %v4241_v12  ;;  %v7213_v1 = vld [vmem:[%s9317_s9 + $0x164] sm:$0xf0]  ;;  %v6755_v24 = vld [vmem:[%s9317_s9 + $0x150] sm:$0xf]  ;;  %v7231_v12 = vld [vmem:[%s9317_s9 + $0x1f4] sm:$0xf0] }
 0x5cd   : > { %4972 = vmatpush.bf16.msra.mxu1 %v6704_v53  ;;  %v6764_v8 = vor.u32 %v7213_v1, %v6763_v19  ;;  %v6756_v36 = vor.u32 %v7211_v11, %v6755_v24  ;;  %v7203_v53 = vld [vmem:[%s9317_s9 + $0x114] sm:$0xf0]  ;;  %v6725_v19 = vld [vmem:[%s9317_s9 + $0x118] sm:$0xf0] }
 0x5ce   : > { %v4267_v59 = vadd.f32 %v4266_v2, %v4254_v39  ;;  %v6724_v43 = vor.u32 %v7203_v53, %v6723_v56 }
 0x5d0   : > { %4483 = vmatpush.bf16.msrb.mxu2 %v6376_v28  ;;  %4496 = vmatpush.bf16.msrb.mxu3 %v6504_v7  ;;  %v7209_v28 = vld [vmem:[%s9317_s9 + $0x144] sm:$0xf0] }
 0x5d1   : > { %4973 = vmatpush.bf16.msra.mxu1 %v6696_v42  ;;  %v6748_v10 = vor.u32 %v7209_v28, %v6747_v37 }
 0x5d4   : > { %4484 = vmatpush.bf16.msrb.mxu2 %v6360_v35  ;;  %4497 = vmatpush.bf16.msrb.mxu3 %v6488_v33  ;;  %v7205_v35 = vld [vmem:[%s9317_s9 + $0x124] sm:$0xf0] }
 0x5d5   : > { %4974 = vmatpush.bf16.msra.mxu1 %v6688_v31  ;;  %v6732_v33 = vor.u32 %v7205_v35, %v6731_v15  ;;  %v6765_v31 = vld [vmem:[%s9317_s9 + $0x168] sm:$0xf0] }
 0x5d6   : > { %v6768_v27 = vor.u32 %v7212_v22, %v6765_v31  ;;  %v7217_v22 = vld [vmem:[%s9317_s9 + $0x184] sm:$0xf0]  ;;  %v7230_v31 = vld [vmem:[%s9317_s9 + $0x1f4] sm:$0xf] }
 0x5d8   : > { %4485 = vmatpush.bf16.msrb.mxu2 %v6344_v58  ;;  %4498 = vmatpush.bf16.msrb.mxu3 %v6472_v21  ;;  %v6716_v58 = vor.u32 %v7201_v17, %v6715_v63  ;;  %v6776_v21 = vor.u32 %v7214_v6, %v6773_v57  ;;  %v7223_v63 = vld [vmem:[%s9317_s9 + $0x1b4] sm:$0xf0]  ;;  %v6795_v6 = vld [vmem:[%s9317_s9 + $0x1a0] sm:$0xf]  ;;  %v7221_v57 = vld [vmem:[%s9317_s9 + $0x1a4] sm:$0xf0] }
 0x5d9   : > { %4975 = vmatpush.bf16.msra.mxu1 %v6680_v40  ;;  %v7210_v40 = vld [vmem:[%s9317_s9 + $0x154] sm:$0xf] }
 0x5db   : > { %4486 = vmatmul.bf16.vlgmr.msrb.gmra.mxu2 %v8695_v25  ;;  %4499 = vmatmul.bf16.vlgmr.msrb.gmra.mxu3 %v8697_v62  ;;  %v6661_v25 = vld [vmem:[%s9317_s9 + $0x98] sm:$0xf0]  ;;  %v6771_v62 = vld [vmem:[%s9317_s9 + $0x170] sm:$0xf] }
 0x5dc   : > { %v6772_v61 = vor.u32 %v7215_v49, %v6771_v62  ;;  %v6664_v51 = vor.u32 %v7186_v48, %v6661_v25  ;;  %v6749_v48 = vld [vmem:[%s9317_s9 + $0x148] sm:$0xf0]  ;;  %v7206_v49 = vld [vmem:[%s9317_s9 + $0x134] sm:$0xf] }
 0x5dd   : > { %4976 = vmatpush.bf16.msra.mxu1 %v6672_v13  ;;  %v6760_v13 = vor.u32 %v7210_v40, %v6757_v23  ;;  %v6752_v62 = vor.u32 %v7208_v54, %v6749_v48  ;;  %v7228_v48 = vld [vmem:[%s9317_s9 + $0x1e4] sm:$0xf] }
 0x5de   : > { %4932 = vmatpush.bf16.msra.mxu2 %v6772_v61  ;;  %v4279_v20 = vpop.f32.mrf.mxu2  ;;  %v4292_v52 = vpop.f32.mrf.mxu3  ;;  %v6741_v61 = vld [vmem:[%s9317_s9 + $0x138] sm:$0xf0] }
 0x5df   : > { %v4280_v0 = vadd.f32 %v4279_v20, %v4267_v59  ;;  %v6744_v60 = vor.u32 %v7206_v49, %v6741_v61  ;;  %v6733_v59 = vld [vmem:[%s9317_s9 + $0x128] sm:$0xf0]  ;;  %v6821_v49 = vld [vmem:[%s9317_s9 + $0x1d8] sm:$0xf0]  ;;  %v7224_v61 = vld [vmem:[%s9317_s9 + $0x1c4] sm:$0xf] }
 0x5e1   : > { %4977 = vmatpush.bf16.msra.mxu1 %v6664_v51  ;;  %v4293_v4 = vadd.f32 %v4292_v52, %v4280_v0  ;;  %v6835_v51 = vld [vmem:[%s9317_s9 + $0x1f0] sm:$0xf]  ;;  %v7202_v0 = vld [vmem:[%s9317_s9 + $0x114] sm:$0xf] }
 0x5e2   : > { %4933 = vmatpush.bf16.msra.mxu2 %v6764_v8  ;;  %v6836_v5 = vor.u32 %v7231_v12, %v6835_v51  ;;  %v6728_v24 = vor.u32 %v7202_v0, %v6725_v19  ;;  %v6813_v12 = vld [vmem:[%s9317_s9 + $0x1c8] sm:$0xf0] }
 0x5e3   : > { %v4505_v18 = vmul.f32 0.2, %v4293_v4  ;;  %v6797_v0 = vld [vmem:[%s9317_s9 + $0x1a8] sm:$0xf0] }
 0x5e4   : > { %4945 = vmatpush.bf16.msra.mxu3 %v6836_v5 }
 0x5e5   : > { %4978 = vmatpush.bf16.msra.mxu1 %v6656_v29  ;;  %v4509_v7 = vmax.f32 %v4293_v4, %v4505_v18  ;;  %v7204_v29 = vld [vmem:[%s9317_s9 + $0x124] sm:$0xf] }
 0x5e6   : > { %v4281_v55 = vpop.f32.mrf.mxu2  ;;  %v4294_v3 = vpop.f32.mrf.mxu3  ;;  %4934 = vmatpush.bf16.msra.mxu2 %v6756_v36  ;;  %v6736_v52 = vor.u32 %v7204_v29, %v6733_v59  ;;  %v7200_v4 = vld [vmem:[%s9317_s9 + $0x104] sm:$0xf]  ;;  %v7222_v29 = vld [vmem:[%s9317_s9 + $0x1b4] sm:$0xf]  ;;  %v6805_v59 = vld [vmem:[%s9317_s9 + $0x1b8] sm:$0xf0] }
 0x5e7   : > { %v4577_v2 = vpack.c.bf16 %v4509_v7, %v4509_v7  ;;  %v9001_v9 = vpop.f32.mrf.mxu0  ;;  %v6827_v7 = vld [vmem:[%s9317_s9 + $0x1e0] sm:$0xf]  ;;  %v7229_v55 = vld [vmem:[%s9317_s9 + $0x1e4] sm:$0xf0] }
 0x5e9   : > { %4927 = vmatmul.bf16.vlgmr.msrb.gmra.mxu1 %v4577_v2 }
 0x5ea   : > { %4935 = vmatpush.bf16.msra.mxu2 %v6748_v10 }
 0x5ee   : > { %4936 = vmatpush.bf16.msra.mxu2 %v6740_v14  ;;  %v7225_v14 = vld [vmem:[%s9317_s9 + $0x1c4] sm:$0xf0] }
 0x5ef   : > { %v4917_v42 = vpop.f32.mrf.mxu0  ;;  %v6812_v53 = vor.u32 %v7225_v14, %v6811_v45  ;;  %v4580_v45 = vld [vmem:[%s9318_s10] sm:$0x3] }
 0x5f0   : > { %v7219_v42 = vld [vmem:[%s9317_s9 + $0x194] sm:$0xf0] }
 0x5f2   : > { %4937 = vmatpush.bf16.msra.mxu2 %v6732_v33 }
 0x5f6   : > { %4938 = vmatpush.bf16.msra.mxu2 %v6724_v43  ;;  %v6803_v43 = vld [vmem:[%s9317_s9 + $0x1b0] sm:$0xf] }
 0x5f7   : > { %v9021_v34 = vpop.f32.mrf.mxu0  ;;  %v6804_v17 = vor.u32 %v7223_v63, %v6803_v43 }
 0x5f9   : > { %4979 = vmatmul.bf16.vlgmr.msra.gmra.mxu1 %v4577_v2  ;;  %v6828_v2 = vor.u32 %v7229_v55, %v6827_v7 }
 0x5fa   : > { %4939 = vmatpush.bf16.msra.mxu2 %v6716_v58  ;;  %v6796_v58 = vor.u32 %v7221_v57, %v6795_v6  ;;  %v5027_v6 = vld [vmem:[%s9319_s11 + $0x68] sm:$0xff]  ;;  %v5044_v57 = vld [vmem:[%s9319_s11 + $0xf0] sm:$0xff] }
 0x5fb   : > { %4946 = vmatpush.bf16.msra.mxu3 %v6828_v2 }
 0x5fe   : > { %v4331_v46 = vpop.f32.mrf.mxu2  ;;  %v4344_v30 = vpop.f32.mrf.mxu3  ;;  %4984 = vmatpush.bf16.msrb.mxu2 %v6776_v21  ;;  %v6787_v21 = vld [vmem:[%s9317_s9 + $0x190] sm:$0xf] }
 0x5ff   : > { %v4969_v39 = vpop.f32.mrf.mxu0  ;;  %v4332_v20 = vadd.f32 %v4331_v46, %v8713_v32  ;;  %v6717_v32 = vld [vmem:[%s9317_s9 + $0x108] sm:$0xf0]  ;;  %v6788_v46 = vor.u32 %v7219_v42, %v6787_v21  ;;  %v5025_v42 = vld [vmem:[%s9319_s11 + $0x58] sm:$0xff] }
 0x600   : > { %v6720_v11 = vor.u32 %v7200_v4, %v6717_v32  ;;  %v6816_v39 = vor.u32 %v7224_v61, %v6813_v12  ;;  %v6789_v4 = vld [vmem:[%s9317_s9 + $0x198] sm:$0xf0]  ;;  %v5043_v21 = vld [vmem:[%s9319_s11 + $0xe8] sm:$0xff]  ;;  %v5016_v61 = vld [vmem:[%s9319_s11 + $0x10] sm:$0xff] }
 0x601   : > { %v4345_v1 = vadd.f32 %v4344_v30, %v4332_v20  ;;  %v6779_v30 = vld [vmem:[%s9317_s9 + $0x180] sm:$0xf]  ;;  %v6808_v20 = vor.u32 %v7222_v29, %v6805_v59  ;;  %v5015_v12 = vld [vmem:[%s9319_s11 + $0x8] sm:$0xff]  ;;  %v5037_v29 = vld [vmem:[%s9319_s11 + $0xb8] sm:$0xff] }
 0x602   : > { %4985 = vmatpush.bf16.msrb.mxu2 %v6768_v27  ;;  %v6837_v27 = vld [vmem:[%s9317_s9 + $0x1f8] sm:$0xf0]  ;;  %v6780_v40 = vor.u32 %v7217_v22, %v6779_v30  ;;  %v5024_v22 = vld [vmem:[%s9319_s11 + $0x50] sm:$0xff] }
 0x603   : > { %v4358_v8 = vadd.f32 %v8743_v41, %v4345_v1  ;;  %v6819_v41 = vld [vmem:[%s9317_s9 + $0x1d0] sm:$0xf]  ;;  %v6840_v23 = vor.u32 %v7230_v31, %v6837_v27  ;;  %v5023_v31 = vld [vmem:[%s9319_s11 + $0x48] sm:$0xff]  ;;  %v5022_v27 = vld [vmem:[%s9319_s11 + $0x40] sm:$0xff] }
 0x604   : > { %v5036_v59 = vld [vmem:[%s9319_s11 + $0xb0] sm:$0xff] }
 0x605   : > { %v4371_v18 = vadd.f32 %v8745_v26, %v4358_v8  ;;  %v7227_v26 = vld [vmem:[%s9317_s9 + $0x1d4] sm:$0xf0] }
 0x606   : > { %v4333_v50 = vpop.f32.mrf.mxu2  ;;  %v4346_v25 = vpop.f32.mrf.mxu3  ;;  %4986 = vmatpush.bf16.msrb.mxu2 %v6760_v13  ;;  %v6820_v44 = vor.u32 %v7227_v26, %v6819_v41 }
 0x607   : > { %v6829_v50 = vld [vmem:[%s9317_s9 + $0x1e8] sm:$0xf0] }
 0x608   : > { %4947 = vmatpush.bf16.msra.mxu3 %v6820_v44  ;;  %v6832_v25 = vor.u32 %v7228_v48, %v6829_v50  ;;  %v5018_v48 = vld [vmem:[%s9319_s11 + $0x20] sm:$0xff] }
 0x60a   : > { %4987 = vmatpush.bf16.msrb.mxu2 %v6752_v62  ;;  %v7226_v62 = vld [vmem:[%s9317_s9 + $0x1d4] sm:$0xf] }
 0x60b   : > { %v6824_v51 = vor.u32 %v7226_v62, %v6821_v49  ;;  %v5017_v62 = vld [vmem:[%s9319_s11 + $0x18] sm:$0xff] }
 0x60c   : > { %4948 = vmatpush.bf16.msra.mxu3 %v6812_v53  ;;  %v5041_v49 = vld [vmem:[%s9319_s11 + $0xd8] sm:$0xff] }
 0x60e   : > { %4988 = vmatpush.bf16.msrb.mxu2 %v6744_v60 }
 0x610   : > { %4949 = vmatpush.bf16.msra.mxu3 %v6804_v17  ;;  %v5029_v17 = vld [vmem:[%s9319_s11 + $0x78] sm:$0xff] }
 0x611   : > { %5047 = vmatpush.msrb.mxu0 %v5029_v17 }
 0x612   : > { %4989 = vmatpush.bf16.msrb.mxu2 %v6736_v52  ;;  %v7220_v52 = vld [vmem:[%s9317_s9 + $0x1a4] sm:$0xf] }
 0x613   : > { %v6800_v1 = vor.u32 %v7220_v52, %v6797_v0  ;;  %v5034_v52 = vld [vmem:[%s9319_s11 + $0xa0] sm:$0xff]  ;;  %v5033_v0 = vld [vmem:[%s9319_s11 + $0x98] sm:$0xff] }
 0x614   : > { %4950 = vmatpush.bf16.msra.mxu3 %v6796_v58  ;;  %v5026_v58 = vld [vmem:[%s9319_s11 + $0x60] sm:$0xff] }
 0x616   : > { %4990 = vmatpush.bf16.msrb.mxu2 %v6728_v24  ;;  %v7218_v24 = vld [vmem:[%s9317_s9 + $0x194] sm:$0xf] }
 0x617   : > { %v6792_v8 = vor.u32 %v7218_v24, %v6789_v4  ;;  %v5030_v24 = vld [vmem:[%s9319_s11 + $0x80] sm:$0xff] }
 0x618   : > { %4951 = vmatpush.bf16.msra.mxu3 %v6788_v46  ;;  %v5042_v46 = vld [vmem:[%s9319_s11 + $0xe0] sm:$0xff] }
 0x61a   : > { %4991 = vmatpush.bf16.msrb.mxu2 %v6720_v11  ;;  %v7216_v11 = vld [vmem:[%s9317_s9 + $0x184] sm:$0xf] }
 0x61c   : > { %4952 = vmatpush.bf16.msra.mxu3 %v6780_v40  ;;  %v5021_v40 = vld [vmem:[%s9319_s11 + $0x38] sm:$0xff] }
 0x61e   : > { %v4383_v36 = vpop.f32.mrf.mxu2  ;;  %v4396_v37 = vpop.f32.mrf.mxu3 }
 0x61f   : > { %v4384_v28 = vadd.f32 %v4383_v36, %v4371_v18 }
 0x620   : > { %4997 = vmatpush.bf16.msrb.mxu3 %v6840_v23 }
 0x621   : > { %v4397_v3 = vadd.f32 %v4396_v37, %v4384_v28 }
 0x623   : > { %v4506_v10 = vmul.f32 0.2, %v4397_v3 }
 0x624   : > { %4998 = vmatpush.bf16.msrb.mxu3 %v6832_v25 }
 0x625   : > { %v4510_v15 = vmax.f32 %v4397_v3, %v4506_v10 }
 0x626   : > { %v4385_v35 = vpop.f32.mrf.mxu2  ;;  %v4398_v33 = vpop.f32.mrf.mxu3 }
 0x627   : > { %v4578_v56 = vpack.c.bf16 %v4510_v15, %v4510_v15  ;;  %v4903_v33 = vperm.slane %v4580_v45, 1 }
 0x628   : > { %4999 = vmatpush.bf16.msrb.mxu3 %v6824_v51  ;;  %v5040_v51 = vld [vmem:[%s9319_s11 + $0xd0] sm:$0xff] }
 0x629   : > { %4940 = vmatmul.bf16.vlgmr.msra.gmra.mxu2 %v4578_v56 }
 0x62c   : > { %5000 = vmatpush.bf16.msrb.mxu3 %v6816_v39  ;;  %v5038_v39 = vld [vmem:[%s9319_s11 + $0xc0] sm:$0xff] }
 0x630   : > { %5001 = vmatpush.bf16.msrb.mxu3 %v6808_v20  ;;  %v5035_v20 = vld [vmem:[%s9319_s11 + $0xa8] sm:$0xff] }
 0x634   : > { %5002 = vmatpush.bf16.msrb.mxu3 %v6800_v1  ;;  %v5031_v1 = vld [vmem:[%s9319_s11 + $0x88] sm:$0xff] }
 0x638   : > { %5003 = vmatpush.bf16.msrb.mxu3 %v6792_v8 }
 0x639   : > { %4992 = vmatmul.bf16.vlgmr.msrb.gmra.mxu2 %v4578_v56  ;;  %v4968_v56 = vadd.f32 %v9021_v34, %v4903_v33  ;;  %v5045_v34 = vld [vmem:[%s9319_s11 + $0xf8] sm:$0xff] }
 0x63a   : > { %5067 = vmatpush.msrb.mxu1 %v5045_v34 }
 0x63c   : > { %5068 = vmatpush.msrb.mxu1 %v5044_v57 }
 0x63e   : > { %v4435_v54 = vpop.f32.mrf.mxu2  ;;  %v4448_v13 = vpop.f32.mrf.mxu3  ;;  %5069 = vmatpush.msrb.mxu1 %v5043_v21 }
 0x63f   : > { %v4436_v19 = vadd.f32 %v4435_v54, %v8784_v38  ;;  %v6781_v38 = vld [vmem:[%s9317_s9 + $0x188] sm:$0xf0]  ;;  %v5020_v54 = vld [vmem:[%s9319_s11 + $0x30] sm:$0xff] }
 0x640   : > { %v6784_v36 = vor.u32 %v7216_v11, %v6781_v38  ;;  %5070 = vmatpush.msrb.mxu1 %v5042_v46 }
 0x641   : > { %v4449_v32 = vadd.f32 %v4448_v13, %v4436_v19  ;;  %v5019_v13 = vld [vmem:[%s9319_s11 + $0x28] sm:$0xff]  ;;  %v5032_v19 = vld [vmem:[%s9319_s11 + $0x90] sm:$0xff] }
 0x642   : > { %5004 = vmatpush.bf16.msrb.mxu3 %v6784_v36  ;;  %5071 = vmatpush.msrb.mxu1 %v5041_v49 }
 0x643   : > { %v4462_v18 = vadd.f32 %v8840_v47, %v4449_v32  ;;  %v4902_v47 = vperm.slane %v4580_v45, 0 }
 0x644   : > { %5072 = vmatpush.msrb.mxu1 %v5040_v51 }
 0x645   : > { %v4475_v37 = vadd.f32 %v8842_v16, %v4462_v18  ;;  %v4916_v14 = vadd.f32 %v9001_v9, %v4902_v47  ;;  %v5028_v9 = vld [vmem:[%s9319_s11 + $0x70] sm:$0xff] }
 0x646   : > { %v4437_v5 = vpop.f32.mrf.mxu2  ;;  %v4450_v60 = vpop.f32.mrf.mxu3  ;;  %5048 = vmatpush.msrb.mxu0 %v5028_v9 }
 0x647   : > { %v5039_v5 = vld [vmem:[%s9319_s11 + $0xc8] sm:$0xff]  ;;  %v5014_v60 = vld [vmem:[%s9319_s11] sm:$0xff] }
 0x648   : > { %5049 = vmatpush.msrb.mxu0 %v5027_v6  ;;  %5073 = vmatpush.msrb.mxu1 %v5039_v5 }
 0x64a   : > { %5050 = vmatpush.msrb.mxu0 %v5026_v58  ;;  %5074 = vmatpush.msrb.mxu1 %v5038_v39 }
 0x64c   : > { %5051 = vmatpush.msrb.mxu0 %v5025_v42  ;;  %5075 = vmatpush.msrb.mxu1 %v5037_v29 }
 0x64e   : > { %5052 = vmatpush.msrb.mxu0 %v5024_v22  ;;  %5076 = vmatpush.msrb.mxu1 %v5036_v59 }
 0x650   : > { %5053 = vmatpush.msrb.mxu0 %v5023_v31  ;;  %5077 = vmatpush.msrb.mxu1 %v5035_v20 }
 0x652   : > { %5054 = vmatpush.msrb.mxu0 %v5022_v27  ;;  %5078 = vmatpush.msrb.mxu1 %v5034_v52 }
 0x654   : > { %5055 = vmatpush.msrb.mxu0 %v5021_v40  ;;  %5079 = vmatpush.msrb.mxu1 %v5033_v0 }
 0x656   : > { %5056 = vmatpush.msrb.mxu0 %v5020_v54  ;;  %5080 = vmatpush.msrb.mxu1 %v5032_v19 }
 0x658   : > { %5057 = vmatpush.msrb.mxu0 %v5019_v13  ;;  %5081 = vmatpush.msrb.mxu1 %v5031_v1 }
 0x65a   : > { %5058 = vmatpush.msrb.mxu0 %v5018_v48  ;;  %5082 = vmatpush.msrb.mxu1 %v5030_v24 }
 0x65c   : > { %5059 = vmatpush.msrb.mxu0 %v5017_v62 }
 0x65e   : > { %v4487_v28 = vpop.f32.mrf.mxu2  ;;  %v4500_v7 = vpop.f32.mrf.mxu3  ;;  %5060 = vmatpush.msrb.mxu0 %v5016_v61 }
 0x65f   : > { %v4488_v55 = vadd.f32 %v4487_v28, %v4475_v37 }
 0x660   : > { %5061 = vmatpush.msrb.mxu0 %v5015_v12 }
 0x661   : > { %v4501_v41 = vadd.f32 %v4500_v7, %v4488_v55 }
 0x662   : > { %5062 = vmatpush.msrb.mxu0 %v5014_v60 }
 0x663   : > { %v4507_v3 = vmul.f32 0.2, %v4501_v41 }
 0x665   : > { %v4511_v2 = vmax.f32 %v4501_v41, %v4507_v3  ;;  %v5046_v3 = vld [vmem:[%s9320_s12] sm:$0x1] }
 0x666   : > { %v4489_v26 = vpop.f32.mrf.mxu2  ;;  %v4502_v10 = vpop.f32.mrf.mxu3 }
 0x667   : > { %v4579_v44 = vpack.c.bf16 %v4511_v2, %v4511_v2  ;;  %v4928_v15 = vpop.f32.mrf.mxu1 }
 0x668   : > { %v9165_v16 = vadd.f32 %v4928_v15, %v4916_v14 }
 0x669   : > { %4953 = vmatmul.bf16.vlgmr.msra.gmra.mxu3 %v4579_v44 }
 0x66f   : > { %v4930_v35 = vpop.f32.mrf.mxu1 }
 0x677   : > { %v4980_v53 = vpop.f32.mrf.mxu1 }
 0x678   : > { %v9168_v43 = vadd.f32 %v4980_v53, %v4968_v56 }
 0x679   : > { %5005 = vmatmul.bf16.vlgmr.msrb.gmra.mxu3 %v4579_v44 }
 0x67f   : > { %v4982_v63 = vpop.f32.mrf.mxu1 }
 0x6ac   : > { %v4941_v30 = vpop.f32.mrf.mxu2 }
 0x6ad   : > { %v4942_v4 = vadd.f32 %v4941_v30, %v9165_v16 }
 0x6b4   : > { %v4943_v23 = vpop.f32.mrf.mxu2 }
 0x6bc   : > { %v4993_v50 = vpop.f32.mrf.mxu2 }
 0x6bd   : > { %v4994_v36 = vadd.f32 %v4993_v50, %v9168_v43 }
 0x6c4   : > { %v4995_v25 = vpop.f32.mrf.mxu2 }
 0x6ec   : > { %v4954_v32 = vpop.f32.mrf.mxu3 }
 0x6ed   : > { %v4955_v8 = vadd.f32 %v4954_v32, %v4942_v4 }
 0x6ef   : > { %v5010_v11 = vmul.f32 0.2, %v4955_v8 }
 0x6f1   : > { %v5012_v38 = vmax.f32 %v4955_v8, %v5010_v11 }
 0x6f3   : > { %5063 = vmatmul.f32.vlgmr.msrb.gmra.mxu0 %v5012_v38 }
 0x6f4   : > { %v4956_v18 = vpop.f32.mrf.mxu3 }
 0x6fc   : > { %v5006_v37 = vpop.f32.mrf.mxu3 }
 0x6fd   : > { %v5007_v28 = vadd.f32 %v5006_v37, %v4994_v36 }
 0x6ff   : > { %v5011_v7 = vmul.f32 0.2, %v5007_v28 }
 0x701   : > { %v5013_v55 = vmax.f32 %v5007_v28, %v5011_v7 }
 0x703   : > { %5083 = vmatmul.f32.vlgmr.msrb.gmra.mxu1 %v5013_v55 }
 0x704   : > { %v5008_v41 = vpop.f32.mrf.mxu3 }
 0x770   : > { %v5064_v2 = vpop.f32.mrf.mxu0 }
 0x771   : > { %v5065_v26 = vadd.f32 %v5064_v2, %v5046_v3 }
 0x780   : > { %v5084_v10 = vpop.f32.mrf.mxu1 }
 0x781   : > { %v5085_v44 = vadd.f32 %v5084_v10, %v5065_v26 }
 0x783   : > { %5088 = vst.msk [vmem:[%s472_s23] sm:$0x1] %vm5087_vm10, %v5085_v44 }
 0x784   : > { %7362 = shalt.err (!%p7359_p9)
}
 0x785   : > { %7236 = dma.vmem_to_hbm [thread:$0]  (%p7532_p4), %s5101_s25, 16, %s5103_s16, %s5090_s24  }
 0x786 PF: > { %s9332_s15 = sld [smem:[#allocation9_spill]]  ;;  %p7248_p10 = scmp.ge.s32.totalorder %s7417_s30, 2 }
 0x788   : > { %p7243_p11 = pnand %p7248_p10, %p7539_p8 }
 0x78a   : > { %p7244_p12 = pneg %p7243_p11 }
 0x78c   : > { %s5114_s23 = sand.u32 1, %s9332_s15  }
 0x78d   : > { %s5115_s19 = scalar_lea.sflag [#allocation5], %s5114_s23 }
 0x78e   : > { %7392 = dma.done.wait (%p7244_p12), %s5115_s19, 16  }
 0x78f   : > { %7394 = vsyncadd (%p7244_p12), %s5115_s19, 4294967280  ;;  %s27_s30 = sadd.s32 1, %s7417_s30   ;;  %s9333_s0 = sld [smem:[#allocation10_spill]] }
 0x790   : > { %p24_p13 = scmp.ge.s32.totalorder %s27_s30, 4   ;;  %s9334_s25 = smov %s7401_s26 }
 0x791   : > { %s9335_s26 = smov %s7405_s27  ;;  %s9336_s27 = smov %s7545_s21 }
 0x792   : > { %s9337_s28 = smov %s7413_s29  ;;  %26 = sbr.rel (!%p24_p13) target bundleno = 8 (0x8), region = 120 }
 0x795   : > { %s9338_s29 = smov %s9333_s0 }
 0x797   :  { %5120 = vsyncpa [#allocation4], 1 }
 0x798   :  { %5122 = vsyncpa [#allocation4 + $0x1], 1 }
 0x799   :  { %5123 = vsyncpa [#allocation5], 1 }
 0x79a   :  { %5125 = vsyncpa [#allocation5 + $0x1], 1 }

</bundles_post_ra>
